<compile_context>
chip_gen: v7x
topology: tpu7x:2x2x1
jax: 0.10.0
libtpu: 0.0.40
codegen_flags: <defaults>
</compile_context>

<pallas_src>
import functools

import jax
import jax.numpy as jnp
import numpy as np
from jax import lax
from jax.experimental import pallas as pl
from jax.experimental.pallas import tpu as pltpu


# ----------------------------------------------------------------------------
# Pallas kernel: the entire decoder loop runs in one invocation (grid=(1,)).
# ----------------------------------------------------------------------------
def decoder_kernel(
    enc_ref,      # (B, T, E)    encoder outputs (VMEM-resident, read per use)
    yhist_ref,    # (S, B, F)    y_history, time-major (S = max(T-1, 1))
    w1h_ref,      # (D, E)       attn layer-1 weight, hidden part
    w1c_ref,      # (D, E)       attn layer-1 weight, cell part
    w1e_ref,      # (E, E)       attn layer-1 weight, encoder part
    b1_ref,       # (1, E)       attn layer-1 bias (folded into enc_proj)
    w2_ref,       # (1, 1, E)    attn layer-2 weight as a row (VPU score head)
    wfc_c_ref,    # (E, F)       fc weight, context part
    wfc_y_ref,    # (F, F)       fc weight, y part
    bfc_ref,      # (1, F)       fc bias + extra learned bias (pre-summed)
    wih_ref,      # (F, 4D)      LSTM W_ih (transposed)
    whh_ref,      # (D, 4D)      LSTM W_hh (transposed)
    blstm_ref,    # (1, 4D)      LSTM b_ih + b_hh
    w3h_ref,      # (D, D)       linear3 weight, hidden part
    w3c_ref,      # (E, D)       linear3 weight, context part
    b3_ref,       # (1, D)       linear3 bias + bias3 (pre-summed)
    wff_ref,      # (D, F)       fc_final weight
    bff_ref,      # (1, F)       fc_final bias + bias2 (pre-summed)
    out_ref,      # (B, F)       output
    *,
    num_steps,    # static: T - 1
):
    B, T, E = enc_ref.shape
    D = whh_ref.shape[0]
    F = bfc_ref.shape[1]

    # ---- hoisted, t-invariant encoder projection (once), b1 folded in ------
    enc_proj = (
        jnp.dot(enc_ref[...].reshape(B * T, E), w1e_ref[...],
                preferred_element_type=jnp.float32)
        + b1_ref[...]
    ).reshape(B, T, E)

    # Hoist loop-invariant weight loads out of the time loop.
    w1h = w1h_ref[...]
    w1c = w1c_ref[...]
    w2_row = w2_ref[...]                                  # (1, 1, E)
    wfc_c = wfc_c_ref[...]
    wfc_y = wfc_y_ref[...]
    bfc = bfc_ref[...]
    wih = wih_ref[...]
    whh = whh_ref[...]
    blstm = blstm_ref[...]

    def step(t, carry):
        h, c, _ = carry                                   # (B,D), (B,D), (B,E)

        # ---- additive attention over the T encoder steps --------------------
        # Split dots (no in-loop concat of sub-128-lane operands).
        hc_proj = (jnp.dot(h, w1h, preferred_element_type=jnp.float32)
                   + jnp.dot(c, w1c, preferred_element_type=jnp.float32))
        # (v6e/v7x option: cast the pre-activation to bf16 before tanh for a
        #  ~2x EUP path; skipped here — it breaks the 1e-4 reference tolerance
        #  and v5e has no bf16 EUP path.)
        z = jnp.tanh(enc_proj + hc_proj[:, None, :])      # (B, T, E)
        # N=1 score head on the VPU (mul) + XLU (lane reduce) instead of MXU.
        scores = jnp.sum(z * w2_row, axis=-1)             # (B, T)
        # Logits bounded by ||w2||_1 (z in [-1,1]) -> skip max-subtraction;
        # attn layer-2 bias omitted (softmax is shift-invariant).
        ex = jnp.exp(scores)
        denom = jnp.sum(ex, axis=-1, keepdims=True)       # (B, 1)
        inv = pl.reciprocal(denom, approx=True)           # EUP vrcp
        inv = inv * (2.0 - denom * inv)                   # 1 Newton step: ~1e-8 rel err
        alpha = ex * inv
        # Weighted sum of encoder states, read from the ref at the use site
        # (no enc-sized live range across the unrolled loop).
        context = jnp.sum(alpha[:, :, None] * enc_ref[...], axis=1)   # (B, E)

        # ---- y_tilde = fc([context, y_t]) + bias (split; F=1 -> VPU MAC) ----
        y_t = yhist_ref[t]                                            # (B, F)
        y_tilde = jnp.dot(context, wfc_c,
                          preferred_element_type=jnp.float32) + bfc
        if F == 1:
            y_tilde = y_tilde + y_t * wfc_y               # (B,1)*(1,1)
        else:
            y_tilde = y_tilde + jnp.dot(y_t, wfc_y,
                                        preferred_element_type=jnp.float32)

        # ---- single LSTM cell step (gate order i,f,g,o; split W_ih/W_hh) ----
        gates = jnp.dot(h, whh, preferred_element_type=jnp.float32) + blstm
        if F == 1:
            gates = gates + y_tilde * wih                 # (B,1)*(1,4D)
        else:
            gates = gates + jnp.dot(y_tilde, wih,
                                    preferred_element_type=jnp.float32)
        i_g = jax.nn.sigmoid(gates[:, 0:D])
        f_g = jax.nn.sigmoid(gates[:, D:2 * D])
        g_g = jnp.tanh(gates[:, 2 * D:3 * D])
        o_g = jax.nn.sigmoid(gates[:, 3 * D:4 * D])
        c_new = f_g * c + i_g * g_g
        h_new = o_g * jnp.tanh(c_new)
        return h_new, c_new, context

    h0 = jnp.zeros((B, D), jnp.float32)
    c0 = jnp.zeros((B, D), jnp.float32)
    ctx0 = jnp.zeros((B, E), jnp.float32)

    if num_steps > 0:   # static; T == 1 simply skips the loop
        # Partial unroll: scheduling freedom across step bodies for long T,
        # bounded vreg pressure (full unroll for num_steps <= 8).
        h, c, context = lax.fori_loop(
            0, num_steps, step, (h0, c0, ctx0),
            unroll=min(8, num_steps))
    else:
        h, c, context = h0, c0, ctx0

    # ---- final projection: linear3([h, context]) + bias3 -> fc_final + bias2
    pre = (jnp.dot(h, w3h_ref[...], preferred_element_type=jnp.float32)
           + jnp.dot(context, w3c_ref[...], preferred_element_type=jnp.float32)
           + b3_ref[...])
    out_ref[...] = (
        jnp.dot(pre, wff_ref[...], preferred_element_type=jnp.float32)
        + bff_ref[...]
    )


# ----------------------------------------------------------------------------
# Wrapper
# ----------------------------------------------------------------------------
_KERNEL_WEIGHT_ORDER = (
    "w1h", "w1c", "w1e", "b1", "w2",
    "wfc_c", "wfc_y", "bfc",
    "wih", "whh", "blstm",
    "w3h", "w3c", "b3",
    "wff", "bff",
)


def _kernel_weights(p):
    """Pre-sum bias pairs once, outside the kernel; keep weights split."""
    E = p["w1e_T"].shape[0]
    return {
        "w1h": p["w1h_T"],                           # (D, E)
        "w1c": p["w1c_T"],                           # (D, E)
        "w1e": p["w1e_T"],                           # (E, E)
        "b1": p["b1"],                               # (1, E)
        "w2": p["w2_T"].reshape(1, 1, E),            # (1, 1, E)
        "wfc_c": p["wfc_c_T"],                       # (E, F)
        "wfc_y": p["wfc_y_T"],                       # (F, F)
        "bfc": p["bfc"] + p["bias"],                 # (1, F)
        "wih": p["wih_T"],                           # (F, 4D)
        "whh": p["whh_T"],                           # (D, 4D)
        "blstm": p["blstm"],                         # (1, 4D)
        "w3h": p["w3h_T"],                           # (D, D)
        "w3c": p["w3c_T"],                           # (E, D)
        "b3": p["b3"] + p["bias3"],                  # (1, D)
        "wff": p["wff_T"],                           # (D, F)
        "bff": p["bff"] + p["bias2"],                # (1, F)
    }


def _vmem_limit_bytes(enc_shape, y_shape, weight_shapes, out_shape):
    """Size the scoped-VMEM limit from the actual resident footprint."""
    f32 = 4
    nbytes = lambda s: int(np.prod(s)) * f32
    enc_b = nbytes(enc_shape)
    blocks = (enc_b + nbytes(y_shape) + nbytes(out_shape)
              + sum(nbytes(s) for s in weight_shapes))
    # Pallas double-buffers each block; enc_proj is one extra enc-sized value
    # live inside the kernel.  Add 2 MiB headroom for compiler scratch.
    budget = 2 * blocks + enc_b + (2 << 20)
    return int(min(max(budget, 8 << 20), 32 << 20))


@jax.jit
def decoder_pallas(input_encoded, y_history, params):
    B, T, E = input_encoded.shape
    F = y_history.shape[-1]
    steps = T - 1

    if steps > 0:
        y_tm = jnp.transpose(y_history, (1, 0, 2)).astype(jnp.float32)
    else:
        # T == 1: the loop never runs; pass a dummy (never read).
        y_tm = jnp.zeros((1, B, F), jnp.float32)

    kw = _kernel_weights(params)
    weights = [kw[k].astype(jnp.float32) for k in _KERNEL_WEIGHT_ORDER]

    in_specs = [
        pl.BlockSpec(input_encoded.shape, lambda i: (0, 0, 0)),  # encoder outs
        pl.BlockSpec(y_tm.shape, lambda i: (0, 0, 0)),           # y_history
    ]
    for w in weights:
        in_specs.append(pl.BlockSpec(w.shape, lambda i, n=w.ndim: (0,) * n))

    # TODO(synk): on v7x with large B, switch to grid=(2,) with a B-split
    # ('parallel') to use both TensorCores; no benefit at B=4 (latency-bound).
    # TODO(synk): on v5e with multi-MB enc, take enc via memory_space=pl.ANY
    # and pipeline T-chunks of the hoisted enc @ W1_enc GEMM over the DMA.
    grid_spec = pltpu.PrefetchScalarGridSpec(
        num_scalar_prefetch=0,
        grid=(1,),                      # single invocation; time loop in-kernel
        in_specs=in_specs,
        out_specs=pl.BlockSpec((B, F), lambda i: (0, 0)),
    )

    kernel = functools.partial(decoder_kernel, num_steps=steps)

    vmem_limit = _vmem_limit_bytes(
        input_encoded.shape, y_tm.shape, [w.shape for w in weights], (B, F))

    return pl.pallas_call(
        kernel,
        out_shape=jax.ShapeDtypeStruct((B, F), jnp.float32),
        grid_spec=grid_spec,
        compiler_params=pltpu.CompilerParams(
            dimension_semantics=("arbitrary",),
            vmem_limit_bytes=vmem_limit,
        ),
    )(input_encoded.astype(jnp.float32), y_tm, *weights)


# ----------------------------------------------------------------------------
# Pure-JAX reference (mirrors the PyTorch forward, mode='none')
# ----------------------------------------------------------------------------
def decoder_ref(enc, y_hist, p):
    B, T, E = enc.shape
    D = p["whh_T"].shape[0]
    h = jnp.zeros((B, D), jnp.float32)
    c = jnp.zeros((B, D), jnp.float32)
    context = jnp.zeros((B, E), jnp.float32)
    for t in range(T - 1):
        hc = h @ p["w1h_T"] + c @ p["w1c_T"] + p["b1"]
        z = jnp.tanh(enc @ p["w1e_T"] + hc[:, None, :])
        scores = (z @ p["w2_T"])[..., 0] + p["b2"][0, 0]
        alpha = jax.nn.softmax(scores, axis=1)
        context = jnp.sum(alpha[:, :, None] * enc, axis=1)
        y_tilde = (context @ p["wfc_c_T"] + y_hist[:, t] @ p["wfc_y_T"]
                   + p["bfc"] + p["bias"])
        gates = y_tilde @ p["wih_T"] + h @ p["whh_T"] + p["blstm"]
        i = jax.nn.sigmoid(gates[:, :D])
        f = jax.nn.sigmoid(gates[:, D:2 * D])
        g = jnp.tanh(gates[:, 2 * D:3 * D])
        o = jax.nn.sigmoid(gates[:, 3 * D:])
        c = f * c + i * g
        h = o * jnp.tanh(c)
    pre = h @ p["w3h_T"] + context @ p["w3c_T"] + p["b3"] + p["bias3"]
    return pre @ p["wff_T"] + p["bff"] + p["bias2"]


# ----------------------------------------------------------------------------
# Deterministic parameter init (shapes follow Decoder.__init__)
# ----------------------------------------------------------------------------
def make_params(key, E, D, F):
    ks = jax.random.split(key, 20)
    n = lambda k, shape: (0.1 * jax.random.normal(k, shape)).astype(jnp.float32)

    # attn_layer[0]: Linear(2D+E, E) -> weight (E, 2D+E), split columns
    w1 = n(ks[0], (E, 2 * D + E))
    b1 = n(ks[1], (1, E))
    # attn_layer[2]: Linear(E, 1)
    w2 = n(ks[2], (1, E))
    b2 = n(ks[3], (1, 1))
    # fc: Linear(E + F, F)
    wfc = n(ks[4], (F, E + F))
    bfc = n(ks[5], (1, F))
    bias = n(ks[6], (1, F))
    bias2 = n(ks[7], (1, F))
    bias3 = n(ks[8], (1, D))
    # lstm_layer: LSTM(input_size=F, hidden_size=D)
    wih = n(ks[9], (4 * D, F))
    whh = n(ks[10], (4 * D, D))
    bih = n(ks[11], (1, 4 * D))
    bhh = n(ks[12], (1, 4 * D))
    # linear3: Linear(D + E, D)
    w3 = n(ks[13], (D, D + E))
    b3 = n(ks[14], (1, D))
    # fc_final: Linear(D, F)
    wff = n(ks[15], (F, D))
    bff = n(ks[16], (1, F))

    return {
        "w1h_T": w1[:, :D].T,            # (D, E)
        "w1c_T": w1[:, D:2 * D].T,       # (D, E)
        "w1e_T": w1[:, 2 * D:].T,        # (E, E)
        "b1": b1,
        "w2_T": w2.T,                    # (E, 1)
        "b2": b2,
        "wfc_c_T": wfc[:, :E].T,         # (E, F)
        "wfc_y_T": wfc[:, E:].T,         # (F, F)
        "bfc": bfc,
        "bias": bias,
        "wih_T": wih.T,                  # (F, 4D)
        "whh_T": whh.T,                  # (D, 4D)
        "blstm": bih + bhh,              # (1, 4D)
        "w3h_T": w3[:, :D].T,            # (D, D)
        "w3c_T": w3[:, D:].T,            # (E, D)
        "b3": b3,
        "bias3": bias3,
        "wff_T": wff.T,                  # (D, F)
        "bff": bff,
        "bias2": bias2,
    }


if __name__ == "__main__":
    B, T = 4, 8                  # batch, T
    E, D, F = 16, 16, 1          # encoder_hidden, decoder_hidden, out_feats

    key = jax.random.PRNGKey(0)
    k_enc, k_y, k_p = jax.random.split(key, 3)

    input_encoded = jax.random.normal(k_enc, (B, T, E), dtype=jnp.float32)
    y_history = jax.random.normal(k_y, (B, T - 1, F), dtype=jnp.float32)
    params = make_params(k_p, E, D, F)

    out = decoder_pallas(input_encoded, y_history, params)
    out = jax.block_until_ready(out)

    ref = decoder_ref(input_encoded, y_history, params)
    np.testing.assert_allclose(np.asarray(out), np.asarray(ref),
                               rtol=1e-4, atol=1e-4)

    print("KERNEL_OK")
</pallas_src>

<mosaic_0001>
module attributes {stable_mosaic.version = 11 : i64} {
  func.func @decoder_kernel(%arg0: i32, %arg1: memref<4x8x16xf32, #tpu.memory_space<vmem>>, %arg2: memref<7x4x1xf32, #tpu.memory_space<vmem>>, %arg3: memref<16x16xf32, #tpu.memory_space<vmem>>, %arg4: memref<16x16xf32, #tpu.memory_space<vmem>>, %arg5: memref<16x16xf32, #tpu.memory_space<vmem>>, %arg6: memref<1x16xf32, #tpu.memory_space<vmem>>, %arg7: memref<1x1x16xf32, #tpu.memory_space<vmem>>, %arg8: memref<16x1xf32, #tpu.memory_space<vmem>>, %arg9: memref<1x1xf32, #tpu.memory_space<vmem>>, %arg10: memref<1x1xf32, #tpu.memory_space<vmem>>, %arg11: memref<1x64xf32, #tpu.memory_space<vmem>>, %arg12: memref<16x64xf32, #tpu.memory_space<vmem>>, %arg13: memref<1x64xf32, #tpu.memory_space<vmem>>, %arg14: memref<16x16xf32, #tpu.memory_space<vmem>>, %arg15: memref<16x16xf32, #tpu.memory_space<vmem>>, %arg16: memref<1x16xf32, #tpu.memory_space<vmem>>, %arg17: memref<16x1xf32, #tpu.memory_space<vmem>>, %arg18: memref<1x1xf32, #tpu.memory_space<vmem>>, %arg19: memref<4x1xf32, #tpu.memory_space<vmem>>) attributes {dimension_semantics = [#tpu.dimension_semantics<arbitrary>], iteration_bounds = array<i64: 1>, scalar_prefetch = 0 : i64, scratch_operands = 0 : i64, tpu.core_type = #tpu.core_type<tc>, window_params = [{pipeline_mode = #tpu.pipeline_mode<synchronous>, transform_indices = @transform_0, window_bounds = array<i64: 4, 8, 16>}, {pipeline_mode = #tpu.pipeline_mode<synchronous>, transform_indices = @transform_1, window_bounds = array<i64: 7, 4, 1>}, {pipeline_mode = #tpu.pipeline_mode<synchronous>, transform_indices = @transform_2, window_bounds = array<i64: 16, 16>}, {pipeline_mode = #tpu.pipeline_mode<synchronous>, transform_indices = @transform_3, window_bounds = array<i64: 16, 16>}, {pipeline_mode = #tpu.pipeline_mode<synchronous>, transform_indices = @transform_4, window_bounds = array<i64: 16, 16>}, {pipeline_mode = #tpu.pipeline_mode<synchronous>, transform_indices = @transform_5, window_bounds = array<i64: 1, 16>}, {pipeline_mode = #tpu.pipeline_mode<synchronous>, transform_indices = @transform_6, window_bounds = array<i64: 1, 1, 16>}, {pipeline_mode = #tpu.pipeline_mode<synchronous>, transform_indices = @transform_7, window_bounds = array<i64: 16, 1>}, {pipeline_mode = #tpu.pipeline_mode<synchronous>, transform_indices = @transform_8, window_bounds = array<i64: 1, 1>}, {pipeline_mode = #tpu.pipeline_mode<synchronous>, transform_indices = @transform_9, window_bounds = array<i64: 1, 1>}, {pipeline_mode = #tpu.pipeline_mode<synchronous>, transform_indices = @transform_10, window_bounds = array<i64: 1, 64>}, {pipeline_mode = #tpu.pipeline_mode<synchronous>, transform_indices = @transform_11, window_bounds = array<i64: 16, 64>}, {pipeline_mode = #tpu.pipeline_mode<synchronous>, transform_indices = @transform_12, window_bounds = array<i64: 1, 64>}, {pipeline_mode = #tpu.pipeline_mode<synchronous>, transform_indices = @transform_13, window_bounds = array<i64: 16, 16>}, {pipeline_mode = #tpu.pipeline_mode<synchronous>, transform_indices = @transform_14, window_bounds = array<i64: 16, 16>}, {pipeline_mode = #tpu.pipeline_mode<synchronous>, transform_indices = @transform_15, window_bounds = array<i64: 1, 16>}, {pipeline_mode = #tpu.pipeline_mode<synchronous>, transform_indices = @transform_16, window_bounds = array<i64: 16, 1>}, {pipeline_mode = #tpu.pipeline_mode<synchronous>, transform_indices = @transform_17, window_bounds = array<i64: 1, 1>}, {pipeline_mode = #tpu.pipeline_mode<synchronous>, transform_indices = @transform_18, window_bounds = array<i64: 4, 1>}]} {
    %c0 = arith.constant 0 : index
    %c0_0 = arith.constant 0 : index
    %c0_1 = arith.constant 0 : index
    %0 = vector.load %arg1[%c0, %c0_0, %c0_1] : memref<4x8x16xf32, #tpu.memory_space<vmem>>, vector<4x8x16xf32>
    %1 = vector.shape_cast %0 : vector<4x8x16xf32> to vector<32x16xf32>
    %c0_2 = arith.constant 0 : index
    %c0_3 = arith.constant 0 : index
    %2 = vector.load %arg5[%c0_2, %c0_3] : memref<16x16xf32, #tpu.memory_space<vmem>>, vector<16x16xf32>
    %cst = arith.constant dense<0.000000e+00> : vector<32x16xf32>
    %3 = tpu.matmul %1, %2, %cst {dimension_numbers = #tpu.dot_dimension_numbers<[1], [0], [0], [1], [0, 0, 1, 1], [], []>} : vector<32x16xf32>, vector<16x16xf32>, vector<32x16xf32> -> vector<32x16xf32>
    %c0_4 = arith.constant 0 : index
    %c0_5 = arith.constant 0 : index
    %4 = vector.load %arg6[%c0_4, %c0_5] : memref<1x16xf32, #tpu.memory_space<vmem>>, vector<1x16xf32>
    %5 = vector.broadcast %4 : vector<1x16xf32> to vector<32x16xf32>
    %6 = arith.addf %3, %5 : vector<32x16xf32>
    %7 = vector.shape_cast %6 : vector<32x16xf32> to vector<4x8x16xf32>
    %c0_6 = arith.constant 0 : index
    %c0_7 = arith.constant 0 : index
    %8 = vector.load %arg3[%c0_6, %c0_7] : memref<16x16xf32, #tpu.memory_space<vmem>>, vector<16x16xf32>
    %c0_8 = arith.constant 0 : index
    %c0_9 = arith.constant 0 : index
    %9 = vector.load %arg4[%c0_8, %c0_9] : memref<16x16xf32, #tpu.memory_space<vmem>>, vector<16x16xf32>
    %c0_10 = arith.constant 0 : index
    %c0_11 = arith.constant 0 : index
    %c0_12 = arith.constant 0 : index
    %10 = vector.load %arg7[%c0_10, %c0_11, %c0_12] : memref<1x1x16xf32, #tpu.memory_space<vmem>>, vector<1x1x16xf32>
    %c0_13 = arith.constant 0 : index
    %c0_14 = arith.constant 0 : index
    %11 = vector.load %arg8[%c0_13, %c0_14] : memref<16x1xf32, #tpu.memory_space<vmem>>, vector<16x1xf32>
    %c0_15 = arith.constant 0 : index
    %c0_16 = arith.constant 0 : index
    %12 = vector.load %arg9[%c0_15, %c0_16] : memref<1x1xf32, #tpu.memory_space<vmem>>, vector<1x1xf32>
    %c0_17 = arith.constant 0 : index
    %c0_18 = arith.constant 0 : index
    %13 = vector.load %arg10[%c0_17, %c0_18] : memref<1x1xf32, #tpu.memory_space<vmem>>, vector<1x1xf32>
    %c0_19 = arith.constant 0 : index
    %c0_20 = arith.constant 0 : index
    %14 = vector.load %arg11[%c0_19, %c0_20] : memref<1x64xf32, #tpu.memory_space<vmem>>, vector<1x64xf32>
    %c0_21 = arith.constant 0 : index
    %c0_22 = arith.constant 0 : index
    %15 = vector.load %arg12[%c0_21, %c0_22] : memref<16x64xf32, #tpu.memory_space<vmem>>, vector<16x64xf32>
    %c0_23 = arith.constant 0 : index
    %c0_24 = arith.constant 0 : index
    %16 = vector.load %arg13[%c0_23, %c0_24] : memref<1x64xf32, #tpu.memory_space<vmem>>, vector<1x64xf32>
    %cst_25 = arith.constant 0.000000e+00 : f32
    %17 = vector.broadcast %cst_25 : f32 to vector<4x16xf32>
    %cst_26 = arith.constant 0.000000e+00 : f32
    %18 = vector.broadcast %cst_26 : f32 to vector<4x16xf32>
    %cst_27 = arith.constant 0.000000e+00 : f32
    %19 = vector.broadcast %cst_27 : f32 to vector<4x16xf32>
    %c0_i32 = arith.constant 0 : i32
    %cst_28 = arith.constant dense<0.000000e+00> : vector<4x16xf32>
    %20 = tpu.matmul %17, %8, %cst_28 {dimension_numbers = #tpu.dot_dimension_numbers<[1], [0], [0], [1], [0, 0, 1, 1], [], []>} : vector<4x16xf32>, vector<16x16xf32>, vector<4x16xf32> -> vector<4x16xf32>
    %cst_29 = arith.constant dense<0.000000e+00> : vector<4x16xf32>
    %21 = tpu.matmul %18, %9, %cst_29 {dimension_numbers = #tpu.dot_dimension_numbers<[1], [0], [0], [1], [0, 0, 1, 1], [], []>} : vector<4x16xf32>, vector<16x16xf32>, vector<4x16xf32> -> vector<4x16xf32>
    %22 = arith.addf %20, %21 : vector<4x16xf32>
    %23 = vector.shape_cast %22 : vector<4x16xf32> to vector<4x1x16xf32>
    %24 = vector.broadcast %23 : vector<4x1x16xf32> to vector<4x8x16xf32>
    %25 = arith.addf %7, %24 : vector<4x8x16xf32>
    %26 = math.tanh %25 : vector<4x8x16xf32>
    %27 = vector.broadcast %10 : vector<1x1x16xf32> to vector<4x8x16xf32>
    %28 = arith.mulf %26, %27 : vector<4x8x16xf32>
    %cst_30 = arith.constant dense<0.000000e+00> : vector<4x8xf32>
    %29 = vector.multi_reduction <add>, %28, %cst_30 [2] : vector<4x8x16xf32> to vector<4x8xf32>
    %30 = math.exp %29 : vector<4x8xf32>
    %cst_31 = arith.constant dense<0.000000e+00> : vector<4xf32>
    %31 = vector.multi_reduction <add>, %30, %cst_31 [1] : vector<4x8xf32> to vector<4xf32>
    %32 = vector.shape_cast %31 : vector<4xf32> to vector<4x1xf32>
    %33 = tpu.reciprocal %32 {approx = true} : vector<4x1xf32> -> vector<4x1xf32>
    %34 = arith.mulf %32, %33 : vector<4x1xf32>
    %cst_32 = arith.constant 2.000000e+00 : f32
    %35 = vector.broadcast %cst_32 : f32 to vector<4x1xf32>
    %36 = arith.subf %35, %34 : vector<4x1xf32>
    %37 = arith.mulf %33, %36 : vector<4x1xf32>
    %38 = vector.broadcast %37 : vector<4x1xf32> to vector<4x8xf32>
    %39 = arith.mulf %30, %38 : vector<4x8xf32>
    %40 = vector.shape_cast %39 : vector<4x8xf32> to vector<4x8x1xf32>
    %c0_33 = arith.constant 0 : index
    %c0_34 = arith.constant 0 : index
    %c0_35 = arith.constant 0 : index
    %41 = vector.load %arg1[%c0_33, %c0_34, %c0_35] : memref<4x8x16xf32, #tpu.memory_space<vmem>>, vector<4x8x16xf32>
    %42 = vector.broadcast %40 : vector<4x8x1xf32> to vector<4x8x16xf32>
    %43 = arith.mulf %42, %41 : vector<4x8x16xf32>
    %cst_36 = arith.constant dense<0.000000e+00> : vector<4x16xf32>
    %44 = vector.multi_reduction <add>, %43, %cst_36 [1] : vector<4x8x16xf32> to vector<4x16xf32>
    %45 = arith.index_cast %c0_i32 : i32 to index
    %c0_37 = arith.constant 0 : index
    %c0_38 = arith.constant 0 : index
    %46 = vector.load %arg2[%45, %c0_37, %c0_38] : memref<7x4x1xf32, #tpu.memory_space<vmem>>, vector<1x4x1xf32>
    %47 = vector.shape_cast %46 : vector<1x4x1xf32> to vector<4x1xf32>
    %cst_39 = arith.constant dense<0.000000e+00> : vector<4x1xf32>
    %48 = tpu.matmul %44, %11, %cst_39 {dimension_numbers = #tpu.dot_dimension_numbers<[1], [0], [0], [1], [0, 0, 1, 1], [], []>} : vector<4x16xf32>, vector<16x1xf32>, vector<4x1xf32> -> vector<4x1xf32>
    %49 = vector.broadcast %13 : vector<1x1xf32> to vector<4x1xf32>
    %50 = arith.addf %48, %49 : vector<4x1xf32>
    %51 = vector.broadcast %12 : vector<1x1xf32> to vector<4x1xf32>
    %52 = arith.mulf %47, %51 : vector<4x1xf32>
    %53 = arith.addf %50, %52 : vector<4x1xf32>
    %cst_40 = arith.constant dense<0.000000e+00> : vector<4x64xf32>
    %54 = tpu.matmul %17, %15, %cst_40 {dimension_numbers = #tpu.dot_dimension_numbers<[1], [0], [0], [1], [0, 0, 1, 1], [], []>} : vector<4x16xf32>, vector<16x64xf32>, vector<4x64xf32> -> vector<4x64xf32>
    %55 = vector.broadcast %16 : vector<1x64xf32> to vector<4x64xf32>
    %56 = arith.addf %54, %55 : vector<4x64xf32>
    %57 = vector.broadcast %53 : vector<4x1xf32> to vector<4x64xf32>
    %58 = vector.broadcast %14 : vector<1x64xf32> to vector<4x64xf32>
    %59 = arith.mulf %57, %58 : vector<4x64xf32>
    %60 = arith.addf %56, %59 : vector<4x64xf32>
    %61 = vector.extract_strided_slice %60 {offsets = [0, 0], sizes = [4, 16], strides = [1, 1]} : vector<4x64xf32> to vector<4x16xf32>
    %62 = arith.negf %61 : vector<4x16xf32>
    %63 = math.exp %62 : vector<4x16xf32>
    %cst_41 = arith.constant 1.000000e+00 : f32
    %64 = vector.broadcast %cst_41 : f32 to vector<4x16xf32>
    %65 = arith.addf %64, %63 : vector<4x16xf32>
    %66 = arith.divf %64, %65 : vector<4x16xf32>
    %67 = vector.extract_strided_slice %60 {offsets = [0, 16], sizes = [4, 16], strides = [1, 1]} : vector<4x64xf32> to vector<4x16xf32>
    %68 = arith.negf %67 : vector<4x16xf32>
    %69 = math.exp %68 : vector<4x16xf32>
    %cst_42 = arith.constant 1.000000e+00 : f32
    %70 = vector.broadcast %cst_42 : f32 to vector<4x16xf32>
    %71 = arith.addf %70, %69 : vector<4x16xf32>
    %72 = arith.divf %70, %71 : vector<4x16xf32>
    %73 = vector.extract_strided_slice %60 {offsets = [0, 32], sizes = [4, 16], strides = [1, 1]} : vector<4x64xf32> to vector<4x16xf32>
    %74 = math.tanh %73 : vector<4x16xf32>
    %75 = vector.extract_strided_slice %60 {offsets = [0, 48], sizes = [4, 16], strides = [1, 1]} : vector<4x64xf32> to vector<4x16xf32>
    %76 = arith.negf %75 : vector<4x16xf32>
    %77 = math.exp %76 : vector<4x16xf32>
    %cst_43 = arith.constant 1.000000e+00 : f32
    %78 = vector.broadcast %cst_43 : f32 to vector<4x16xf32>
    %79 = arith.addf %78, %77 : vector<4x16xf32>
    %80 = arith.divf %78, %79 : vector<4x16xf32>
    %81 = arith.mulf %72, %18 : vector<4x16xf32>
    %82 = arith.mulf %66, %74 : vector<4x16xf32>
    %83 = arith.addf %81, %82 : vector<4x16xf32>
    %84 = math.tanh %83 : vector<4x16xf32>
    %85 = arith.mulf %80, %84 : vector<4x16xf32>
    %c1_i32 = arith.constant 1 : i32
    %cst_44 = arith.constant dense<0.000000e+00> : vector<4x16xf32>
    %86 = tpu.matmul %85, %8, %cst_44 {dimension_numbers = #tpu.dot_dimension_numbers<[1], [0], [0], [1], [0, 0, 1, 1], [], []>} : vector<4x16xf32>, vector<16x16xf32>, vector<4x16xf32> -> vector<4x16xf32>
    %cst_45 = arith.constant dense<0.000000e+00> : vector<4x16xf32>
    %87 = tpu.matmul %83, %9, %cst_45 {dimension_numbers = #tpu.dot_dimension_numbers<[1], [0], [0], [1], [0, 0, 1, 1], [], []>} : vector<4x16xf32>, vector<16x16xf32>, vector<4x16xf32> -> vector<4x16xf32>
    %88 = arith.addf %86, %87 : vector<4x16xf32>
    %89 = vector.shape_cast %88 : vector<4x16xf32> to vector<4x1x16xf32>
    %90 = vector.broadcast %89 : vector<4x1x16xf32> to vector<4x8x16xf32>
    %91 = arith.addf %7, %90 : vector<4x8x16xf32>
    %92 = math.tanh %91 : vector<4x8x16xf32>
    %93 = vector.broadcast %10 : vector<1x1x16xf32> to vector<4x8x16xf32>
    %94 = arith.mulf %92, %93 : vector<4x8x16xf32>
    %cst_46 = arith.constant dense<0.000000e+00> : vector<4x8xf32>
    %95 = vector.multi_reduction <add>, %94, %cst_46 [2] : vector<4x8x16xf32> to vector<4x8xf32>
    %96 = math.exp %95 : vector<4x8xf32>
    %cst_47 = arith.constant dense<0.000000e+00> : vector<4xf32>
    %97 = vector.multi_reduction <add>, %96, %cst_47 [1] : vector<4x8xf32> to vector<4xf32>
    %98 = vector.shape_cast %97 : vector<4xf32> to vector<4x1xf32>
    %99 = tpu.reciprocal %98 {approx = true} : vector<4x1xf32> -> vector<4x1xf32>
    %100 = arith.mulf %98, %99 : vector<4x1xf32>
    %cst_48 = arith.constant 2.000000e+00 : f32
    %101 = vector.broadcast %cst_48 : f32 to vector<4x1xf32>
    %102 = arith.subf %101, %100 : vector<4x1xf32>
    %103 = arith.mulf %99, %102 : vector<4x1xf32>
    %104 = vector.broadcast %103 : vector<4x1xf32> to vector<4x8xf32>
    %105 = arith.mulf %96, %104 : vector<4x8xf32>
    %106 = vector.shape_cast %105 : vector<4x8xf32> to vector<4x8x1xf32>
    %c0_49 = arith.constant 0 : index
    %c0_50 = arith.constant 0 : index
    %c0_51 = arith.constant 0 : index
    %107 = vector.load %arg1[%c0_49, %c0_50, %c0_51] : memref<4x8x16xf32, #tpu.memory_space<vmem>>, vector<4x8x16xf32>
    %108 = vector.broadcast %106 : vector<4x8x1xf32> to vector<4x8x16xf32>
    %109 = arith.mulf %108, %107 : vector<4x8x16xf32>
    %cst_52 = arith.constant dense<0.000000e+00> : vector<4x16xf32>
    %110 = vector.multi_reduction <add>, %109, %cst_52 [1] : vector<4x8x16xf32> to vector<4x16xf32>
    %111 = arith.index_cast %c1_i32 : i32 to index
    %c0_53 = arith.constant 0 : index
    %c0_54 = arith.constant 0 : index
    %112 = vector.load %arg2[%111, %c0_53, %c0_54] : memref<7x4x1xf32, #tpu.memory_space<vmem>>, vector<1x4x1xf32>
    %113 = vector.shape_cast %112 : vector<1x4x1xf32> to vector<4x1xf32>
    %cst_55 = arith.constant dense<0.000000e+00> : vector<4x1xf32>
    %114 = tpu.matmul %110, %11, %cst_55 {dimension_numbers = #tpu.dot_dimension_numbers<[1], [0], [0], [1], [0, 0, 1, 1], [], []>} : vector<4x16xf32>, vector<16x1xf32>, vector<4x1xf32> -> vector<4x1xf32>
    %115 = vector.broadcast %13 : vector<1x1xf32> to vector<4x1xf32>
    %116 = arith.addf %114, %115 : vector<4x1xf32>
    %117 = vector.broadcast %12 : vector<1x1xf32> to vector<4x1xf32>
    %118 = arith.mulf %113, %117 : vector<4x1xf32>
    %119 = arith.addf %116, %118 : vector<4x1xf32>
    %cst_56 = arith.constant dense<0.000000e+00> : vector<4x64xf32>
    %120 = tpu.matmul %85, %15, %cst_56 {dimension_numbers = #tpu.dot_dimension_numbers<[1], [0], [0], [1], [0, 0, 1, 1], [], []>} : vector<4x16xf32>, vector<16x64xf32>, vector<4x64xf32> -> vector<4x64xf32>
    %121 = vector.broadcast %16 : vector<1x64xf32> to vector<4x64xf32>
    %122 = arith.addf %120, %121 : vector<4x64xf32>
    %123 = vector.broadcast %119 : vector<4x1xf32> to vector<4x64xf32>
    %124 = vector.broadcast %14 : vector<1x64xf32> to vector<4x64xf32>
    %125 = arith.mulf %123, %124 : vector<4x64xf32>
    %126 = arith.addf %122, %125 : vector<4x64xf32>
    %127 = vector.extract_strided_slice %126 {offsets = [0, 0], sizes = [4, 16], strides = [1, 1]} : vector<4x64xf32> to vector<4x16xf32>
    %128 = arith.negf %127 : vector<4x16xf32>
    %129 = math.exp %128 : vector<4x16xf32>
    %cst_57 = arith.constant 1.000000e+00 : f32
    %130 = vector.broadcast %cst_57 : f32 to vector<4x16xf32>
    %131 = arith.addf %130, %129 : vector<4x16xf32>
    %132 = arith.divf %130, %131 : vector<4x16xf32>
    %133 = vector.extract_strided_slice %126 {offsets = [0, 16], sizes = [4, 16], strides = [1, 1]} : vector<4x64xf32> to vector<4x16xf32>
    %134 = arith.negf %133 : vector<4x16xf32>
    %135 = math.exp %134 : vector<4x16xf32>
    %cst_58 = arith.constant 1.000000e+00 : f32
    %136 = vector.broadcast %cst_58 : f32 to vector<4x16xf32>
    %137 = arith.addf %136, %135 : vector<4x16xf32>
    %138 = arith.divf %136, %137 : vector<4x16xf32>
    %139 = vector.extract_strided_slice %126 {offsets = [0, 32], sizes = [4, 16], strides = [1, 1]} : vector<4x64xf32> to vector<4x16xf32>
    %140 = math.tanh %139 : vector<4x16xf32>
    %141 = vector.extract_strided_slice %126 {offsets = [0, 48], sizes = [4, 16], strides = [1, 1]} : vector<4x64xf32> to vector<4x16xf32>
    %142 = arith.negf %141 : vector<4x16xf32>
    %143 = math.exp %142 : vector<4x16xf32>
    %cst_59 = arith.constant 1.000000e+00 : f32
    %144 = vector.broadcast %cst_59 : f32 to vector<4x16xf32>
    %145 = arith.addf %144, %143 : vector<4x16xf32>
    %146 = arith.divf %144, %145 : vector<4x16xf32>
    %147 = arith.mulf %138, %83 : vector<4x16xf32>
    %148 = arith.mulf %132, %140 : vector<4x16xf32>
    %149 = arith.addf %147, %148 : vector<4x16xf32>
    %150 = math.tanh %149 : vector<4x16xf32>
    %151 = arith.mulf %146, %150 : vector<4x16xf32>
    %c2_i32 = arith.constant 2 : i32
    %cst_60 = arith.constant dense<0.000000e+00> : vector<4x16xf32>
    %152 = tpu.matmul %151, %8, %cst_60 {dimension_numbers = #tpu.dot_dimension_numbers<[1], [0], [0], [1], [0, 0, 1, 1], [], []>} : vector<4x16xf32>, vector<16x16xf32>, vector<4x16xf32> -> vector<4x16xf32>
    %cst_61 = arith.constant dense<0.000000e+00> : vector<4x16xf32>
    %153 = tpu.matmul %149, %9, %cst_61 {dimension_numbers = #tpu.dot_dimension_numbers<[1], [0], [0], [1], [0, 0, 1, 1], [], []>} : vector<4x16xf32>, vector<16x16xf32>, vector<4x16xf32> -> vector<4x16xf32>
    %154 = arith.addf %152, %153 : vector<4x16xf32>
    %155 = vector.shape_cast %154 : vector<4x16xf32> to vector<4x1x16xf32>
    %156 = vector.broadcast %155 : vector<4x1x16xf32> to vector<4x8x16xf32>
    %157 = arith.addf %7, %156 : vector<4x8x16xf32>
    %158 = math.tanh %157 : vector<4x8x16xf32>
    %159 = vector.broadcast %10 : vector<1x1x16xf32> to vector<4x8x16xf32>
    %160 = arith.mulf %158, %159 : vector<4x8x16xf32>
    %cst_62 = arith.constant dense<0.000000e+00> : vector<4x8xf32>
    %161 = vector.multi_reduction <add>, %160, %cst_62 [2] : vector<4x8x16xf32> to vector<4x8xf32>
    %162 = math.exp %161 : vector<4x8xf32>
    %cst_63 = arith.constant dense<0.000000e+00> : vector<4xf32>
    %163 = vector.multi_reduction <add>, %162, %cst_63 [1] : vector<4x8xf32> to vector<4xf32>
    %164 = vector.shape_cast %163 : vector<4xf32> to vector<4x1xf32>
    %165 = tpu.reciprocal %164 {approx = true} : vector<4x1xf32> -> vector<4x1xf32>
    %166 = arith.mulf %164, %165 : vector<4x1xf32>
    %cst_64 = arith.constant 2.000000e+00 : f32
    %167 = vector.broadcast %cst_64 : f32 to vector<4x1xf32>
    %168 = arith.subf %167, %166 : vector<4x1xf32>
    %169 = arith.mulf %165, %168 : vector<4x1xf32>
    %170 = vector.broadcast %169 : vector<4x1xf32> to vector<4x8xf32>
    %171 = arith.mulf %162, %170 : vector<4x8xf32>
    %172 = vector.shape_cast %171 : vector<4x8xf32> to vector<4x8x1xf32>
    %c0_65 = arith.constant 0 : index
    %c0_66 = arith.constant 0 : index
    %c0_67 = arith.constant 0 : index
    %173 = vector.load %arg1[%c0_65, %c0_66, %c0_67] : memref<4x8x16xf32, #tpu.memory_space<vmem>>, vector<4x8x16xf32>
    %174 = vector.broadcast %172 : vector<4x8x1xf32> to vector<4x8x16xf32>
    %175 = arith.mulf %174, %173 : vector<4x8x16xf32>
    %cst_68 = arith.constant dense<0.000000e+00> : vector<4x16xf32>
    %176 = vector.multi_reduction <add>, %175, %cst_68 [1] : vector<4x8x16xf32> to vector<4x16xf32>
    %177 = arith.index_cast %c2_i32 : i32 to index
    %c0_69 = arith.constant 0 : index
    %c0_70 = arith.constant 0 : index
    %178 = vector.load %arg2[%177, %c0_69, %c0_70] : memref<7x4x1xf32, #tpu.memory_space<vmem>>, vector<1x4x1xf32>
    %179 = vector.shape_cast %178 : vector<1x4x1xf32> to vector<4x1xf32>
    %cst_71 = arith.constant dense<0.000000e+00> : vector<4x1xf32>
    %180 = tpu.matmul %176, %11, %cst_71 {dimension_numbers = #tpu.dot_dimension_numbers<[1], [0], [0], [1], [0, 0, 1, 1], [], []>} : vector<4x16xf32>, vector<16x1xf32>, vector<4x1xf32> -> vector<4x1xf32>
    %181 = vector.broadcast %13 : vector<1x1xf32> to vector<4x1xf32>
    %182 = arith.addf %180, %181 : vector<4x1xf32>
    %183 = vector.broadcast %12 : vector<1x1xf32> to vector<4x1xf32>
    %184 = arith.mulf %179, %183 : vector<4x1xf32>
    %185 = arith.addf %182, %184 : vector<4x1xf32>
    %cst_72 = arith.constant dense<0.000000e+00> : vector<4x64xf32>
    %186 = tpu.matmul %151, %15, %cst_72 {dimension_numbers = #tpu.dot_dimension_numbers<[1], [0], [0], [1], [0, 0, 1, 1], [], []>} : vector<4x16xf32>, vector<16x64xf32>, vector<4x64xf32> -> vector<4x64xf32>
    %187 = vector.broadcast %16 : vector<1x64xf32> to vector<4x64xf32>
    %188 = arith.addf %186, %187 : vector<4x64xf32>
    %189 = vector.broadcast %185 : vector<4x1xf32> to vector<4x64xf32>
    %190 = vector.broadcast %14 : vector<1x64xf32> to vector<4x64xf32>
    %191 = arith.mulf %189, %190 : vector<4x64xf32>
    %192 = arith.addf %188, %191 : vector<4x64xf32>
    %193 = vector.extract_strided_slice %192 {offsets = [0, 0], sizes = [4, 16], strides = [1, 1]} : vector<4x64xf32> to vector<4x16xf32>
    %194 = arith.negf %193 : vector<4x16xf32>
    %195 = math.exp %194 : vector<4x16xf32>
    %cst_73 = arith.constant 1.000000e+00 : f32
    %196 = vector.broadcast %cst_73 : f32 to vector<4x16xf32>
    %197 = arith.addf %196, %195 : vector<4x16xf32>
    %198 = arith.divf %196, %197 : vector<4x16xf32>
    %199 = vector.extract_strided_slice %192 {offsets = [0, 16], sizes = [4, 16], strides = [1, 1]} : vector<4x64xf32> to vector<4x16xf32>
    %200 = arith.negf %199 : vector<4x16xf32>
    %201 = math.exp %200 : vector<4x16xf32>
    %cst_74 = arith.constant 1.000000e+00 : f32
    %202 = vector.broadcast %cst_74 : f32 to vector<4x16xf32>
    %203 = arith.addf %202, %201 : vector<4x16xf32>
    %204 = arith.divf %202, %203 : vector<4x16xf32>
    %205 = vector.extract_strided_slice %192 {offsets = [0, 32], sizes = [4, 16], strides = [1, 1]} : vector<4x64xf32> to vector<4x16xf32>
    %206 = math.tanh %205 : vector<4x16xf32>
    %207 = vector.extract_strided_slice %192 {offsets = [0, 48], sizes = [4, 16], strides = [1, 1]} : vector<4x64xf32> to vector<4x16xf32>
    %208 = arith.negf %207 : vector<4x16xf32>
    %209 = math.exp %208 : vector<4x16xf32>
    %cst_75 = arith.constant 1.000000e+00 : f32
    %210 = vector.broadcast %cst_75 : f32 to vector<4x16xf32>
    %211 = arith.addf %210, %209 : vector<4x16xf32>
    %212 = arith.divf %210, %211 : vector<4x16xf32>
    %213 = arith.mulf %204, %149 : vector<4x16xf32>
    %214 = arith.mulf %198, %206 : vector<4x16xf32>
    %215 = arith.addf %213, %214 : vector<4x16xf32>
    %216 = math.tanh %215 : vector<4x16xf32>
    %217 = arith.mulf %212, %216 : vector<4x16xf32>
    %c3_i32 = arith.constant 3 : i32
    %cst_76 = arith.constant dense<0.000000e+00> : vector<4x16xf32>
    %218 = tpu.matmul %217, %8, %cst_76 {dimension_numbers = #tpu.dot_dimension_numbers<[1], [0], [0], [1], [0, 0, 1, 1], [], []>} : vector<4x16xf32>, vector<16x16xf32>, vector<4x16xf32> -> vector<4x16xf32>
    %cst_77 = arith.constant dense<0.000000e+00> : vector<4x16xf32>
    %219 = tpu.matmul %215, %9, %cst_77 {dimension_numbers = #tpu.dot_dimension_numbers<[1], [0], [0], [1], [0, 0, 1, 1], [], []>} : vector<4x16xf32>, vector<16x16xf32>, vector<4x16xf32> -> vector<4x16xf32>
    %220 = arith.addf %218, %219 : vector<4x16xf32>
    %221 = vector.shape_cast %220 : vector<4x16xf32> to vector<4x1x16xf32>
    %222 = vector.broadcast %221 : vector<4x1x16xf32> to vector<4x8x16xf32>
    %223 = arith.addf %7, %222 : vector<4x8x16xf32>
    %224 = math.tanh %223 : vector<4x8x16xf32>
    %225 = vector.broadcast %10 : vector<1x1x16xf32> to vector<4x8x16xf32>
    %226 = arith.mulf %224, %225 : vector<4x8x16xf32>
    %cst_78 = arith.constant dense<0.000000e+00> : vector<4x8xf32>
    %227 = vector.multi_reduction <add>, %226, %cst_78 [2] : vector<4x8x16xf32> to vector<4x8xf32>
    %228 = math.exp %227 : vector<4x8xf32>
    %cst_79 = arith.constant dense<0.000000e+00> : vector<4xf32>
    %229 = vector.multi_reduction <add>, %228, %cst_79 [1] : vector<4x8xf32> to vector<4xf32>
    %230 = vector.shape_cast %229 : vector<4xf32> to vector<4x1xf32>
    %231 = tpu.reciprocal %230 {approx = true} : vector<4x1xf32> -> vector<4x1xf32>
    %232 = arith.mulf %230, %231 : vector<4x1xf32>
    %cst_80 = arith.constant 2.000000e+00 : f32
    %233 = vector.broadcast %cst_80 : f32 to vector<4x1xf32>
    %234 = arith.subf %233, %232 : vector<4x1xf32>
    %235 = arith.mulf %231, %234 : vector<4x1xf32>
    %236 = vector.broadcast %235 : vector<4x1xf32> to vector<4x8xf32>
    %237 = arith.mulf %228, %236 : vector<4x8xf32>
    %238 = vector.shape_cast %237 : vector<4x8xf32> to vector<4x8x1xf32>
    %c0_81 = arith.constant 0 : index
    %c0_82 = arith.constant 0 : index
    %c0_83 = arith.constant 0 : index
    %239 = vector.load %arg1[%c0_81, %c0_82, %c0_83] : memref<4x8x16xf32, #tpu.memory_space<vmem>>, vector<4x8x16xf32>
    %240 = vector.broadcast %238 : vector<4x8x1xf32> to vector<4x8x16xf32>
    %241 = arith.mulf %240, %239 : vector<4x8x16xf32>
    %cst_84 = arith.constant dense<0.000000e+00> : vector<4x16xf32>
    %242 = vector.multi_reduction <add>, %241, %cst_84 [1] : vector<4x8x16xf32> to vector<4x16xf32>
    %243 = arith.index_cast %c3_i32 : i32 to index
    %c0_85 = arith.constant 0 : index
    %c0_86 = arith.constant 0 : index
    %244 = vector.load %arg2[%243, %c0_85, %c0_86] : memref<7x4x1xf32, #tpu.memory_space<vmem>>, vector<1x4x1xf32>
    %245 = vector.shape_cast %244 : vector<1x4x1xf32> to vector<4x1xf32>
    %cst_87 = arith.constant dense<0.000000e+00> : vector<4x1xf32>
    %246 = tpu.matmul %242, %11, %cst_87 {dimension_numbers = #tpu.dot_dimension_numbers<[1], [0], [0], [1], [0, 0, 1, 1], [], []>} : vector<4x16xf32>, vector<16x1xf32>, vector<4x1xf32> -> vector<4x1xf32>
    %247 = vector.broadcast %13 : vector<1x1xf32> to vector<4x1xf32>
    %248 = arith.addf %246, %247 : vector<4x1xf32>
    %249 = vector.broadcast %12 : vector<1x1xf32> to vector<4x1xf32>
    %250 = arith.mulf %245, %249 : vector<4x1xf32>
    %251 = arith.addf %248, %250 : vector<4x1xf32>
    %cst_88 = arith.constant dense<0.000000e+00> : vector<4x64xf32>
    %252 = tpu.matmul %217, %15, %cst_88 {dimension_numbers = #tpu.dot_dimension_numbers<[1], [0], [0], [1], [0, 0, 1, 1], [], []>} : vector<4x16xf32>, vector<16x64xf32>, vector<4x64xf32> -> vector<4x64xf32>
    %253 = vector.broadcast %16 : vector<1x64xf32> to vector<4x64xf32>
    %254 = arith.addf %252, %253 : vector<4x64xf32>
    %255 = vector.broadcast %251 : vector<4x1xf32> to vector<4x64xf32>
    %256 = vector.broadcast %14 : vector<1x64xf32> to vector<4x64xf32>
    %257 = arith.mulf %255, %256 : vector<4x64xf32>
    %258 = arith.addf %254, %257 : vector<4x64xf32>
    %259 = vector.extract_strided_slice %258 {offsets = [0, 0], sizes = [4, 16], strides = [1, 1]} : vector<4x64xf32> to vector<4x16xf32>
    %260 = arith.negf %259 : vector<4x16xf32>
    %261 = math.exp %260 : vector<4x16xf32>
    %cst_89 = arith.constant 1.000000e+00 : f32
    %262 = vector.broadcast %cst_89 : f32 to vector<4x16xf32>
    %263 = arith.addf %262, %261 : vector<4x16xf32>
    %264 = arith.divf %262, %263 : vector<4x16xf32>
    %265 = vector.extract_strided_slice %258 {offsets = [0, 16], sizes = [4, 16], strides = [1, 1]} : vector<4x64xf32> to vector<4x16xf32>
    %266 = arith.negf %265 : vector<4x16xf32>
    %267 = math.exp %266 : vector<4x16xf32>
    %cst_90 = arith.constant 1.000000e+00 : f32
    %268 = vector.broadcast %cst_90 : f32 to vector<4x16xf32>
    %269 = arith.addf %268, %267 : vector<4x16xf32>
    %270 = arith.divf %268, %269 : vector<4x16xf32>
    %271 = vector.extract_strided_slice %258 {offsets = [0, 32], sizes = [4, 16], strides = [1, 1]} : vector<4x64xf32> to vector<4x16xf32>
    %272 = math.tanh %271 : vector<4x16xf32>
    %273 = vector.extract_strided_slice %258 {offsets = [0, 48], sizes = [4, 16], strides = [1, 1]} : vector<4x64xf32> to vector<4x16xf32>
    %274 = arith.negf %273 : vector<4x16xf32>
    %275 = math.exp %274 : vector<4x16xf32>
    %cst_91 = arith.constant 1.000000e+00 : f32
    %276 = vector.broadcast %cst_91 : f32 to vector<4x16xf32>
    %277 = arith.addf %276, %275 : vector<4x16xf32>
    %278 = arith.divf %276, %277 : vector<4x16xf32>
    %279 = arith.mulf %270, %215 : vector<4x16xf32>
    %280 = arith.mulf %264, %272 : vector<4x16xf32>
    %281 = arith.addf %279, %280 : vector<4x16xf32>
    %282 = math.tanh %281 : vector<4x16xf32>
    %283 = arith.mulf %278, %282 : vector<4x16xf32>
    %c4_i32 = arith.constant 4 : i32
    %cst_92 = arith.constant dense<0.000000e+00> : vector<4x16xf32>
    %284 = tpu.matmul %283, %8, %cst_92 {dimension_numbers = #tpu.dot_dimension_numbers<[1], [0], [0], [1], [0, 0, 1, 1], [], []>} : vector<4x16xf32>, vector<16x16xf32>, vector<4x16xf32> -> vector<4x16xf32>
    %cst_93 = arith.constant dense<0.000000e+00> : vector<4x16xf32>
    %285 = tpu.matmul %281, %9, %cst_93 {dimension_numbers = #tpu.dot_dimension_numbers<[1], [0], [0], [1], [0, 0, 1, 1], [], []>} : vector<4x16xf32>, vector<16x16xf32>, vector<4x16xf32> -> vector<4x16xf32>
    %286 = arith.addf %284, %285 : vector<4x16xf32>
    %287 = vector.shape_cast %286 : vector<4x16xf32> to vector<4x1x16xf32>
    %288 = vector.broadcast %287 : vector<4x1x16xf32> to vector<4x8x16xf32>
    %289 = arith.addf %7, %288 : vector<4x8x16xf32>
    %290 = math.tanh %289 : vector<4x8x16xf32>
    %291 = vector.broadcast %10 : vector<1x1x16xf32> to vector<4x8x16xf32>
    %292 = arith.mulf %290, %291 : vector<4x8x16xf32>
    %cst_94 = arith.constant dense<0.000000e+00> : vector<4x8xf32>
    %293 = vector.multi_reduction <add>, %292, %cst_94 [2] : vector<4x8x16xf32> to vector<4x8xf32>
    %294 = math.exp %293 : vector<4x8xf32>
    %cst_95 = arith.constant dense<0.000000e+00> : vector<4xf32>
    %295 = vector.multi_reduction <add>, %294, %cst_95 [1] : vector<4x8xf32> to vector<4xf32>
    %296 = vector.shape_cast %295 : vector<4xf32> to vector<4x1xf32>
    %297 = tpu.reciprocal %296 {approx = true} : vector<4x1xf32> -> vector<4x1xf32>
    %298 = arith.mulf %296, %297 : vector<4x1xf32>
    %cst_96 = arith.constant 2.000000e+00 : f32
    %299 = vector.broadcast %cst_96 : f32 to vector<4x1xf32>
    %300 = arith.subf %299, %298 : vector<4x1xf32>
    %301 = arith.mulf %297, %300 : vector<4x1xf32>
    %302 = vector.broadcast %301 : vector<4x1xf32> to vector<4x8xf32>
    %303 = arith.mulf %294, %302 : vector<4x8xf32>
    %304 = vector.shape_cast %303 : vector<4x8xf32> to vector<4x8x1xf32>
    %c0_97 = arith.constant 0 : index
    %c0_98 = arith.constant 0 : index
    %c0_99 = arith.constant 0 : index
    %305 = vector.load %arg1[%c0_97, %c0_98, %c0_99] : memref<4x8x16xf32, #tpu.memory_space<vmem>>, vector<4x8x16xf32>
    %306 = vector.broadcast %304 : vector<4x8x1xf32> to vector<4x8x16xf32>
    %307 = arith.mulf %306, %305 : vector<4x8x16xf32>
    %cst_100 = arith.constant dense<0.000000e+00> : vector<4x16xf32>
    %308 = vector.multi_reduction <add>, %307, %cst_100 [1] : vector<4x8x16xf32> to vector<4x16xf32>
    %309 = arith.index_cast %c4_i32 : i32 to index
    %c0_101 = arith.constant 0 : index
    %c0_102 = arith.constant 0 : index
    %310 = vector.load %arg2[%309, %c0_101, %c0_102] : memref<7x4x1xf32, #tpu.memory_space<vmem>>, vector<1x4x1xf32>
    %311 = vector.shape_cast %310 : vector<1x4x1xf32> to vector<4x1xf32>
    %cst_103 = arith.constant dense<0.000000e+00> : vector<4x1xf32>
    %312 = tpu.matmul %308, %11, %cst_103 {dimension_numbers = #tpu.dot_dimension_numbers<[1], [0], [0], [1], [0, 0, 1, 1], [], []>} : vector<4x16xf32>, vector<16x1xf32>, vector<4x1xf32> -> vector<4x1xf32>
    %313 = vector.broadcast %13 : vector<1x1xf32> to vector<4x1xf32>
    %314 = arith.addf %312, %313 : vector<4x1xf32>
    %315 = vector.broadcast %12 : vector<1x1xf32> to vector<4x1xf32>
    %316 = arith.mulf %311, %315 : vector<4x1xf32>
    %317 = arith.addf %314, %316 : vector<4x1xf32>
    %cst_104 = arith.constant dense<0.000000e+00> : vector<4x64xf32>
    %318 = tpu.matmul %283, %15, %cst_104 {dimension_numbers = #tpu.dot_dimension_numbers<[1], [0], [0], [1], [0, 0, 1, 1], [], []>} : vector<4x16xf32>, vector<16x64xf32>, vector<4x64xf32> -> vector<4x64xf32>
    %319 = vector.broadcast %16 : vector<1x64xf32> to vector<4x64xf32>
    %320 = arith.addf %318, %319 : vector<4x64xf32>
    %321 = vector.broadcast %317 : vector<4x1xf32> to vector<4x64xf32>
    %322 = vector.broadcast %14 : vector<1x64xf32> to vector<4x64xf32>
    %323 = arith.mulf %321, %322 : vector<4x64xf32>
    %324 = arith.addf %320, %323 : vector<4x64xf32>
    %325 = vector.extract_strided_slice %324 {offsets = [0, 0], sizes = [4, 16], strides = [1, 1]} : vector<4x64xf32> to vector<4x16xf32>
    %326 = arith.negf %325 : vector<4x16xf32>
    %327 = math.exp %326 : vector<4x16xf32>
    %cst_105 = arith.constant 1.000000e+00 : f32
    %328 = vector.broadcast %cst_105 : f32 to vector<4x16xf32>
    %329 = arith.addf %328, %327 : vector<4x16xf32>
    %330 = arith.divf %328, %329 : vector<4x16xf32>
    %331 = vector.extract_strided_slice %324 {offsets = [0, 16], sizes = [4, 16], strides = [1, 1]} : vector<4x64xf32> to vector<4x16xf32>
    %332 = arith.negf %331 : vector<4x16xf32>
    %333 = math.exp %332 : vector<4x16xf32>
    %cst_106 = arith.constant 1.000000e+00 : f32
    %334 = vector.broadcast %cst_106 : f32 to vector<4x16xf32>
    %335 = arith.addf %334, %333 : vector<4x16xf32>
    %336 = arith.divf %334, %335 : vector<4x16xf32>
    %337 = vector.extract_strided_slice %324 {offsets = [0, 32], sizes = [4, 16], strides = [1, 1]} : vector<4x64xf32> to vector<4x16xf32>
    %338 = math.tanh %337 : vector<4x16xf32>
    %339 = vector.extract_strided_slice %324 {offsets = [0, 48], sizes = [4, 16], strides = [1, 1]} : vector<4x64xf32> to vector<4x16xf32>
    %340 = arith.negf %339 : vector<4x16xf32>
    %341 = math.exp %340 : vector<4x16xf32>
    %cst_107 = arith.constant 1.000000e+00 : f32
    %342 = vector.broadcast %cst_107 : f32 to vector<4x16xf32>
    %343 = arith.addf %342, %341 : vector<4x16xf32>
    %344 = arith.divf %342, %343 : vector<4x16xf32>
    %345 = arith.mulf %336, %281 : vector<4x16xf32>
    %346 = arith.mulf %330, %338 : vector<4x16xf32>
    %347 = arith.addf %345, %346 : vector<4x16xf32>
    %348 = math.tanh %347 : vector<4x16xf32>
    %349 = arith.mulf %344, %348 : vector<4x16xf32>
    %c5_i32 = arith.constant 5 : i32
    %cst_108 = arith.constant dense<0.000000e+00> : vector<4x16xf32>
    %350 = tpu.matmul %349, %8, %cst_108 {dimension_numbers = #tpu.dot_dimension_numbers<[1], [0], [0], [1], [0, 0, 1, 1], [], []>} : vector<4x16xf32>, vector<16x16xf32>, vector<4x16xf32> -> vector<4x16xf32>
    %cst_109 = arith.constant dense<0.000000e+00> : vector<4x16xf32>
    %351 = tpu.matmul %347, %9, %cst_109 {dimension_numbers = #tpu.dot_dimension_numbers<[1], [0], [0], [1], [0, 0, 1, 1], [], []>} : vector<4x16xf32>, vector<16x16xf32>, vector<4x16xf32> -> vector<4x16xf32>
    %352 = arith.addf %350, %351 : vector<4x16xf32>
    %353 = vector.shape_cast %352 : vector<4x16xf32> to vector<4x1x16xf32>
    %354 = vector.broadcast %353 : vector<4x1x16xf32> to vector<4x8x16xf32>
    %355 = arith.addf %7, %354 : vector<4x8x16xf32>
    %356 = math.tanh %355 : vector<4x8x16xf32>
    %357 = vector.broadcast %10 : vector<1x1x16xf32> to vector<4x8x16xf32>
    %358 = arith.mulf %356, %357 : vector<4x8x16xf32>
    %cst_110 = arith.constant dense<0.000000e+00> : vector<4x8xf32>
    %359 = vector.multi_reduction <add>, %358, %cst_110 [2] : vector<4x8x16xf32> to vector<4x8xf32>
    %360 = math.exp %359 : vector<4x8xf32>
    %cst_111 = arith.constant dense<0.000000e+00> : vector<4xf32>
    %361 = vector.multi_reduction <add>, %360, %cst_111 [1] : vector<4x8xf32> to vector<4xf32>
    %362 = vector.shape_cast %361 : vector<4xf32> to vector<4x1xf32>
    %363 = tpu.reciprocal %362 {approx = true} : vector<4x1xf32> -> vector<4x1xf32>
    %364 = arith.mulf %362, %363 : vector<4x1xf32>
    %cst_112 = arith.constant 2.000000e+00 : f32
    %365 = vector.broadcast %cst_112 : f32 to vector<4x1xf32>
    %366 = arith.subf %365, %364 : vector<4x1xf32>
    %367 = arith.mulf %363, %366 : vector<4x1xf32>
    %368 = vector.broadcast %367 : vector<4x1xf32> to vector<4x8xf32>
    %369 = arith.mulf %360, %368 : vector<4x8xf32>
    %370 = vector.shape_cast %369 : vector<4x8xf32> to vector<4x8x1xf32>
    %c0_113 = arith.constant 0 : index
    %c0_114 = arith.constant 0 : index
    %c0_115 = arith.constant 0 : index
    %371 = vector.load %arg1[%c0_113, %c0_114, %c0_115] : memref<4x8x16xf32, #tpu.memory_space<vmem>>, vector<4x8x16xf32>
    %372 = vector.broadcast %370 : vector<4x8x1xf32> to vector<4x8x16xf32>
    %373 = arith.mulf %372, %371 : vector<4x8x16xf32>
    %cst_116 = arith.constant dense<0.000000e+00> : vector<4x16xf32>
    %374 = vector.multi_reduction <add>, %373, %cst_116 [1] : vector<4x8x16xf32> to vector<4x16xf32>
    %375 = arith.index_cast %c5_i32 : i32 to index
    %c0_117 = arith.constant 0 : index
    %c0_118 = arith.constant 0 : index
    %376 = vector.load %arg2[%375, %c0_117, %c0_118] : memref<7x4x1xf32, #tpu.memory_space<vmem>>, vector<1x4x1xf32>
    %377 = vector.shape_cast %376 : vector<1x4x1xf32> to vector<4x1xf32>
    %cst_119 = arith.constant dense<0.000000e+00> : vector<4x1xf32>
    %378 = tpu.matmul %374, %11, %cst_119 {dimension_numbers = #tpu.dot_dimension_numbers<[1], [0], [0], [1], [0, 0, 1, 1], [], []>} : vector<4x16xf32>, vector<16x1xf32>, vector<4x1xf32> -> vector<4x1xf32>
    %379 = vector.broadcast %13 : vector<1x1xf32> to vector<4x1xf32>
    %380 = arith.addf %378, %379 : vector<4x1xf32>
    %381 = vector.broadcast %12 : vector<1x1xf32> to vector<4x1xf32>
    %382 = arith.mulf %377, %381 : vector<4x1xf32>
    %383 = arith.addf %380, %382 : vector<4x1xf32>
    %cst_120 = arith.constant dense<0.000000e+00> : vector<4x64xf32>
    %384 = tpu.matmul %349, %15, %cst_120 {dimension_numbers = #tpu.dot_dimension_numbers<[1], [0], [0], [1], [0, 0, 1, 1], [], []>} : vector<4x16xf32>, vector<16x64xf32>, vector<4x64xf32> -> vector<4x64xf32>
    %385 = vector.broadcast %16 : vector<1x64xf32> to vector<4x64xf32>
    %386 = arith.addf %384, %385 : vector<4x64xf32>
    %387 = vector.broadcast %383 : vector<4x1xf32> to vector<4x64xf32>
    %388 = vector.broadcast %14 : vector<1x64xf32> to vector<4x64xf32>
    %389 = arith.mulf %387, %388 : vector<4x64xf32>
    %390 = arith.addf %386, %389 : vector<4x64xf32>
    %391 = vector.extract_strided_slice %390 {offsets = [0, 0], sizes = [4, 16], strides = [1, 1]} : vector<4x64xf32> to vector<4x16xf32>
    %392 = arith.negf %391 : vector<4x16xf32>
    %393 = math.exp %392 : vector<4x16xf32>
    %cst_121 = arith.constant 1.000000e+00 : f32
    %394 = vector.broadcast %cst_121 : f32 to vector<4x16xf32>
    %395 = arith.addf %394, %393 : vector<4x16xf32>
    %396 = arith.divf %394, %395 : vector<4x16xf32>
    %397 = vector.extract_strided_slice %390 {offsets = [0, 16], sizes = [4, 16], strides = [1, 1]} : vector<4x64xf32> to vector<4x16xf32>
    %398 = arith.negf %397 : vector<4x16xf32>
    %399 = math.exp %398 : vector<4x16xf32>
    %cst_122 = arith.constant 1.000000e+00 : f32
    %400 = vector.broadcast %cst_122 : f32 to vector<4x16xf32>
    %401 = arith.addf %400, %399 : vector<4x16xf32>
    %402 = arith.divf %400, %401 : vector<4x16xf32>
    %403 = vector.extract_strided_slice %390 {offsets = [0, 32], sizes = [4, 16], strides = [1, 1]} : vector<4x64xf32> to vector<4x16xf32>
    %404 = math.tanh %403 : vector<4x16xf32>
    %405 = vector.extract_strided_slice %390 {offsets = [0, 48], sizes = [4, 16], strides = [1, 1]} : vector<4x64xf32> to vector<4x16xf32>
    %406 = arith.negf %405 : vector<4x16xf32>
    %407 = math.exp %406 : vector<4x16xf32>
    %cst_123 = arith.constant 1.000000e+00 : f32
    %408 = vector.broadcast %cst_123 : f32 to vector<4x16xf32>
    %409 = arith.addf %408, %407 : vector<4x16xf32>
    %410 = arith.divf %408, %409 : vector<4x16xf32>
    %411 = arith.mulf %402, %347 : vector<4x16xf32>
    %412 = arith.mulf %396, %404 : vector<4x16xf32>
    %413 = arith.addf %411, %412 : vector<4x16xf32>
    %414 = math.tanh %413 : vector<4x16xf32>
    %415 = arith.mulf %410, %414 : vector<4x16xf32>
    %c6_i32 = arith.constant 6 : i32
    %cst_124 = arith.constant dense<0.000000e+00> : vector<4x16xf32>
    %416 = tpu.matmul %415, %8, %cst_124 {dimension_numbers = #tpu.dot_dimension_numbers<[1], [0], [0], [1], [0, 0, 1, 1], [], []>} : vector<4x16xf32>, vector<16x16xf32>, vector<4x16xf32> -> vector<4x16xf32>
    %cst_125 = arith.constant dense<0.000000e+00> : vector<4x16xf32>
    %417 = tpu.matmul %413, %9, %cst_125 {dimension_numbers = #tpu.dot_dimension_numbers<[1], [0], [0], [1], [0, 0, 1, 1], [], []>} : vector<4x16xf32>, vector<16x16xf32>, vector<4x16xf32> -> vector<4x16xf32>
    %418 = arith.addf %416, %417 : vector<4x16xf32>
    %419 = vector.shape_cast %418 : vector<4x16xf32> to vector<4x1x16xf32>
    %420 = vector.broadcast %419 : vector<4x1x16xf32> to vector<4x8x16xf32>
    %421 = arith.addf %7, %420 : vector<4x8x16xf32>
    %422 = math.tanh %421 : vector<4x8x16xf32>
    %423 = vector.broadcast %10 : vector<1x1x16xf32> to vector<4x8x16xf32>
    %424 = arith.mulf %422, %423 : vector<4x8x16xf32>
    %cst_126 = arith.constant dense<0.000000e+00> : vector<4x8xf32>
    %425 = vector.multi_reduction <add>, %424, %cst_126 [2] : vector<4x8x16xf32> to vector<4x8xf32>
    %426 = math.exp %425 : vector<4x8xf32>
    %cst_127 = arith.constant dense<0.000000e+00> : vector<4xf32>
    %427 = vector.multi_reduction <add>, %426, %cst_127 [1] : vector<4x8xf32> to vector<4xf32>
    %428 = vector.shape_cast %427 : vector<4xf32> to vector<4x1xf32>
    %429 = tpu.reciprocal %428 {approx = true} : vector<4x1xf32> -> vector<4x1xf32>
    %430 = arith.mulf %428, %429 : vector<4x1xf32>
    %cst_128 = arith.constant 2.000000e+00 : f32
    %431 = vector.broadcast %cst_128 : f32 to vector<4x1xf32>
    %432 = arith.subf %431, %430 : vector<4x1xf32>
    %433 = arith.mulf %429, %432 : vector<4x1xf32>
    %434 = vector.broadcast %433 : vector<4x1xf32> to vector<4x8xf32>
    %435 = arith.mulf %426, %434 : vector<4x8xf32>
    %436 = vector.shape_cast %435 : vector<4x8xf32> to vector<4x8x1xf32>
    %c0_129 = arith.constant 0 : index
    %c0_130 = arith.constant 0 : index
    %c0_131 = arith.constant 0 : index
    %437 = vector.load %arg1[%c0_129, %c0_130, %c0_131] : memref<4x8x16xf32, #tpu.memory_space<vmem>>, vector<4x8x16xf32>
    %438 = vector.broadcast %436 : vector<4x8x1xf32> to vector<4x8x16xf32>
    %439 = arith.mulf %438, %437 : vector<4x8x16xf32>
    %cst_132 = arith.constant dense<0.000000e+00> : vector<4x16xf32>
    %440 = vector.multi_reduction <add>, %439, %cst_132 [1] : vector<4x8x16xf32> to vector<4x16xf32>
    %441 = arith.index_cast %c6_i32 : i32 to index
    %c0_133 = arith.constant 0 : index
    %c0_134 = arith.constant 0 : index
    %442 = vector.load %arg2[%441, %c0_133, %c0_134] : memref<7x4x1xf32, #tpu.memory_space<vmem>>, vector<1x4x1xf32>
    %443 = vector.shape_cast %442 : vector<1x4x1xf32> to vector<4x1xf32>
    %cst_135 = arith.constant dense<0.000000e+00> : vector<4x1xf32>
    %444 = tpu.matmul %440, %11, %cst_135 {dimension_numbers = #tpu.dot_dimension_numbers<[1], [0], [0], [1], [0, 0, 1, 1], [], []>} : vector<4x16xf32>, vector<16x1xf32>, vector<4x1xf32> -> vector<4x1xf32>
    %445 = vector.broadcast %13 : vector<1x1xf32> to vector<4x1xf32>
    %446 = arith.addf %444, %445 : vector<4x1xf32>
    %447 = vector.broadcast %12 : vector<1x1xf32> to vector<4x1xf32>
    %448 = arith.mulf %443, %447 : vector<4x1xf32>
    %449 = arith.addf %446, %448 : vector<4x1xf32>
    %cst_136 = arith.constant dense<0.000000e+00> : vector<4x64xf32>
    %450 = tpu.matmul %415, %15, %cst_136 {dimension_numbers = #tpu.dot_dimension_numbers<[1], [0], [0], [1], [0, 0, 1, 1], [], []>} : vector<4x16xf32>, vector<16x64xf32>, vector<4x64xf32> -> vector<4x64xf32>
    %451 = vector.broadcast %16 : vector<1x64xf32> to vector<4x64xf32>
    %452 = arith.addf %450, %451 : vector<4x64xf32>
    %453 = vector.broadcast %449 : vector<4x1xf32> to vector<4x64xf32>
    %454 = vector.broadcast %14 : vector<1x64xf32> to vector<4x64xf32>
    %455 = arith.mulf %453, %454 : vector<4x64xf32>
    %456 = arith.addf %452, %455 : vector<4x64xf32>
    %457 = vector.extract_strided_slice %456 {offsets = [0, 0], sizes = [4, 16], strides = [1, 1]} : vector<4x64xf32> to vector<4x16xf32>
    %458 = arith.negf %457 : vector<4x16xf32>
    %459 = math.exp %458 : vector<4x16xf32>
    %cst_137 = arith.constant 1.000000e+00 : f32
    %460 = vector.broadcast %cst_137 : f32 to vector<4x16xf32>
    %461 = arith.addf %460, %459 : vector<4x16xf32>
    %462 = arith.divf %460, %461 : vector<4x16xf32>
    %463 = vector.extract_strided_slice %456 {offsets = [0, 16], sizes = [4, 16], strides = [1, 1]} : vector<4x64xf32> to vector<4x16xf32>
    %464 = arith.negf %463 : vector<4x16xf32>
    %465 = math.exp %464 : vector<4x16xf32>
    %cst_138 = arith.constant 1.000000e+00 : f32
    %466 = vector.broadcast %cst_138 : f32 to vector<4x16xf32>
    %467 = arith.addf %466, %465 : vector<4x16xf32>
    %468 = arith.divf %466, %467 : vector<4x16xf32>
    %469 = vector.extract_strided_slice %456 {offsets = [0, 32], sizes = [4, 16], strides = [1, 1]} : vector<4x64xf32> to vector<4x16xf32>
    %470 = math.tanh %469 : vector<4x16xf32>
    %471 = vector.extract_strided_slice %456 {offsets = [0, 48], sizes = [4, 16], strides = [1, 1]} : vector<4x64xf32> to vector<4x16xf32>
    %472 = arith.negf %471 : vector<4x16xf32>
    %473 = math.exp %472 : vector<4x16xf32>
    %cst_139 = arith.constant 1.000000e+00 : f32
    %474 = vector.broadcast %cst_139 : f32 to vector<4x16xf32>
    %475 = arith.addf %474, %473 : vector<4x16xf32>
    %476 = arith.divf %474, %475 : vector<4x16xf32>
    %477 = arith.mulf %468, %413 : vector<4x16xf32>
    %478 = arith.mulf %462, %470 : vector<4x16xf32>
    %479 = arith.addf %477, %478 : vector<4x16xf32>
    %480 = math.tanh %479 : vector<4x16xf32>
    %481 = arith.mulf %476, %480 : vector<4x16xf32>
    %c7_i32 = arith.constant 7 : i32
    %c0_140 = arith.constant 0 : index
    %c0_141 = arith.constant 0 : index
    %482 = vector.load %arg14[%c0_140, %c0_141] : memref<16x16xf32, #tpu.memory_space<vmem>>, vector<16x16xf32>
    %cst_142 = arith.constant dense<0.000000e+00> : vector<4x16xf32>
    %483 = tpu.matmul %481, %482, %cst_142 {dimension_numbers = #tpu.dot_dimension_numbers<[1], [0], [0], [1], [0, 0, 1, 1], [], []>} : vector<4x16xf32>, vector<16x16xf32>, vector<4x16xf32> -> vector<4x16xf32>
    %c0_143 = arith.constant 0 : index
    %c0_144 = arith.constant 0 : index
    %484 = vector.load %arg15[%c0_143, %c0_144] : memref<16x16xf32, #tpu.memory_space<vmem>>, vector<16x16xf32>
    %cst_145 = arith.constant dense<0.000000e+00> : vector<4x16xf32>
    %485 = tpu.matmul %440, %484, %cst_145 {dimension_numbers = #tpu.dot_dimension_numbers<[1], [0], [0], [1], [0, 0, 1, 1], [], []>} : vector<4x16xf32>, vector<16x16xf32>, vector<4x16xf32> -> vector<4x16xf32>
    %486 = arith.addf %483, %485 : vector<4x16xf32>
    %c0_146 = arith.constant 0 : index
    %c0_147 = arith.constant 0 : index
    %487 = vector.load %arg16[%c0_146, %c0_147] : memref<1x16xf32, #tpu.memory_space<vmem>>, vector<1x16xf32>
    %488 = vector.broadcast %487 : vector<1x16xf32> to vector<4x16xf32>
    %489 = arith.addf %486, %488 : vector<4x16xf32>
    %c0_148 = arith.constant 0 : index
    %c0_149 = arith.constant 0 : index
    %490 = vector.load %arg17[%c0_148, %c0_149] : memref<16x1xf32, #tpu.memory_space<vmem>>, vector<16x1xf32>
    %cst_150 = arith.constant dense<0.000000e+00> : vector<4x1xf32>
    %491 = tpu.matmul %489, %490, %cst_150 {dimension_numbers = #tpu.dot_dimension_numbers<[1], [0], [0], [1], [0, 0, 1, 1], [], []>} : vector<4x16xf32>, vector<16x1xf32>, vector<4x1xf32> -> vector<4x1xf32>
    %c0_151 = arith.constant 0 : index
    %c0_152 = arith.constant 0 : index
    %492 = vector.load %arg18[%c0_151, %c0_152] : memref<1x1xf32, #tpu.memory_space<vmem>>, vector<1x1xf32>
    %493 = vector.broadcast %492 : vector<1x1xf32> to vector<4x1xf32>
    %494 = arith.addf %491, %493 : vector<4x1xf32>
    %c0_153 = arith.constant 0 : index
    %c0_154 = arith.constant 0 : index
    %495 = vector.load %arg19[%c0_153, %c0_154] : memref<4x1xf32, #tpu.memory_space<vmem>>, vector<4x1xf32>
    tpu.vector_store %arg19[%c0_153, %c0_154], %494 {strides = array<i32>} : memref<4x1xf32, #tpu.memory_space<vmem>>, vector<4x1xf32>,
    return
  }
  func.func @transform_0(%arg0: i32) -> (i32, i32, i32) {
    %c0_i32 = arith.constant 0 : i32
    %c0_i32_0 = arith.constant 0 : i32
    %c0_i32_1 = arith.constant 0 : i32
    %c0_i32_2 = arith.constant 0 : i32
    return %c0_i32, %c0_i32_0, %c0_i32_1 : i32, i32, i32
  }
  func.func @transform_1(%arg0: i32) -> (i32, i32, i32) {
    %c0_i32 = arith.constant 0 : i32
    %c0_i32_0 = arith.constant 0 : i32
    %c0_i32_1 = arith.constant 0 : i32
    %c0_i32_2 = arith.constant 0 : i32
    return %c0_i32, %c0_i32_0, %c0_i32_1 : i32, i32, i32
  }
  func.func @transform_2(%arg0: i32) -> (i32, i32) {
    %c0_i32 = arith.constant 0 : i32
    %c0_i32_0 = arith.constant 0 : i32
    %c0_i32_1 = arith.constant 0 : i32
    return %c0_i32, %c0_i32_0 : i32, i32
  }
  func.func @transform_3(%arg0: i32) -> (i32, i32) {
    %c0_i32 = arith.constant 0 : i32
    %c0_i32_0 = arith.constant 0 : i32
    %c0_i32_1 = arith.constant 0 : i32
    return %c0_i32, %c0_i32_0 : i32, i32
  }
  func.func @transform_4(%arg0: i32) -> (i32, i32) {
    %c0_i32 = arith.constant 0 : i32
    %c0_i32_0 = arith.constant 0 : i32
    %c0_i32_1 = arith.constant 0 : i32
    return %c0_i32, %c0_i32_0 : i32, i32
  }
  func.func @transform_5(%arg0: i32) -> (i32, i32) {
    %c0_i32 = arith.constant 0 : i32
    %c0_i32_0 = arith.constant 0 : i32
    %c0_i32_1 = arith.constant 0 : i32
    return %c0_i32, %c0_i32_0 : i32, i32
  }
  func.func @transform_6(%arg0: i32) -> (i32, i32, i32) {
    %c0_i32 = arith.constant 0 : i32
    %c0_i32_0 = arith.constant 0 : i32
    %c0_i32_1 = arith.constant 0 : i32
    %c0_i32_2 = arith.constant 0 : i32
    return %c0_i32, %c0_i32_0, %c0_i32_1 : i32, i32, i32
  }
  func.func @transform_7(%arg0: i32) -> (i32, i32) {
    %c0_i32 = arith.constant 0 : i32
    %c0_i32_0 = arith.constant 0 : i32
    %c0_i32_1 = arith.constant 0 : i32
    return %c0_i32, %c0_i32_0 : i32, i32
  }
  func.func @transform_8(%arg0: i32) -> (i32, i32) {
    %c0_i32 = arith.constant 0 : i32
    %c0_i32_0 = arith.constant 0 : i32
    %c0_i32_1 = arith.constant 0 : i32
    return %c0_i32, %c0_i32_0 : i32, i32
  }
  func.func @transform_9(%arg0: i32) -> (i32, i32) {
    %c0_i32 = arith.constant 0 : i32
    %c0_i32_0 = arith.constant 0 : i32
    %c0_i32_1 = arith.constant 0 : i32
    return %c0_i32, %c0_i32_0 : i32, i32
  }
  func.func @transform_10(%arg0: i32) -> (i32, i32) {
    %c0_i32 = arith.constant 0 : i32
    %c0_i32_0 = arith.constant 0 : i32
    %c0_i32_1 = arith.constant 0 : i32
    return %c0_i32, %c0_i32_0 : i32, i32
  }
  func.func @transform_11(%arg0: i32) -> (i32, i32) {
    %c0_i32 = arith.constant 0 : i32
    %c0_i32_0 = arith.constant 0 : i32
    %c0_i32_1 = arith.constant 0 : i32
    return %c0_i32, %c0_i32_0 : i32, i32
  }
  func.func @transform_12(%arg0: i32) -> (i32, i32) {
    %c0_i32 = arith.constant 0 : i32
    %c0_i32_0 = arith.constant 0 : i32
    %c0_i32_1 = arith.constant 0 : i32
    return %c0_i32, %c0_i32_0 : i32, i32
  }
  func.func @transform_13(%arg0: i32) -> (i32, i32) {
    %c0_i32 = arith.constant 0 : i32
    %c0_i32_0 = arith.constant 0 : i32
    %c0_i32_1 = arith.constant 0 : i32
    return %c0_i32, %c0_i32_0 : i32, i32
  }
  func.func @transform_14(%arg0: i32) -> (i32, i32) {
    %c0_i32 = arith.constant 0 : i32
    %c0_i32_0 = arith.constant 0 : i32
    %c0_i32_1 = arith.constant 0 : i32
    return %c0_i32, %c0_i32_0 : i32, i32
  }
  func.func @transform_15(%arg0: i32) -> (i32, i32) {
    %c0_i32 = arith.constant 0 : i32
    %c0_i32_0 = arith.constant 0 : i32
    %c0_i32_1 = arith.constant 0 : i32
    return %c0_i32, %c0_i32_0 : i32, i32
  }
  func.func @transform_16(%arg0: i32) -> (i32, i32) {
    %c0_i32 = arith.constant 0 : i32
    %c0_i32_0 = arith.constant 0 : i32
    %c0_i32_1 = arith.constant 0 : i32
    return %c0_i32, %c0_i32_0 : i32, i32
  }
  func.func @transform_17(%arg0: i32) -> (i32, i32) {
    %c0_i32 = arith.constant 0 : i32
    %c0_i32_0 = arith.constant 0 : i32
    %c0_i32_1 = arith.constant 0 : i32
    return %c0_i32, %c0_i32_0 : i32, i32
  }
  func.func @transform_18(%arg0: i32) -> (i32, i32) {
    %c0_i32 = arith.constant 0 : i32
    %c0_i32_0 = arith.constant 0 : i32
    %c0_i32_1 = arith.constant 0 : i32
    return %c0_i32, %c0_i32_0 : i32, i32
  }
}

</mosaic_0001>

<bundles_post_ra>
// kernel: decoder_pallas.1
= control target key start
LH: loop header
LB: loop body
LE: loop exit
PB: predicated region body
PF: predicated region fallthrough
CT: control target
= control target key end

     0   :  { %s5725_s0 = inlined_call_operand.vmem [shape: f32[4,8,16], index: 0, kind: input, shape index: {}]   ;;  %s5726_s1 = inlined_call_operand.vmem [shape: f32[7,4,1], index: 1, kind: input, shape index: {}]   ;;  %s5727_s2 = inlined_call_operand.vmem [shape: f32[16,16], index: 2, kind: input, shape index: {}]   ;;  %s5728_s3 = inlined_call_operand.vmem [shape: f32[16,16], index: 3, kind: input, shape index: {}]   ;;  %s5729_s4 = inlined_call_operand.vmem [shape: f32[16,16], index: 4, kind: input, shape index: {}]   ;;  %s5730_s5 = inlined_call_operand.vmem [shape: f32[1,16], index: 5, kind: input, shape index: {}]   ;;  %s5731_s6 = inlined_call_operand.vmem [shape: f32[1,1,16], index: 6, kind: input, shape index: {}]   ;;  %s5732_s7 = inlined_call_operand.vmem [shape: f32[16,1], index: 7, kind: input, shape index: {}]   ;;  %s5733_s8 = inlined_call_operand.<no memory space> [shape: f32[1,1], index: 8, kind: input, shape index: {}]   ;;  %s5734_s10 = inlined_call_operand.vmem [shape: f32[1,64], index: 10, kind: input, shape index: {}]   ;;  %s5735_s11 = inlined_call_operand.vmem [shape: f32[16,64], index: 11, kind: input, shape index: {}]   ;;  %s5736_s12 = inlined_call_operand.hbm [shape: f32[1,64], index: 12, kind: input, shape index: {}]   ;;  %s5737_s13 = inlined_call_operand.vmem [shape: f32[16,16], index: 13, kind: input, shape index: {}]   ;;  %s5738_s14 = inlined_call_operand.vmem [shape: f32[16,16], index: 14, kind: input, shape index: {}]   ;;  %s5739_s15 = inlined_call_operand.vmem [shape: f32[1,16], index: 15, kind: input, shape index: {}]   ;;  %s5740_s16 = inlined_call_operand.vmem [shape: f32[16,1], index: 16, kind: input, shape index: {}]   ;;  %s5741_s18 = inlined_call_operand.vmem [shape: f32[4,1], index: 18, kind: output, shape index: {}]   ;;  %s5742_s9 = inlined_call_operand.<no memory space> [shape: f32[1,1], index: 9, kind: input, shape index: {}]   ;;  %s5743_s17 = inlined_call_operand.<no memory space> [shape: f32[1,1], index: 17, kind: input, shape index: {}]  }
   0x1   :  { %5747 = sst [smem:[#allocation8_spill]] %s5725_s0  ;;  %v23_v0 = vstv %s5733_s8  ;;  %v25_v1 = vstv %s5742_s9  ;;  %v27_v2 = vstv %s5743_s17 }
   0x2   :  { %5748 = sst [smem:[#allocation9_spill]] %s5726_s1  ;;  %24 = vst [vmem:[#allocation2] sm:$0x1] %v23_v0  ;;  %26 = vst [vmem:[#allocation3] sm:$0x1] %v25_v1 }
   0x3   :  { %5749 = sst [smem:[#allocation10_spill]] %s5727_s2  ;;  %28 = vst [vmem:[#allocation4] sm:$0x1] %v27_v2 }
   0x4   :  { %29 = vsyncpa [#allocation6], 0  ;;  %s4835_s1 = smov [#allocation5]   ;;  %s4811_s2 = scalar_lea.hbm %s5736_s12, 16 }
   0x5   :  { %s60_s20 = sshll.u32 %s4835_s1, 4  ;;  %p4812_p0 = scmp.ne.s32.totalorder %s5736_s12, %s4811_s2  ;;  %s61_s20 = int_to_ptr.vmem [resolvable:$true] %s60_s20 }
   0x6   :  { %p4815_p1 = scmp.lt.u32.totalorder %s4811_s2, %s5736_s12 }
   0x8   :  { %p4817_p2 = pnand %p4815_p1, %p4812_p0 }
   0xa   :  { %4820 = shalt.err (!%p4817_p2)
}
   0xb   :  { %s4821_s17 = scalar_lea.vmem %s61_s20, 16  ;;  %s4825_s25 = scalar_lea.vmem %s61_s20, 32 }
   0xc   :  { %p4822_p3 = scmp.ne.s32.totalorder %s61_s20, %s4821_s17  ;;  %p4826_p4 = scmp.lt.s32.totalorder %s61_s20, %s61_s20 }
   0xd   :  { %p4827_p5 = scmp.lt.s32.totalorder %s4825_s25, %s4821_s17 }
   0xf   :  { %p4828_p6 = por %p4827_p5, %p4826_p4 }
  0x11   :  { %p4829_p7 = pnand %p4828_p6, %p4822_p3 }
  0x13   :  { %4832 = shalt.err (!%p4829_p7)
}
  0x14   :  { %63 = dma.hbm_to_vmem [thread:$0]  %s5736_s12, 16, %s61_s20, [#allocation6]  }
  0x15   :  { %4833 = dma.done.wait [#allocation6], 16  }
  0x16   :  { %4834 = vsyncadd [#allocation6], 4294967280  ;;  %v4836_v3 = vmov 0.0|0.0   ;;  %vm4837_vm0 = vmmov 0   ;;  %v4838_v4 = vmov 0.0   ;;  %v190_v5 = vld [vmem:[%s5728_s3] sm:$0xff]  ;;  %v348_v20 = vlaneseq }
  0x17   :  { %4491 = vmatprep.subr.bf16.mxu1 %v4836_v3  ;;  %4274 = vmatprep.mubr.msk.f32.mxu1 %vm4837_vm0, %v4838_v4  ;;  %v191_v6 = vld [vmem:[%s5728_s3 + $0x8] sm:$0xff]  ;;  %s5750_s1 = sld [smem:[#allocation10_spill]]  ;;  %vm90_vm1 = vcmask 130048   ;;  %v81_v10 = vld [vmem:[%s5729_s4] sm:$0xff]  ;;  %s5751_s24 = sld [smem:[#allocation8_spill]]  ;;  %vm449_vm2 = vcmask 1041409  }
  0x18   :  { %v4974_v8 = vpack.c.bf16 %v191_v6, %v190_v5  ;;  %v82_v11 = vld [vmem:[%s5729_s4 + $0x8] sm:$0xff]  ;;  %v4839_v18 = vmov 1966171168   ;;  %v5028_v22 = vshrl.u32 %v348_v20, 7  ;;  %v4108_v31 = vld [vmem:[%s5730_s5] ss:$0 sm:$0xff] }
  0x19   :  { %v4487_v12 = vpack.c.bf16 %v82_v11, %v81_v10  ;;  %v346_v19 = vunpack.c.l.s4 %v4839_v18  ;;  %v5061_v50 = vld [vmem:[%s5731_s6] ss:$0 sm:$0xff]  ;;  %v432_v10 = vand.u32 127, %v348_v20  ;;  %vm451_vm3 = vcmask 1042434   ;;  %s5752_s23 = sld [smem:[#allocation9_spill]]  ;;  %s4841_s17 = smov 96  }
  0x1a   :  { %4493 = vmatpush3.bf16.msra.mxu1 %v4974_v8  ;;  %v5035_v30 = vsub.s32 0, %v5028_v22  ;;  %vm453_vm4 = vcmask 1043459   ;;  %vm456_vm5 = vcmask 60416   ;;  %s4842_s25 = smov 16   ;;  %s4843_s4 = smov 32   ;;  %vm4101_vm6 = vcmask 3072  }
  0x1b   :  { %4494 = vmatprep.subr.bf16.mxu1 %v4836_v3  ;;  %4488 = vmatprep.subr.bf16.mxu0 %v4487_v12  ;;  %v347_v21 = vunpack.c.0.s8 %v346_v19  ;;  %v5072_v11 = vsub.s32 %v432_v10, %v5028_v22  ;;  %s4844_s26 = smov 112   ;;  %s4845_s27 = smov 80  }
  0x1c   :  { %4490 = vmatpush3.bf16.msra.mxu0 %v4487_v12 }
  0x1d   :  { %v188_v7 = vld [vmem:[%s5750_s1] sm:$0xff]  ;;  %v189_v9 = vld [vmem:[%s5750_s1 + $0x8] sm:$0xff]  ;;  %4275 = vmatmul.mubr.f32.vlgmr.msra.gmra.mrb[0].mxu1 %v4838_v4  ;;  %v5005_v16 = vld [vmem:[%s5751_s24 + $0x10] sm:$0xff]  ;;  %4497 = vmatprep.subr.bf16.mxu0 %v4836_v3  ;;  %v5031_v25 = vsub.s32 %v347_v21, %v5028_v22 }
  0x1e   :  { %v4988_v13 = vld [vmem:[%s5751_s24] sm:$0xff]  ;;  %v4991_v14 = vpack.c.bf16 %v189_v9, %v188_v7  ;;  %v4999_v15 = vld [vmem:[%s5751_s24 + $0x8] sm:$0xff]  ;;  %4281 = vmatprep.mubr.msk.f32.mxu1 %vm4837_vm0, %v4838_v4  ;;  %v5019_v17 = vld [vmem:[%s5751_s24 + $0x18] sm:$0xff] }
  0x1f   :  { %4264 = vmatprep.mubr.msk.f32.mxu0 %vm90_vm1, %v4988_v13 }
  0x20   :  { %4496 = vmatpush3.bf16.msra.mxu1 %v4991_v14  ;;  %4265 = vmatmul.mubr.msk.f32.vlgmr.msra.gmra.mrb[0].mxu0 %vm90_vm1, %v4999_v15 }
  0x21   :  { %4500 = vmatprep.subr.bf16.mxu1 %v4836_v3  ;;  %4267 = vmatprep.mubr.msk.f32.mxu0 %vm90_vm1, %v5005_v16 }
  0x24   :  { %4268 = vmatmul.mubr.msk.f32.gmra.mrb[2].mxu0 %vm90_vm1, %v5019_v17 }
  0x25   :  { %4288 = vmatprep.mubr.msk.f32.mxu0 %vm4837_vm0, %v4838_v4  ;;  %4282 = vmatmul.mubr.f32.vlgmr.msra.gmra.mrb[0].mxu1 %v4838_v4 }
  0x26   :  { %4295 = vmatprep.mubr.msk.f32.mxu1 %vm4837_vm0, %v4838_v4 }
  0xf3   :  { %v4266_v23 = vpop.f32.mrb[0].mxu0 }
  0xf4   :  { %v169_v24 = vpop.f32.mrb[1].mxu0  ;;  %v5047_v40 = vadd.f32 %v4266_v23, %v4108_v31 }
  0xf5   :  { %v5041_v35 = vadd.f32 %v4108_v31, %v169_v24 }
  0xf7   :  { %v4269_v26 = vpop.f32.mrb[2].mxu0 }
  0xf8   :  { %v179_v27 = vpop.f32.mrb[3].mxu0  ;;  %v340_v28 = vpop.f32.mrb[0].mxu1  ;;  %v5052_v45 = vadd.f32 %v4269_v26, %v4108_v31 }
  0xf9   :  { %v351_v29 = vrot.slane %v340_v28, %v5031_v25  ;;  %v4283_v32 = vpop.f32.mrb[1].mxu1  ;;  %v5045_v39 = vadd.f32 %v4108_v31, %v179_v27 }
  0xfa   :  { %v4840_v32 = vmov 0  }
  0xfb   :  { %v352_v33 = vcombine.high %v351_v29, %v351_v29  ;;  %v359_v34 = vrot.slane %v351_v29, %v5031_v25  ;;  %4610 = vset.pattern.permute.xlu0 %v4840_v32  ;;  %4609 = vset.pattern.permute.xlu1 %v4840_v32 }
  0xfd   :  { %v366_v36 = vrot.slane %v352_v33, %v5031_v25  ;;  %v367_v37 = vcombine.high %v359_v34, %v359_v34  ;;  %v372_v38 = vrot.slane %v359_v34, %v5035_v30 }
  0xff   :  { %v368_v41 = vcombine.high %v366_v36, %v366_v36  ;;  %v376_v42 = vrot.slane %v366_v36, %v5035_v30  ;;  %v380_v43 = vrot.slane %v367_v37, %v5035_v30  ;;  %v389_v44 = vadd.f32 %v372_v38, %v5041_v35 }
 0x100   :  { %v5083_v38 = vsub.s32 1, %v5028_v22 }
 0x101   :  { %v384_v46 = vrot.slane %v368_v41, %v5035_v30  ;;  %4611 = vtanh.f32 %v389_v44  ;;  %v391_v47 = vadd.f32 %v380_v43, %v5045_v39  ;;  %v390_v48 = vadd.f32 %v376_v42, %v5047_v40 }
 0x102   :  { %v5086_v42 = vsub.s32 2, %v5028_v22 }
 0x103   :  { %4613 = vtanh.f32 %v391_v47  ;;  %v392_v49 = vadd.f32 %v384_v46, %v5052_v45 }
 0x104   :  { %4615 = vtanh.f32 %v390_v48 }
 0x105   :  { %4617 = vtanh.f32 %v392_v49  ;;  %v5092_v49 = vsub.s32 3, %v5028_v22  ;;  %v198_v22 = vld [vmem:[%s5735_s11] sm:$0xff] }
 0x10b   :  { %v4612_v51 = vpop.eup %4611 }
 0x10c   :  { %v403_v52 = vmul.f32 %v4612_v51, %v5061_v50 }
 0x10d   :  { %v4614_v53 = vpop.eup %4613 }
 0x10e   :  { %v4616_v54 = vpop.eup %4615  ;;  %v407_v55 = vsel %vm90_vm1, %v403_v52, 0.0  ;;  %v405_v56 = vmul.f32 %v4614_v53, %v5061_v50 }
 0x10f   :  { %v4618_v57 = vpop.eup %4617  ;;  %408 = vadd.xlane.f32.xlu0 %v407_v55  ;;  %v404_v58 = vmul.f32 %v4616_v54, %v5061_v50  ;;  %v193_v54 = vld [vmem:[%s5732_s7] sm:$0xff]  ;;  %v194_v55 = vld [vmem:[%s5732_s7 + $0x8] sm:$0xff] }
 0x110   :  { %v413_v59 = vsel %vm90_vm1, %v405_v56, 0.0  ;;  %v406_v60 = vmul.f32 %v4618_v57, %v5061_v50  ;;  %v5101_v56 = vpack.c.bf16 %v194_v55, %v193_v54  ;;  %v199_v57 = vld [vmem:[%s5735_s11 + $0x8] sm:$0xff] }
 0x111   :  { %414 = vadd.xlane.f32.xlu1 %v413_v59  ;;  %v410_v61 = vsel %vm90_vm1, %v404_v58, 0.0  ;;  %v5111_v58 = vpack.c.bf16 %v199_v57, %v198_v22  ;;  %v5136_v22 = vld [vmem:[#allocation2] ss:$0 sm:$0xff] }
 0x112   :  { %v416_v62 = vsel %vm90_vm1, %v406_v60, 0.0  ;;  %4499 = vmatpush3.bf16.msra.mxu0 %v5101_v56  ;;  %v541_v57 = vld [vmem:[%s5752_s23] sm:$0xf] }
 0x113   :  { %411 = vadd.xlane.f32.xlu0 %v410_v61  ;;  %4503 = vmatprep.subr.bf16.mxu0 %v4836_v3 }
 0x114   :  { %4502 = vmatpush3.bf16.msra.mxu1 %v5111_v58 }
 0x115   :  { %417 = vadd.xlane.f32.xlu1 %v416_v62  ;;  %4509 = vmatprep.subr.bf16.mxu1 %v4836_v3 }
 0x117   :  { %4296 = vmatmul.mubr.f32.vlgmr.msra.gmra.mrb[2].mxu1 %v4838_v4 }
 0x118   :  { %4511 = vmatpush3.bf16.msra.mxu1 %v5101_v56  ;;  %4316 = vmatprep.mubr.msk.f32.mxu1 %vm4837_vm0, %v4838_v4 }
 0x119   :  { %4512 = vmatprep.subr.bf16.mxu1 %v4836_v3 }
 0x19c   :  { %v409_v63 = vpop.xlane.xlu0 %408 }
 0x19d   :  { %v419_v0 = vmul.f32 1.442695, %v409_v63 }
 0x19e   :  { %v415_v1 = vpop.xlane.xlu1 %414 }
 0x19f   :  { %v423_v2 = vmul.f32 1.442695, %v415_v1  ;;  %4619 = vpow2.f32 %v419_v0 }
 0x1a0   :  { %v412_v5 = vpop.xlane.xlu0 %411 }
 0x1a1   :  { %v421_v6 = vmul.f32 1.442695, %v412_v5  ;;  %4621 = vpow2.f32 %v423_v2 }
 0x1a2   :  { %v418_v7 = vpop.xlane.xlu1 %417 }
 0x1a3   :  { %4623 = vpow2.f32 %v421_v6  ;;  %v425_v9 = vmul.f32 1.442695, %v418_v7 }
 0x1a5   :  { %4625 = vpow2.f32 %v425_v9 }
 0x1a9   :  { %v4620_v12 = vpop.eup %4619 }
 0x1aa   :  { %v436_v21 = vrot.slane %v4620_v12, %v5072_v11 }
 0x1ab   :  { %v4622_v18 = vpop.eup %4621 }
 0x1ac   :  { %v444_v26 = vrot.slane %v4622_v18, %v5072_v11 }
 0x1ad   :  { %v4624_v19 = vpop.eup %4623 }
 0x1ae   :  { %v440_v23 = vrot.slane %v4624_v19, %v5072_v11 }
 0x1af   :  { %v4626_v24 = vpop.eup %4625 }
 0x1b0   :  { %v448_v27 = vrot.slane %v4626_v24, %v5072_v11  ;;  %v450_v20 = vsel %vm449_vm2, %v440_v23, %v436_v21 }
 0x1b1   :  { %v452_v28 = vsel %vm451_vm3, %v444_v26, %v450_v20 }
 0x1b2   :  { %v454_v29 = vsel %vm453_vm4, %v448_v27, %v452_v28 }
 0x1b3   :  { %v457_v31 = vsel %vm456_vm5, %v454_v29, 0.0 }
 0x1b4   :  { %458 = vadd.xlane.f32.xlu0 %v457_v31 }
 0x1ea   :  { %v707_v54 = vpop.f32.mrb[2].mxu1 }
 0x1eb   :  { %v4297_v55 = vpop.f32.mrb[3].mxu1 }
 0x241   :  { %v459_v33 = vpop.xlane.xlu0 %458 }
 0x242   :  { %4627 = vrcp.f32 %v459_v33 }
 0x24c   :  { %v4628_v34 = vpop.eup %4627 }
 0x24d   :  { %v461_v36 = vmul.f32 %v4628_v34, %v459_v33 }
 0x24f   :  { %v462_v37 = vsub.f32 2.0, %v461_v36 }
 0x251   :  { %v463_v41 = vmul.f32 %v4628_v34, %v462_v37 }
 0x253   :  { %v472_v43 = vrot.slane %v463_v41, %v5083_v38  ;;  %v468_v44 = vrot.slane %v463_v41, %v5035_v30  ;;  %v476_v48 = vrot.slane %v463_v41, %v5086_v42  ;;  %v480_v52 = vrot.slane %v463_v41, %v5092_v49 }
 0x255   :  { %v486_v46 = vmul.f32 %v4624_v19, %v472_v43  ;;  %v485_v47 = vmul.f32 %v4620_v12, %v468_v44  ;;  %v487_v51 = vmul.f32 %v4622_v18, %v476_v48  ;;  %v488_v53 = vmul.f32 %v4626_v24, %v480_v52 }
 0x257   :  { %496 = vperm.xlu0 %4610, %v486_v46   ;;  %491 = vperm.xlu1 %4609, %v485_v47  }
 0x25b   :  { %501 = vperm.xlu1 %4609, %v487_v51  }
 0x25f   :  { %506 = vperm.xlu1 %4609, %v488_v53  }
 0x2d6   :  { %v497_v59 = vpop.permute.xlu0 %496  ;;  %v492_v60 = vpop.permute.xlu1 %491 }
 0x2d7   :  { %v510_v61 = vmul.f32 %v497_v59, %v4999_v15  ;;  %v509_v62 = vmul.f32 %v492_v60, %v4988_v13  ;;  %v5141_v59 = vld [vmem:[#allocation3] ss:$0 sm:$0xff]  ;;  %v633_v60 = vmul.f32 %v5136_v22, %v541_v57 }
 0x2d9   :  { %v520_v63 = vsel %vm90_vm1, %v510_v61, 0.0  ;;  %v513_v0 = vsel %vm90_vm1, %v509_v62, 0.0 }
 0x2da   :  { %v521_v1 = vrot.slane %v520_v63, 4  ;;  %v514_v2 = vrot.slane %v513_v0, 4  ;;  %v502_v5 = vpop.permute.xlu1 %501 }
 0x2db   :  { %v511_v6 = vmul.f32 %v502_v5, %v5005_v16 }
 0x2dc   :  { %v522_v7 = vadd.f32 %v521_v1, %v520_v63  ;;  %v515_v9 = vadd.f32 %v514_v2, %v513_v0  ;;  %v5145_v1 = vld [vmem:[#allocation5] ss:$0 sm:$0xff]  ;;  %v5150_v2 = vld [vmem:[%s5734_s10] ss:$0 sm:$0xff] }
 0x2dd   :  { %v527_v10 = vsel %vm90_vm1, %v511_v6, 0.0  ;;  %v708_v5 = vadd.f32 %v5145_v1, %v707_v54 }
 0x2de   :  { %v523_v12 = vrot.slane %v522_v7, 2  ;;  %v516_v18 = vrot.slane %v515_v9, 2  ;;  %v528_v19 = vrot.slane %v527_v10, 4  ;;  %v507_v21 = vpop.permute.xlu1 %506 }
 0x2df   :  { %v512_v23 = vmul.f32 %v507_v21, %v5019_v17 }
 0x2e0   :  { %v524_v24 = vadd.f32 %v523_v12, %v522_v7  ;;  %v517_v26 = vadd.f32 %v516_v18, %v515_v9  ;;  %v529_v27 = vadd.f32 %v528_v19, %v527_v10 }
 0x2e1   :  { %v534_v20 = vsel %vm90_vm1, %v512_v23, 0.0 }
 0x2e2   :  { %v530_v28 = vrot.slane %v529_v27, 2  ;;  %v535_v29 = vrot.slane %v534_v20, 4  ;;  %v525_v31 = vrot.slane %v524_v24, 1  ;;  %v518_v32 = vrot.slane %v517_v26, 1 }
 0x2e4   :  { %v531_v33 = vadd.f32 %v530_v28, %v529_v27  ;;  %v536_v34 = vadd.f32 %v535_v29, %v534_v20  ;;  %v526_v41 = vadd.f32 %v525_v31, %v524_v24  ;;  %v519_v43 = vadd.f32 %v518_v32, %v517_v26 }
 0x2e6   :  { %v532_v36 = vrot.slane %v531_v33, 1  ;;  %v537_v37 = vrot.slane %v536_v34, 2  ;;  %v552_v51 = vsel %vm449_vm2, %v526_v41, %v519_v43 }
 0x2e8   :  { %v538_v44 = vadd.f32 %v537_v37, %v536_v34  ;;  %v533_v46 = vadd.f32 %v532_v36, %v531_v33 }
 0x2ea   :  { %v539_v47 = vrot.slane %v538_v44, 1  ;;  %v553_v52 = vsel %vm451_vm3, %v533_v46, %v552_v51 }
 0x2ec   :  { %v540_v48 = vadd.f32 %v539_v47, %v538_v44 }
 0x2ee   :  { %v554_v53 = vsel %vm453_vm4, %v540_v48, %v553_v52 }
 0x2ef   :  { %4289 = vmatmul.mubr.msk.f32.vlgmr.msra.gmra.mrb[4].mxu0 %vm90_vm1, %v554_v53 }
 0x2f0   :  { %4505 = vmatpush3.bf16.msra.mxu0 %v4974_v8  ;;  %4302 = vmatprep.mubr.msk.f32.mxu0 %vm4837_vm0, %v4838_v4 }
 0x2f1   :  { %4506 = vmatprep.subr.bf16.mxu0 %v4836_v3 }
 0x3c2   :  { %v623_v61 = vpop.f32.mrb[4].mxu0 }
 0x3c3   :  { %v624_v62 = vadd.f32 %v5141_v59, %v623_v61  ;;  %v4290_v63 = vpop.f32.mrb[5].mxu0 }
 0x3c5   :  { %v634_v0 = vadd.f32 %v633_v60, %v624_v62 }
 0x3c7   :  { %713 = vperm.xlu1 %4609, %v634_v0  }
 0x446   :  { %v714_v6 = vpop.permute.xlu1 %713 }
 0x447   :  { %v722_v7 = vmul.f32 %v5150_v2, %v714_v6 }
 0x449   :  { %v723_v9 = vadd.f32 %v722_v7, %v708_v5 }
 0x44b   :  { %4629 = vtanh.f32 %v723_v9  ;;  %v4119_v12 = vmul.f32 -1.442695, %v723_v9 }
 0x44d   :  { %4631 = vpow2.f32 %v4119_v12 }
 0x455   :  { %v4630_v10 = vpop.eup %4629 }
 0x456   :  { %733 = vrot.lane.b32.xlu1 %v4630_v10, %s4841_s17 }
 0x457   :  { %v4632_v18 = vpop.eup %4631 }
 0x458   :  { %v727_v19 = vadd.f32 1.0, %v4632_v18 }
 0x45a   :  { %4633 = vrcp.f32 %v727_v19 }
 0x464   :  { %v4634_v21 = vpop.eup %4633 }
 0x465   :  { %v731_v26 = vmul.f32 0.0, %v4634_v21 }
 0x4c8   :  { %v734_v23 = vpop.permute.xlu1 %733 }
 0x4c9   :  { %v736_v24 = vmul.f32 %v4634_v21, %v734_v23 }
 0x4cb   :  { %738 = vrot.lane.b32.xlu1 %v736_v24, %s4842_s25 }
 0x53d   :  { %v739_v27 = vpop.permute.xlu1 %738 }
 0x53e   :  { %v5156_v20 = vadd.f32 %v739_v27, %v731_v26 }
 0x540   :  { %4635 = vtanh.f32 %v5156_v20 }
 0x54a   :  { %v4636_v28 = vpop.eup %4635 }
 0x54b   :  { %744 = vrot.lane.b32.xlu1 %v4636_v28, %s4843_s4 }
 0x54f   :  { %749 = vrot.lane.b32.xlu1 %v5156_v20, %s4844_s26 }
 0x5bd   :  { %v745_v29 = vpop.permute.xlu1 %744 }
 0x5be   :  { %v747_v31 = vmul.f32 %v4634_v21, %v745_v29 }
 0x5c0   :  { %824 = vrot.lane.b32.xlu1 %v747_v31, %s4845_s27 }
 0x5c1   :  { %v750_v32 = vpop.permute.xlu1 %749 }
 0x5c2   :  { %4303 = vmatmul.mubr.msk.f32.vlgmr.msra.gmra.mrb[6].mxu0 %vm90_vm1, %v750_v32 }
 0x5c3   :  { %4508 = vmatpush3.bf16.msra.mxu0 %v4991_v14  ;;  %4309 = vmatprep.mubr.msk.f32.mxu0 %vm4837_vm0, %v4838_v4 }
 0x5c4   :  { %4515 = vmatprep.subr.bf16.mxu0 %v4836_v3 }
 0x632   :  { %v5168_v33 = vpop.permute.xlu1 %824 }
 0x633   :  { %4310 = vmatmul.mubr.msk.f32.vlgmr.msra.gmra.mrb[6].mxu0 %vm90_vm1, %v5168_v33 }
 0x634   :  { %4517 = vmatpush3.bf16.msra.mxu0 %v4974_v8  ;;  %4330 = vmatprep.mubr.msk.f32.mxu0 %vm4837_vm0, %v4838_v4 }
 0x635   :  { %4518 = vmatprep.subr.bf16.mxu0 %v4836_v3 }
 0x706   :  { %v894_v34 = vpop.f32.mrb[6].mxu0 }
 0x707   :  { %v905_v36 = vrot.slane %v894_v34, %v5031_v25  ;;  %v4311_v37 = vpop.f32.mrb[7].mxu0 }
 0x709   :  { %v906_v41 = vcombine.high %v905_v36, %v905_v36  ;;  %v913_v43 = vrot.slane %v905_v36, %v5031_v25 }
 0x70b   :  { %v920_v44 = vrot.slane %v906_v41, %v5031_v25  ;;  %v921_v46 = vcombine.high %v913_v43, %v913_v43  ;;  %v926_v47 = vrot.slane %v913_v43, %v5035_v30 }
 0x70d   :  { %v922_v48 = vcombine.high %v920_v44, %v920_v44  ;;  %v930_v51 = vrot.slane %v920_v44, %v5035_v30  ;;  %v934_v52 = vrot.slane %v921_v46, %v5035_v30  ;;  %v943_v53 = vadd.f32 %v926_v47, %v5041_v35 }
 0x70f   :  { %v938_v54 = vrot.slane %v922_v48, %v5035_v30  ;;  %v944_v55 = vadd.f32 %v930_v51, %v5047_v40  ;;  %v945_v57 = vadd.f32 %v934_v52, %v5045_v39  ;;  %4637 = vtanh.f32 %v943_v53 }
 0x711   :  { %v946_v60 = vadd.f32 %v938_v54, %v5052_v45  ;;  %4639 = vtanh.f32 %v944_v55 }
 0x712   :  { %4641 = vtanh.f32 %v945_v57 }
 0x713   :  { %4643 = vtanh.f32 %v946_v60 }
 0x719   :  { %v4638_v61 = vpop.eup %4637 }
 0x71a   :  { %v951_v62 = vmul.f32 %v4638_v61, %v5061_v50 }
 0x71b   :  { %v4640_v63 = vpop.eup %4639 }
 0x71c   :  { %v4642_v0 = vpop.eup %4641  ;;  %v955_v5 = vsel %vm90_vm1, %v951_v62, 0.0  ;;  %v952_v6 = vmul.f32 %v4640_v63, %v5061_v50 }
 0x71d   :  { %v4644_v7 = vpop.eup %4643  ;;  %956 = vadd.xlane.f32.xlu0 %v955_v5  ;;  %v953_v9 = vmul.f32 %v4642_v0, %v5061_v50 }
 0x71e   :  { %v958_v10 = vsel %vm90_vm1, %v952_v6, 0.0  ;;  %v954_v18 = vmul.f32 %v4644_v7, %v5061_v50 }
 0x71f   :  { %959 = vadd.xlane.f32.xlu1 %v958_v10  ;;  %v961_v12 = vsel %vm90_vm1, %v953_v9, 0.0 }
 0x720   :  { %v964_v19 = vsel %vm90_vm1, %v954_v18, 0.0 }
 0x721   :  { %962 = vadd.xlane.f32.xlu0 %v961_v12 }
 0x725   :  { %965 = vadd.xlane.f32.xlu0 %v964_v19 }
 0x7aa   :  { %v957_v21 = vpop.xlane.xlu0 %956 }
 0x7ab   :  { %v967_v23 = vmul.f32 1.442695, %v957_v21 }
 0x7ac   :  { %v960_v24 = vpop.xlane.xlu1 %959 }
 0x7ad   :  { %v969_v26 = vmul.f32 1.442695, %v960_v24  ;;  %4645 = vpow2.f32 %v967_v23 }
 0x7ae   :  { %v963_v27 = vpop.xlane.xlu0 %962 }
 0x7af   :  { %4647 = vpow2.f32 %v969_v26  ;;  %v971_v28 = vmul.f32 1.442695, %v963_v27 }
 0x7b1   :  { %4649 = vpow2.f32 %v971_v28 }
 0x7b2   :  { %v966_v29 = vpop.xlane.xlu0 %965 }
 0x7b3   :  { %v973_v31 = vmul.f32 1.442695, %v966_v29 }
 0x7b5   :  { %4651 = vpow2.f32 %v973_v31 }
 0x7b7   :  { %v4646_v32 = vpop.eup %4645 }
 0x7b8   :  { %v982_v41 = vrot.slane %v4646_v32, %v5072_v11 }
 0x7b9   :  { %v4648_v34 = vpop.eup %4647 }
 0x7ba   :  { %v986_v36 = vrot.slane %v4648_v34, %v5072_v11 }
 0x7bb   :  { %v4650_v37 = vpop.eup %4649 }
 0x7bc   :  { %v990_v43 = vrot.slane %v4650_v37, %v5072_v11  ;;  %v995_v44 = vsel %vm449_vm2, %v986_v36, %v982_v41 }
 0x7be   :  { %v996_v48 = vsel %vm451_vm3, %v990_v43, %v995_v44 }
 0x7bf   :  { %v4652_v46 = vpop.eup %4651 }
 0x7c0   :  { %v994_v47 = vrot.slane %v4652_v46, %v5072_v11 }
 0x7c2   :  { %v997_v51 = vsel %vm453_vm4, %v994_v47, %v996_v48 }
 0x7c3   :  { %v999_v52 = vsel %vm456_vm5, %v997_v51, 0.0 }
 0x7c4   :  { %1000 = vadd.xlane.f32.xlu1 %v999_v52 }
 0x851   :  { %v1001_v53 = vpop.xlane.xlu1 %1000 }
 0x852   :  { %4653 = vrcp.f32 %v1001_v53 }
 0x85c   :  { %v4654_v54 = vpop.eup %4653 }
 0x85d   :  { %v1003_v55 = vmul.f32 %v4654_v54, %v1001_v53 }
 0x85f   :  { %v1004_v57 = vsub.f32 2.0, %v1003_v55 }
 0x861   :  { %v1005_v60 = vmul.f32 %v4654_v54, %v1004_v57 }
 0x863   :  { %v1014_v61 = vrot.slane %v1005_v60, %v5083_v38  ;;  %v1010_v62 = vrot.slane %v1005_v60, %v5035_v30  ;;  %v1018_v5 = vrot.slane %v1005_v60, %v5086_v42  ;;  %v1022_v6 = vrot.slane %v1005_v60, %v5092_v49 }
 0x865   :  { %v1028_v63 = vmul.f32 %v4648_v34, %v1014_v61  ;;  %v1027_v0 = vmul.f32 %v4646_v32, %v1010_v62  ;;  %v1029_v7 = vmul.f32 %v4650_v37, %v1018_v5  ;;  %v1030_v9 = vmul.f32 %v4652_v46, %v1022_v6 }
 0x867   :  { %1038 = vperm.xlu1 %4609, %v1028_v63   ;;  %1033 = vperm.xlu0 %4610, %v1027_v0  }
 0x86b   :  { %1043 = vperm.xlu1 %4609, %v1029_v7   ;;  %1048 = vperm.xlu0 %4610, %v1030_v9  }
 0x8e6   :  { %v1039_v10 = vpop.permute.xlu1 %1038  ;;  %v1034_v12 = vpop.permute.xlu0 %1033 }
 0x8e7   :  { %v1052_v18 = vmul.f32 %v1039_v10, %v4999_v15  ;;  %v1051_v19 = vmul.f32 %v1034_v12, %v4988_v13 }
 0x8e9   :  { %v1062_v21 = vsel %vm90_vm1, %v1052_v18, 0.0  ;;  %v1055_v23 = vsel %vm90_vm1, %v1051_v19, 0.0  ;;  %v4122_v18 = vld [vmem:[%s5752_s23 + $0x4] sm:$0xf] }
 0x8ea   :  { %v1063_v24 = vrot.slane %v1062_v21, 4  ;;  %v1056_v26 = vrot.slane %v1055_v23, 4  ;;  %v1044_v27 = vpop.permute.xlu1 %1043  ;;  %v1049_v28 = vpop.permute.xlu0 %1048  ;;  %v1164_v19 = vmul.f32 %v4122_v18, %v5136_v22 }
 0x8eb   :  { %v1053_v29 = vmul.f32 %v1044_v27, %v5005_v16  ;;  %v1054_v31 = vmul.f32 %v1049_v28, %v5019_v17 }
 0x8ec   :  { %v1064_v32 = vadd.f32 %v1063_v24, %v1062_v21  ;;  %v1057_v34 = vadd.f32 %v1056_v26, %v1055_v23 }
 0x8ed   :  { %v1069_v36 = vsel %vm90_vm1, %v1053_v29, 0.0  ;;  %v1076_v37 = vsel %vm90_vm1, %v1054_v31, 0.0 }
 0x8ee   :  { %v1065_v41 = vrot.slane %v1064_v32, 2  ;;  %v1058_v43 = vrot.slane %v1057_v34, 2  ;;  %v1070_v44 = vrot.slane %v1069_v36, 4  ;;  %v1077_v46 = vrot.slane %v1076_v37, 4 }
 0x8f0   :  { %v1066_v47 = vadd.f32 %v1065_v41, %v1064_v32  ;;  %v1059_v48 = vadd.f32 %v1058_v43, %v1057_v34  ;;  %v1071_v51 = vadd.f32 %v1070_v44, %v1069_v36  ;;  %v1078_v52 = vadd.f32 %v1077_v46, %v1076_v37 }
 0x8f2   :  { %v1067_v53 = vrot.slane %v1066_v47, 1  ;;  %v1060_v54 = vrot.slane %v1059_v48, 1  ;;  %v1072_v55 = vrot.slane %v1071_v51, 2  ;;  %v1079_v57 = vrot.slane %v1078_v52, 2 }
 0x8f4   :  { %v1073_v60 = vadd.f32 %v1072_v55, %v1071_v51  ;;  %v1080_v61 = vadd.f32 %v1079_v57, %v1078_v52  ;;  %v1068_v62 = vadd.f32 %v1067_v53, %v1066_v47  ;;  %v1061_v63 = vadd.f32 %v1060_v54, %v1059_v48 }
 0x8f6   :  { %v1074_v0 = vrot.slane %v1073_v60, 1  ;;  %v1081_v5 = vrot.slane %v1080_v61, 1  ;;  %v1089_v9 = vsel %vm449_vm2, %v1068_v62, %v1061_v63 }
 0x8f8   :  { %v1075_v6 = vadd.f32 %v1074_v0, %v1073_v60  ;;  %v1082_v7 = vadd.f32 %v1081_v5, %v1080_v61 }
 0x8fa   :  { %v1090_v10 = vsel %vm451_vm3, %v1075_v6, %v1089_v9 }
 0x8fb   :  { %v1091_v12 = vsel %vm453_vm4, %v1082_v7, %v1090_v10 }
 0x8fc   :  { %4317 = vmatmul.mubr.msk.f32.vlgmr.msra.gmra.mrb[4].mxu1 %vm90_vm1, %v1091_v12 }
 0x8fd   :  { %4514 = vmatpush3.bf16.msra.mxu1 %v5111_v58  ;;  %4323 = vmatprep.mubr.msk.f32.mxu1 %vm4837_vm0, %v4838_v4 }
 0x8fe   :  { %4521 = vmatprep.subr.bf16.mxu1 %v4836_v3 }
 0x900   :  { %4324 = vmatmul.mubr.msk.f32.vlgmr.msra.gmra.mrb[6].mxu1 %vm90_vm1, %v5168_v33 }
 0x901   :  { %4523 = vmatpush3.bf16.msra.mxu1 %v5101_v56  ;;  %4344 = vmatprep.mubr.msk.f32.mxu1 %vm4837_vm0, %v4838_v4 }
 0x902   :  { %4524 = vmatprep.subr.bf16.mxu1 %v4836_v3 }
 0x9cf   :  { %v1160_v21 = vpop.f32.mrb[4].mxu1 }
 0x9d0   :  { %v1161_v23 = vadd.f32 %v5141_v59, %v1160_v21  ;;  %v4318_v24 = vpop.f32.mrb[5].mxu1 }
 0x9d2   :  { %v1165_v26 = vadd.f32 %v1164_v19, %v1161_v23 }
 0x9d3   :  { %v1232_v27 = vpop.f32.mrb[6].mxu1 }
 0x9d4   :  { %1238 = vperm.xlu1 %4609, %v1165_v26   ;;  %v4325_v33 = vpop.f32.mrb[7].mxu1  ;;  %v1233_v29 = vadd.f32 %v5145_v1, %v1232_v27 }
 0xa53   :  { %v1239_v28 = vpop.permute.xlu1 %1238 }
 0xa54   :  { %v1241_v31 = vmul.f32 %v5150_v2, %v1239_v28 }
 0xa56   :  { %v1242_v32 = vadd.f32 %v1241_v31, %v1233_v29 }
 0xa58   :  { %4655 = vtanh.f32 %v1242_v32  ;;  %v4125_v36 = vmul.f32 -1.442695, %v1242_v32 }
 0xa5a   :  { %4657 = vpow2.f32 %v4125_v36 }
 0xa62   :  { %v4656_v34 = vpop.eup %4655 }
 0xa63   :  { %1252 = vrot.lane.b32.xlu0 %v4656_v34, %s4841_s17 }
 0xa64   :  { %v4658_v37 = vpop.eup %4657 }
 0xa65   :  { %v1246_v41 = vadd.f32 1.0, %v4658_v37 }
 0xa67   :  { %4659 = vrcp.f32 %v1246_v41 }
 0xa71   :  { %v4660_v43 = vpop.eup %4659 }
 0xa72   :  { %v1250_v47 = vmul.f32 %v4660_v43, %v5156_v20 }
 0xad5   :  { %v1253_v44 = vpop.permute.xlu0 %1252 }
 0xad6   :  { %v1255_v46 = vmul.f32 %v4660_v43, %v1253_v44 }
 0xad8   :  { %1257 = vrot.lane.b32.xlu1 %v1255_v46, %s4842_s25 }
 0xb4a   :  { %v1258_v48 = vpop.permute.xlu1 %1257 }
 0xb4b   :  { %v5239_v51 = vadd.f32 %v1258_v48, %v1250_v47 }
 0xb4d   :  { %4661 = vtanh.f32 %v5239_v51  ;;  %1268 = vrot.lane.b32.xlu1 %v5239_v51, %s4844_s26 }
 0xb57   :  { %v4662_v52 = vpop.eup %4661 }
 0xb58   :  { %1263 = vrot.lane.b32.xlu0 %v4662_v52, %s4843_s4 }
 0xbbf   :  { %v1269_v53 = vpop.permute.xlu1 %1268 }
 0xbc0   :  { %4331 = vmatmul.mubr.msk.f32.vlgmr.msra.gmra.mrb[8].mxu0 %vm90_vm1, %v1269_v53 }
 0xbc1   :  { %4520 = vmatpush3.bf16.msra.mxu0 %v4991_v14  ;;  %4337 = vmatprep.mubr.msk.f32.mxu0 %vm4837_vm0, %v4838_v4 }
 0xbc2   :  { %4527 = vmatprep.subr.bf16.mxu0 %v4836_v3 }
 0xbca   :  { %v1264_v20 = vpop.permute.xlu0 %1263 }
 0xbcb   :  { %v1266_v54 = vmul.f32 %v4660_v43, %v1264_v20 }
 0xbcd   :  { %1343 = vrot.lane.b32.xlu0 %v1266_v54, %s4845_s27 }
 0xc3f   :  { %v5251_v55 = vpop.permute.xlu0 %1343 }
 0xc40   :  { %4338 = vmatmul.mubr.msk.f32.vlgmr.msra.gmra.mrb[8].mxu0 %vm90_vm1, %v5251_v55 }
 0xc41   :  { %4529 = vmatpush3.bf16.msra.mxu0 %v4974_v8  ;;  %4358 = vmatprep.mubr.msk.f32.mxu0 %vm4837_vm0, %v4838_v4 }
 0xc42   :  { %4530 = vmatprep.subr.bf16.mxu0 %v4836_v3 }
 0xd13   :  { %v1413_v57 = vpop.f32.mrb[8].mxu0 }
 0xd14   :  { %v1424_v60 = vrot.slane %v1413_v57, %v5031_v25  ;;  %v4339_v61 = vpop.f32.mrb[9].mxu0 }
 0xd16   :  { %v1425_v62 = vcombine.high %v1424_v60, %v1424_v60  ;;  %v1432_v63 = vrot.slane %v1424_v60, %v5031_v25 }
 0xd18   :  { %v1439_v0 = vrot.slane %v1425_v62, %v5031_v25  ;;  %v1440_v5 = vcombine.high %v1432_v63, %v1432_v63  ;;  %v1445_v6 = vrot.slane %v1432_v63, %v5035_v30 }
 0xd1a   :  { %v1441_v7 = vcombine.high %v1439_v0, %v1439_v0  ;;  %v1449_v9 = vrot.slane %v1439_v0, %v5035_v30  ;;  %v1453_v10 = vrot.slane %v1440_v5, %v5035_v30  ;;  %v1462_v12 = vadd.f32 %v1445_v6, %v5041_v35 }
 0xd1c   :  { %v1457_v18 = vrot.slane %v1441_v7, %v5035_v30  ;;  %v1463_v19 = vadd.f32 %v1449_v9, %v5047_v40  ;;  %v1464_v21 = vadd.f32 %v1453_v10, %v5045_v39  ;;  %4663 = vtanh.f32 %v1462_v12 }
 0xd1e   :  { %v1465_v23 = vadd.f32 %v1457_v18, %v5052_v45  ;;  %4665 = vtanh.f32 %v1463_v19 }
 0xd1f   :  { %4667 = vtanh.f32 %v1464_v21 }
 0xd20   :  { %4669 = vtanh.f32 %v1465_v23 }
 0xd26   :  { %v4664_v24 = vpop.eup %4663 }
 0xd27   :  { %v1470_v26 = vmul.f32 %v4664_v24, %v5061_v50 }
 0xd28   :  { %v4666_v27 = vpop.eup %4665 }
 0xd29   :  { %v4668_v33 = vpop.eup %4667  ;;  %v1474_v28 = vsel %vm90_vm1, %v1470_v26, 0.0  ;;  %v1471_v29 = vmul.f32 %v4666_v27, %v5061_v50 }
 0xd2a   :  { %v4670_v31 = vpop.eup %4669  ;;  %1475 = vadd.xlane.f32.xlu1 %v1474_v28  ;;  %v1472_v36 = vmul.f32 %v4668_v33, %v5061_v50 }
 0xd2b   :  { %v1477_v32 = vsel %vm90_vm1, %v1471_v29, 0.0  ;;  %v1473_v34 = vmul.f32 %v4670_v31, %v5061_v50 }
 0xd2c   :  { %1478 = vadd.xlane.f32.xlu0 %v1477_v32  ;;  %v1480_v41 = vsel %vm90_vm1, %v1472_v36, 0.0 }
 0xd2d   :  { %v1483_v37 = vsel %vm90_vm1, %v1473_v34, 0.0 }
 0xd2e   :  { %1484 = vadd.xlane.f32.xlu1 %v1483_v37 }
 0xd30   :  { %1481 = vadd.xlane.f32.xlu0 %v1480_v41 }
 0xdb7   :  { %v1476_v43 = vpop.xlane.xlu1 %1475 }
 0xdb8   :  { %v1486_v44 = vmul.f32 1.442695, %v1476_v43 }
 0xdb9   :  { %v1479_v46 = vpop.xlane.xlu0 %1478 }
 0xdba   :  { %v1488_v47 = vmul.f32 1.442695, %v1479_v46 }
 0xdbb   :  { %v1485_v48 = vpop.xlane.xlu1 %1484 }
 0xdbc   :  { %4671 = vpow2.f32 %v1488_v47  ;;  %v1492_v52 = vmul.f32 1.442695, %v1485_v48 }
 0xdbd   :  { %4673 = vpow2.f32 %v1486_v44  ;;  %v1482_v53 = vpop.xlane.xlu0 %1481 }
 0xdbe   :  { %v1490_v20 = vmul.f32 1.442695, %v1482_v53  ;;  %4675 = vpow2.f32 %v1492_v52 }
 0xdc0   :  { %4677 = vpow2.f32 %v1490_v20 }
 0xdc6   :  { %v4672_v50 = vpop.eup %4671 }
 0xdc7   :  { %v4674_v54 = vpop.eup %4673  ;;  %v1505_v57 = vrot.slane %v4672_v50, %v5072_v11 }
 0xdc8   :  { %v4676_v60 = vpop.eup %4675  ;;  %v1501_v62 = vrot.slane %v4674_v54, %v5072_v11 }
 0xdc9   :  { %v1513_v0 = vrot.slane %v4676_v60, %v5072_v11 }
 0xdca   :  { %v4678_v61 = vpop.eup %4677  ;;  %v1514_v5 = vsel %vm449_vm2, %v1505_v57, %v1501_v62 }
 0xdcb   :  { %v1509_v63 = vrot.slane %v4678_v61, %v5072_v11 }
 0xdcd   :  { %v1515_v6 = vsel %vm451_vm3, %v1509_v63, %v1514_v5 }
 0xdce   :  { %v1516_v7 = vsel %vm453_vm4, %v1513_v0, %v1515_v6 }
 0xdcf   :  { %v1518_v9 = vsel %vm456_vm5, %v1516_v7, 0.0 }
 0xdd0   :  { %1519 = vadd.xlane.f32.xlu0 %v1518_v9 }
 0xe5d   :  { %v1520_v10 = vpop.xlane.xlu0 %1519 }
 0xe5e   :  { %4679 = vrcp.f32 %v1520_v10 }
 0xe68   :  { %v4680_v12 = vpop.eup %4679 }
 0xe69   :  { %v1522_v18 = vmul.f32 %v4680_v12, %v1520_v10 }
 0xe6b   :  { %v1523_v19 = vsub.f32 2.0, %v1522_v18 }
 0xe6d   :  { %v1524_v21 = vmul.f32 %v4680_v12, %v1523_v19 }
 0xe6f   :  { %v1533_v23 = vrot.slane %v1524_v21, %v5083_v38  ;;  %v1529_v24 = vrot.slane %v1524_v21, %v5035_v30  ;;  %v1537_v33 = vrot.slane %v1524_v21, %v5086_v42  ;;  %v1541_v29 = vrot.slane %v1524_v21, %v5092_v49 }
 0xe71   :  { %v1547_v26 = vmul.f32 %v4672_v50, %v1533_v23  ;;  %v1546_v27 = vmul.f32 %v4674_v54, %v1529_v24  ;;  %v1548_v28 = vmul.f32 %v4678_v61, %v1537_v33  ;;  %v1549_v31 = vmul.f32 %v4676_v60, %v1541_v29 }
 0xe73   :  { %1557 = vperm.xlu0 %4610, %v1547_v26   ;;  %1552 = vperm.xlu1 %4609, %v1546_v27  }
 0xe77   :  { %1562 = vperm.xlu1 %4609, %v1548_v28   ;;  %v4128_v28 = vld [vmem:[%s5752_s23 + $0x8] sm:$0xf] }
 0xe78   :  { %v1683_v29 = vmul.f32 %v4128_v28, %v5136_v22 }
 0xe7b   :  { %1567 = vperm.xlu1 %4609, %v1549_v31  }
 0xef2   :  { %v1558_v32 = vpop.permute.xlu0 %1557  ;;  %v1553_v34 = vpop.permute.xlu1 %1552 }
 0xef3   :  { %v1571_v36 = vmul.f32 %v1558_v32, %v4999_v15  ;;  %v1570_v37 = vmul.f32 %v1553_v34, %v4988_v13 }
 0xef5   :  { %v1581_v41 = vsel %vm90_vm1, %v1571_v36, 0.0  ;;  %v1574_v43 = vsel %vm90_vm1, %v1570_v37, 0.0 }
 0xef6   :  { %v1582_v44 = vrot.slane %v1581_v41, 4  ;;  %v1575_v46 = vrot.slane %v1574_v43, 4  ;;  %v1563_v47 = vpop.permute.xlu1 %1562 }
 0xef7   :  { %v1572_v48 = vmul.f32 %v1563_v47, %v5005_v16 }
 0xef8   :  { %v1583_v52 = vadd.f32 %v1582_v44, %v1581_v41  ;;  %v1576_v53 = vadd.f32 %v1575_v46, %v1574_v43 }
 0xef9   :  { %v1588_v20 = vsel %vm90_vm1, %v1572_v48, 0.0 }
 0xefa   :  { %v1584_v50 = vrot.slane %v1583_v52, 2  ;;  %v1577_v54 = vrot.slane %v1576_v53, 2  ;;  %v1589_v57 = vrot.slane %v1588_v20, 4  ;;  %v1568_v60 = vpop.permute.xlu1 %1567 }
 0xefb   :  { %v1573_v15 = vmul.f32 %v1568_v60, %v5019_v17 }
 0xefc   :  { %v1585_v13 = vadd.f32 %v1584_v50, %v1583_v52  ;;  %v1578_v61 = vadd.f32 %v1577_v54, %v1576_v53  ;;  %v1590_v62 = vadd.f32 %v1589_v57, %v1588_v20 }
 0xefd   :  { %v1595_v63 = vsel %vm90_vm1, %v1573_v15, 0.0 }
 0xefe   :  { %v1591_v0 = vrot.slane %v1590_v62, 2  ;;  %v1596_v5 = vrot.slane %v1595_v63, 4  ;;  %v1586_v6 = vrot.slane %v1585_v13, 1  ;;  %v1579_v7 = vrot.slane %v1578_v61, 1 }
 0xf00   :  { %v1592_v16 = vadd.f32 %v1591_v0, %v1590_v62  ;;  %v1597_v9 = vadd.f32 %v1596_v5, %v1595_v63  ;;  %v1587_v18 = vadd.f32 %v1586_v6, %v1585_v13  ;;  %v1580_v19 = vadd.f32 %v1579_v7, %v1578_v61 }
 0xf02   :  { %v1593_v10 = vrot.slane %v1592_v16, 1  ;;  %v1598_v12 = vrot.slane %v1597_v9, 2  ;;  %v1608_v17 = vsel %vm449_vm2, %v1587_v18, %v1580_v19 }
 0xf04   :  { %v1599_v21 = vadd.f32 %v1598_v12, %v1597_v9  ;;  %v1594_v23 = vadd.f32 %v1593_v10, %v1592_v16 }
 0xf06   :  { %v1600_v24 = vrot.slane %v1599_v21, 1  ;;  %v1609_v27 = vsel %vm451_vm3, %v1594_v23, %v1608_v17 }
 0xf08   :  { %v1601_v26 = vadd.f32 %v1600_v24, %v1599_v21 }
 0xf0a   :  { %v1610_v33 = vsel %vm453_vm4, %v1601_v26, %v1609_v27  ;;  %v5356_v26 = vld [vmem:[%s5731_s6] ss:$0 sm:$0xff] }
 0xf0b   :  { %4345 = vmatmul.mubr.msk.f32.vlgmr.msra.gmra.mrb[8].mxu1 %vm90_vm1, %v1610_v33 }
 0xf0c   :  { %4526 = vmatpush3.bf16.msra.mxu1 %v5111_v58  ;;  %4351 = vmatprep.mubr.msk.f32.mxu1 %vm4837_vm0, %v4838_v4 }
 0xf0d   :  { %4533 = vmatprep.subr.bf16.mxu1 %v4836_v3 }
 0xf0f   :  { %4352 = vmatmul.mubr.msk.f32.vlgmr.msra.gmra.mrb[10].mxu1 %vm90_vm1, %v5251_v55 }
 0xf10   :  { %4535 = vmatpush3.bf16.msra.mxu1 %v5101_v56  ;;  %4372 = vmatprep.mubr.msk.f32.mxu1 %vm4837_vm0, %v4838_v4 }
 0xf11   :  { %4536 = vmatprep.subr.bf16.mxu1 %v4836_v3 }
 0xfde   :  { %v1679_v31 = vpop.f32.mrb[8].mxu1 }
 0xfdf   :  { %v1680_v32 = vadd.f32 %v5141_v59, %v1679_v31  ;;  %v4346_v34 = vpop.f32.mrb[9].mxu1 }
 0xfe1   :  { %v1684_v36 = vadd.f32 %v1683_v29, %v1680_v32 }
 0xfe2   :  { %v1751_v37 = vpop.f32.mrb[10].mxu1 }
 0xfe3   :  { %1757 = vperm.xlu0 %4610, %v1684_v36   ;;  %v4353_v55 = vpop.f32.mrb[11].mxu1  ;;  %v1752_v43 = vadd.f32 %v5145_v1, %v1751_v37 }
0x1062   :  { %v1758_v41 = vpop.permute.xlu0 %1757 }
0x1063   :  { %v1760_v44 = vmul.f32 %v5150_v2, %v1758_v41 }
0x1065   :  { %v1761_v46 = vadd.f32 %v1760_v44, %v1752_v43 }
0x1067   :  { %4681 = vtanh.f32 %v1761_v46  ;;  %v4131_v48 = vmul.f32 -1.442695, %v1761_v46 }
0x1069   :  { %4683 = vpow2.f32 %v4131_v48 }
0x1071   :  { %v4682_v47 = vpop.eup %4681 }
0x1072   :  { %1771 = vrot.lane.b32.xlu1 %v4682_v47, %s4841_s17 }
0x1073   :  { %v4684_v22 = vpop.eup %4683 }
0x1074   :  { %v1765_v52 = vadd.f32 1.0, %v4684_v22 }
0x1076   :  { %4685 = vrcp.f32 %v1765_v52 }
0x1080   :  { %v4686_v59 = vpop.eup %4685 }
0x1081   :  { %v1769_v50 = vmul.f32 %v4686_v59, %v5239_v51 }
0x10e4   :  { %v1772_v53 = vpop.permute.xlu1 %1771 }
0x10e5   :  { %v1774_v20 = vmul.f32 %v4686_v59, %v1772_v53 }
0x10e7   :  { %1776 = vrot.lane.b32.xlu0 %v1774_v20, %s4842_s25 }
0x1159   :  { %v1777_v1 = vpop.permute.xlu0 %1776 }
0x115a   :  { %v5322_v54 = vadd.f32 %v1777_v1, %v1769_v50 }
0x115c   :  { %4687 = vtanh.f32 %v5322_v54  ;;  %1787 = vrot.lane.b32.xlu0 %v5322_v54, %s4844_s26 }
0x1166   :  { %v4688_v2 = vpop.eup %4687 }
0x1167   :  { %1782 = vrot.lane.b32.xlu1 %v4688_v2, %s4843_s4 }
0x11ce   :  { %v1788_v57 = vpop.permute.xlu0 %1787 }
0x11cf   :  { %4359 = vmatmul.mubr.msk.f32.vlgmr.msra.gmra.mrb[10].mxu0 %vm90_vm1, %v1788_v57 }
0x11d0   :  { %4532 = vmatpush3.bf16.msra.mxu0 %v4991_v14  ;;  %4365 = vmatprep.mubr.msk.f32.mxu0 %vm4837_vm0, %v4838_v4 }
0x11d1   :  { %4539 = vmatprep.subr.bf16.mxu0 %v4836_v3 }
0x11d9   :  { %v1783_v51 = vpop.permute.xlu1 %1782 }
0x11da   :  { %v1785_v60 = vmul.f32 %v4686_v59, %v1783_v51 }
0x11dc   :  { %1862 = vrot.lane.b32.xlu1 %v1785_v60, %s4845_s27 }
0x124e   :  { %v5334_v15 = vpop.permute.xlu1 %1862 }
0x124f   :  { %4366 = vmatmul.mubr.msk.f32.vlgmr.msra.gmra.mrb[10].mxu0 %vm90_vm1, %v5334_v15 }
0x1250   :  { %4541 = vmatpush3.bf16.msra.mxu0 %v4974_v8  ;;  %4386 = vmatprep.mubr.msk.f32.mxu0 %vm4837_vm0, %v4838_v4 }
0x1251   :  { %4542 = vmatprep.subr.bf16.mxu0 %v4836_v3 }
0x1322   :  { %v1932_v13 = vpop.f32.mrb[10].mxu0 }
0x1323   :  { %v1943_v61 = vrot.slane %v1932_v13, %v5031_v25  ;;  %v4367_v62 = vpop.f32.mrb[11].mxu0 }
0x1325   :  { %v1944_v63 = vcombine.high %v1943_v61, %v1943_v61  ;;  %v1951_v0 = vrot.slane %v1943_v61, %v5031_v25 }
0x1327   :  { %v1958_v5 = vrot.slane %v1944_v63, %v5031_v25  ;;  %v1959_v6 = vcombine.high %v1951_v0, %v1951_v0  ;;  %v1964_v7 = vrot.slane %v1951_v0, %v5035_v30 }
0x1329   :  { %v1960_v16 = vcombine.high %v1958_v5, %v1958_v5  ;;  %v1968_v9 = vrot.slane %v1958_v5, %v5035_v30  ;;  %v1972_v10 = vrot.slane %v1959_v6, %v5035_v30  ;;  %v1981_v12 = vadd.f32 %v1964_v7, %v5041_v35 }
0x132b   :  { %v1976_v18 = vrot.slane %v1960_v16, %v5035_v30  ;;  %v1982_v19 = vadd.f32 %v1968_v9, %v5047_v40  ;;  %v1983_v21 = vadd.f32 %v1972_v10, %v5045_v39  ;;  %4689 = vtanh.f32 %v1981_v12 }
0x132d   :  { %v1984_v23 = vadd.f32 %v1976_v18, %v5052_v45  ;;  %4691 = vtanh.f32 %v1982_v19 }
0x132e   :  { %4693 = vtanh.f32 %v1983_v21 }
0x132f   :  { %4695 = vtanh.f32 %v1984_v23 }
0x1335   :  { %v4690_v24 = vpop.eup %4689 }
0x1336   :  { %v1989_v17 = vmul.f32 %v5356_v26, %v4690_v24 }
0x1337   :  { %v4692_v27 = vpop.eup %4691 }
0x1338   :  { %v4694_v33 = vpop.eup %4693  ;;  %v1993_v28 = vsel %vm90_vm1, %v1989_v17, 0.0  ;;  %v1990_v29 = vmul.f32 %v5356_v26, %v4692_v27  ;;  %v5381_v27 = vld [vmem:[%s5751_s24 + $0x8] sm:$0xff] }
0x1339   :  { %v4696_v31 = vpop.eup %4695  ;;  %1994 = vadd.xlane.f32.xlu0 %v1993_v28  ;;  %v1991_v32 = vmul.f32 %v5356_v26, %v4694_v33  ;;  %v5387_v28 = vld [vmem:[%s5751_s24] sm:$0xff] }
0x133a   :  { %v1996_v34 = vsel %vm90_vm1, %v1990_v29, 0.0  ;;  %v1992_v37 = vmul.f32 %v5356_v26, %v4696_v31 }
0x133b   :  { %1997 = vadd.xlane.f32.xlu1 %v1996_v34  ;;  %v1999_v36 = vsel %vm90_vm1, %v1991_v32, 0.0 }
0x133c   :  { %v2002_v55 = vsel %vm90_vm1, %v1992_v37, 0.0 }
0x133d   :  { %2000 = vadd.xlane.f32.xlu0 %v1999_v36 }
0x1341   :  { %2003 = vadd.xlane.f32.xlu0 %v2002_v55 }
0x13c6   :  { %v1995_v41 = vpop.xlane.xlu0 %1994 }
0x13c7   :  { %v2005_v43 = vmul.f32 1.442695, %v1995_v41  ;;  %v5395_v41 = vld [vmem:[%s5751_s24 + $0x10] sm:$0xff] }
0x13c8   :  { %v1998_v44 = vpop.xlane.xlu1 %1997 }
0x13c9   :  { %v2007_v46 = vmul.f32 1.442695, %v1998_v44  ;;  %4697 = vpow2.f32 %v2005_v43  ;;  %v5401_v44 = vld [vmem:[%s5751_s24 + $0x18] sm:$0xff] }
0x13ca   :  { %v2001_v47 = vpop.xlane.xlu0 %2000 }
0x13cb   :  { %4699 = vpow2.f32 %v2007_v46  ;;  %v2009_v48 = vmul.f32 1.442695, %v2001_v47 }
0x13cd   :  { %4701 = vpow2.f32 %v2009_v48 }
0x13ce   :  { %v2004_v22 = vpop.xlane.xlu0 %2003 }
0x13cf   :  { %v2011_v52 = vmul.f32 1.442695, %v2004_v22 }
0x13d1   :  { %4703 = vpow2.f32 %v2011_v52 }
0x13d3   :  { %v4698_v59 = vpop.eup %4697 }
0x13d4   :  { %v2020_v1 = vrot.slane %v4698_v59, %v5072_v11 }
0x13d5   :  { %v4700_v53 = vpop.eup %4699 }
0x13d6   :  { %v2024_v20 = vrot.slane %v4700_v53, %v5072_v11 }
0x13d7   :  { %v4702_v50 = vpop.eup %4701 }
0x13d8   :  { %v2028_v2 = vrot.slane %v4702_v50, %v5072_v11  ;;  %v2033_v57 = vsel %vm449_vm2, %v2024_v20, %v2020_v1 }
0x13da   :  { %v2034_v13 = vsel %vm451_vm3, %v2028_v2, %v2033_v57 }
0x13db   :  { %v4704_v51 = vpop.eup %4703 }
0x13dc   :  { %v2032_v60 = vrot.slane %v4704_v51, %v5072_v11 }
0x13de   :  { %v2035_v61 = vsel %vm453_vm4, %v2032_v60, %v2034_v13 }
0x13df   :  { %v2037_v62 = vsel %vm456_vm5, %v2035_v61, 0.0 }
0x13e0   :  { %2038 = vadd.xlane.f32.xlu1 %v2037_v62 }
0x146d   :  { %v2039_v63 = vpop.xlane.xlu1 %2038 }
0x146e   :  { %4705 = vrcp.f32 %v2039_v63 }
0x1478   :  { %v4706_v0 = vpop.eup %4705 }
0x1479   :  { %v2041_v5 = vmul.f32 %v4706_v0, %v2039_v63 }
0x147b   :  { %v2042_v6 = vsub.f32 2.0, %v2041_v5 }
0x147d   :  { %v2043_v7 = vmul.f32 %v4706_v0, %v2042_v6 }
0x147f   :  { %v2052_v16 = vrot.slane %v2043_v7, %v5083_v38  ;;  %v2048_v9 = vrot.slane %v2043_v7, %v5035_v30  ;;  %v2056_v18 = vrot.slane %v2043_v7, %v5086_v42  ;;  %v2060_v19 = vrot.slane %v2043_v7, %v5092_v49 }
0x1481   :  { %v2066_v10 = vmul.f32 %v4700_v53, %v2052_v16  ;;  %v2065_v12 = vmul.f32 %v4698_v59, %v2048_v9  ;;  %v2067_v21 = vmul.f32 %v4702_v50, %v2056_v18  ;;  %v2068_v23 = vmul.f32 %v4704_v51, %v2060_v19 }
0x1483   :  { %2076 = vperm.xlu1 %4609, %v2066_v10   ;;  %2071 = vperm.xlu0 %4610, %v2065_v12  }
0x1487   :  { %2081 = vperm.xlu1 %4609, %v2067_v21   ;;  %2086 = vperm.xlu0 %4610, %v2068_v23   ;;  %v4134_v21 = vld [vmem:[%s5752_s23 + $0xc] sm:$0xf]  ;;  %v5423_v23 = vld [vmem:[#allocation2] ss:$0 sm:$0xff] }
0x1502   :  { %v2077_v24 = vpop.permute.xlu1 %2076  ;;  %v2072_v17 = vpop.permute.xlu0 %2071 }
0x1503   :  { %v2090_v33 = vmul.f32 %v5381_v27, %v2077_v24  ;;  %v2089_v29 = vmul.f32 %v5387_v28, %v2072_v17  ;;  %v2202_v24 = vmul.f32 %v5423_v23, %v4134_v21 }
0x1505   :  { %v2100_v31 = vsel %vm90_vm1, %v2090_v33, 0.0  ;;  %v2093_v32 = vsel %vm90_vm1, %v2089_v29, 0.0  ;;  %v5426_v33 = vld [vmem:[#allocation3] ss:$0 sm:$0xff] }
0x1506   :  { %v2101_v34 = vrot.slane %v2100_v31, 4  ;;  %v2094_v36 = vrot.slane %v2093_v32, 4  ;;  %v2082_v37 = vpop.permute.xlu1 %2081  ;;  %v2087_v55 = vpop.permute.xlu0 %2086 }
0x1507   :  { %v2091_v43 = vmul.f32 %v5395_v41, %v2082_v37  ;;  %v2092_v46 = vmul.f32 %v5401_v44, %v2087_v55  ;;  %v5429_v37 = vld [vmem:[#allocation5] ss:$0 sm:$0xff] }
0x1508   :  { %v2102_v47 = vadd.f32 %v2101_v34, %v2100_v31  ;;  %v2095_v48 = vadd.f32 %v2094_v36, %v2093_v32 }
0x1509   :  { %v2107_v22 = vsel %vm90_vm1, %v2091_v43, 0.0  ;;  %v2114_v52 = vsel %vm90_vm1, %v2092_v46, 0.0  ;;  %v5435_v43 = vld [vmem:[%s5734_s10] ss:$0 sm:$0xff] }
0x150a   :  { %v2103_v59 = vrot.slane %v2102_v47, 2  ;;  %v2096_v53 = vrot.slane %v2095_v48, 2  ;;  %v2108_v20 = vrot.slane %v2107_v22, 4  ;;  %v2115_v50 = vrot.slane %v2114_v52, 4 }
0x150c   :  { %v2104_v1 = vadd.f32 %v2103_v59, %v2102_v47  ;;  %v2097_v2 = vadd.f32 %v2096_v53, %v2095_v48  ;;  %v2109_v57 = vadd.f32 %v2108_v20, %v2107_v22  ;;  %v2116_v51 = vadd.f32 %v2115_v50, %v2114_v52 }
0x150e   :  { %v2105_v60 = vrot.slane %v2104_v1, 1  ;;  %v2098_v13 = vrot.slane %v2097_v2, 1  ;;  %v2110_v61 = vrot.slane %v2109_v57, 2  ;;  %v2117_v62 = vrot.slane %v2116_v51, 2 }
0x1510   :  { %v2111_v63 = vadd.f32 %v2110_v61, %v2109_v57  ;;  %v2118_v0 = vadd.f32 %v2117_v62, %v2116_v51  ;;  %v2106_v5 = vadd.f32 %v2105_v60, %v2104_v1  ;;  %v2099_v6 = vadd.f32 %v2098_v13, %v2097_v2 }
0x1512   :  { %v2112_v7 = vrot.slane %v2111_v63, 1  ;;  %v2119_v16 = vrot.slane %v2118_v0, 1  ;;  %v2127_v12 = vsel %vm449_vm2, %v2106_v5, %v2099_v6 }
0x1514   :  { %v2113_v9 = vadd.f32 %v2112_v7, %v2111_v63  ;;  %v2120_v10 = vadd.f32 %v2119_v16, %v2118_v0 }
0x1516   :  { %v2128_v18 = vsel %vm451_vm3, %v2113_v9, %v2127_v12 }
0x1517   :  { %v2129_v19 = vsel %vm453_vm4, %v2120_v10, %v2128_v18 }
0x1518   :  { %4373 = vmatmul.mubr.msk.f32.vlgmr.msra.gmra.mrb[12].mxu1 %vm90_vm1, %v2129_v19 }
0x1519   :  { %4538 = vmatpush3.bf16.msra.mxu1 %v5111_v58  ;;  %4379 = vmatprep.mubr.msk.f32.mxu1 %vm4837_vm0, %v4838_v4 }
0x151a   :  { %4545 = vmatprep.subr.bf16.mxu1 %v4836_v3 }
0x151c   :  { %4380 = vmatmul.mubr.msk.f32.vlgmr.msra.gmra.mrb[14].mxu1 %vm90_vm1, %v5334_v15 }
0x151d   :  { %4547 = vmatpush3.bf16.msra.mxu1 %v5101_v56  ;;  %4400 = vmatprep.mubr.msk.f32.mxu1 %vm4837_vm0, %v4838_v4 }
0x151e   :  { %4548 = vmatprep.subr.bf16.mxu1 %v4836_v3 }
0x15eb   :  { %v2198_v17 = vpop.f32.mrb[12].mxu1 }
0x15ec   :  { %v2199_v15 = vadd.f32 %v5426_v33, %v2198_v17  ;;  %v4374_v29 = vpop.f32.mrb[13].mxu1 }
0x15ee   :  { %v2203_v31 = vadd.f32 %v2202_v24, %v2199_v15 }
0x15ef   :  { %v2270_v32 = vpop.f32.mrb[14].mxu1 }
0x15f0   :  { %2276 = vperm.xlu1 %4609, %v2203_v31   ;;  %v4381_v34 = vpop.f32.mrb[15].mxu1  ;;  %v2271_v55 = vadd.f32 %v5429_v37, %v2270_v32 }
0x166f   :  { %v2277_v36 = vpop.permute.xlu1 %2276 }
0x1670   :  { %v2279_v46 = vmul.f32 %v5435_v43, %v2277_v36 }
0x1672   :  { %v2280_v47 = vadd.f32 %v2279_v46, %v2271_v55 }
0x1674   :  { %4707 = vtanh.f32 %v2280_v47  ;;  %v4137_v22 = vmul.f32 -1.442695, %v2280_v47 }
0x1676   :  { %4709 = vpow2.f32 %v4137_v22 }
0x167e   :  { %v4708_v48 = vpop.eup %4707 }
0x167f   :  { %2290 = vrot.lane.b32.xlu0 %v4708_v48, %s4841_s17 }
0x1680   :  { %v4710_v52 = vpop.eup %4709 }
0x1681   :  { %v2284_v59 = vadd.f32 1.0, %v4710_v52 }
0x1683   :  { %4711 = vrcp.f32 %v2284_v59 }
0x168d   :  { %v4712_v53 = vpop.eup %4711 }
0x168e   :  { %v2288_v1 = vmul.f32 %v4712_v53, %v5322_v54 }
0x16f1   :  { %v2291_v20 = vpop.permute.xlu0 %2290 }
0x16f2   :  { %v2293_v50 = vmul.f32 %v4712_v53, %v2291_v20 }
0x16f4   :  { %2295 = vrot.lane.b32.xlu1 %v2293_v50, %s4842_s25 }
0x1766   :  { %v2296_v2 = vpop.permute.xlu1 %2295 }
0x1767   :  { %v5441_v57 = vadd.f32 %v2296_v2, %v2288_v1 }
0x1769   :  { %4713 = vtanh.f32 %v5441_v57  ;;  %2306 = vrot.lane.b32.xlu1 %v5441_v57, %s4844_s26 }
0x1773   :  { %v4714_v51 = vpop.eup %4713 }
0x1774   :  { %2301 = vrot.lane.b32.xlu0 %v4714_v51, %s4843_s4 }
0x17db   :  { %v2307_v60 = vpop.permute.xlu1 %2306 }
0x17dc   :  { %4387 = vmatmul.mubr.msk.f32.vlgmr.msra.gmra.mrb[12].mxu0 %vm90_vm1, %v2307_v60 }
0x17dd   :  { %4544 = vmatpush3.bf16.msra.mxu0 %v4991_v14  ;;  %4393 = vmatprep.mubr.msk.f32.mxu0 %vm4837_vm0, %v4838_v4 }
0x17de   :  { %4551 = vmatprep.subr.bf16.mxu0 %v4836_v3 }
0x17e6   :  { %v2302_v54 = vpop.permute.xlu0 %2301 }
0x17e7   :  { %v2304_v13 = vmul.f32 %v4712_v53, %v2302_v54 }
0x17e9   :  { %2381 = vrot.lane.b32.xlu0 %v2304_v13, %s4845_s27 }
0x185b   :  { %v5453_v61 = vpop.permute.xlu0 %2381 }
0x185c   :  { %4394 = vmatmul.mubr.msk.f32.vlgmr.msra.gmra.mrb[12].mxu0 %vm90_vm1, %v5453_v61 }
0x185d   :  { %4553 = vmatpush3.bf16.msra.mxu0 %v4974_v8  ;;  %4414 = vmatprep.mubr.msk.f32.mxu0 %vm4837_vm0, %v4838_v4 }
0x185e   :  { %4554 = vmatprep.subr.bf16.mxu0 %v4836_v3 }
0x192f   :  { %v2451_v62 = vpop.f32.mrb[12].mxu0 }
0x1930   :  { %v2462_v63 = vrot.slane %v2451_v62, %v5031_v25  ;;  %v4395_v0 = vpop.f32.mrb[13].mxu0 }
0x1932   :  { %v2463_v5 = vcombine.high %v2462_v63, %v2462_v63  ;;  %v2470_v6 = vrot.slane %v2462_v63, %v5031_v25 }
0x1934   :  { %v2477_v7 = vrot.slane %v2463_v5, %v5031_v25  ;;  %v2478_v16 = vcombine.high %v2470_v6, %v2470_v6  ;;  %v2483_v9 = vrot.slane %v2470_v6, %v5035_v30 }
0x1936   :  { %v2479_v10 = vcombine.high %v2477_v7, %v2477_v7  ;;  %v2487_v12 = vrot.slane %v2477_v7, %v5035_v30  ;;  %v2491_v18 = vrot.slane %v2478_v16, %v5035_v30  ;;  %v2500_v19 = vadd.f32 %v2483_v9, %v5041_v35 }
0x1938   :  { %v2495_v21 = vrot.slane %v2479_v10, %v5035_v30  ;;  %v2501_v24 = vadd.f32 %v2487_v12, %v5047_v40  ;;  %v2502_v17 = vadd.f32 %v2491_v18, %v5045_v39  ;;  %4715 = vtanh.f32 %v2500_v19 }
0x193a   :  { %v2503_v15 = vadd.f32 %v2495_v21, %v5052_v45  ;;  %4717 = vtanh.f32 %v2501_v24 }
0x193b   :  { %4719 = vtanh.f32 %v2502_v17 }
0x193c   :  { %4721 = vtanh.f32 %v2503_v15 }
0x1942   :  { %v4716_v29 = vpop.eup %4715 }
0x1943   :  { %v2508_v31 = vmul.f32 %v5356_v26, %v4716_v29 }
0x1944   :  { %v4718_v32 = vpop.eup %4717 }
0x1945   :  { %v4720_v34 = vpop.eup %4719  ;;  %v2512_v36 = vsel %vm90_vm1, %v2508_v31, 0.0  ;;  %v2509_v55 = vmul.f32 %v5356_v26, %v4718_v32 }
0x1946   :  { %v4722_v46 = vpop.eup %4721  ;;  %2513 = vadd.xlane.f32.xlu1 %v2512_v36  ;;  %v2510_v22 = vmul.f32 %v5356_v26, %v4720_v34 }
0x1947   :  { %v2515_v47 = vsel %vm90_vm1, %v2509_v55, 0.0  ;;  %v2511_v48 = vmul.f32 %v5356_v26, %v4722_v46 }
0x1948   :  { %2516 = vadd.xlane.f32.xlu0 %v2515_v47  ;;  %v2518_v59 = vsel %vm90_vm1, %v2510_v22, 0.0 }
0x1949   :  { %v2521_v52 = vsel %vm90_vm1, %v2511_v48, 0.0 }
0x194a   :  { %2522 = vadd.xlane.f32.xlu1 %v2521_v52 }
0x194c   :  { %2519 = vadd.xlane.f32.xlu0 %v2518_v59 }
0x19d3   :  { %v2514_v53 = vpop.xlane.xlu1 %2513 }
0x19d4   :  { %v2524_v20 = vmul.f32 1.442695, %v2514_v53 }
0x19d5   :  { %v2517_v50 = vpop.xlane.xlu0 %2516 }
0x19d6   :  { %v2526_v1 = vmul.f32 1.442695, %v2517_v50 }
0x19d7   :  { %v2523_v2 = vpop.xlane.xlu1 %2522 }
0x19d8   :  { %4723 = vpow2.f32 %v2526_v1  ;;  %v2530_v51 = vmul.f32 1.442695, %v2523_v2 }
0x19d9   :  { %4725 = vpow2.f32 %v2524_v20  ;;  %v2520_v60 = vpop.xlane.xlu0 %2519 }
0x19da   :  { %v2528_v54 = vmul.f32 1.442695, %v2520_v60  ;;  %4727 = vpow2.f32 %v2530_v51 }
0x19dc   :  { %4729 = vpow2.f32 %v2528_v54 }
0x19e2   :  { %v4724_v13 = vpop.eup %4723 }
0x19e3   :  { %v4726_v62 = vpop.eup %4725  ;;  %v2543_v63 = vrot.slane %v4724_v13, %v5072_v11 }
0x19e4   :  { %v4728_v0 = vpop.eup %4727  ;;  %v2539_v6 = vrot.slane %v4726_v62, %v5072_v11 }
0x19e5   :  { %v2551_v16 = vrot.slane %v4728_v0, %v5072_v11 }
0x19e6   :  { %v4730_v5 = vpop.eup %4729  ;;  %v2552_v9 = vsel %vm449_vm2, %v2543_v63, %v2539_v6 }
0x19e7   :  { %v2547_v7 = vrot.slane %v4730_v5, %v5072_v11 }
0x19e9   :  { %v2553_v10 = vsel %vm451_vm3, %v2547_v7, %v2552_v9 }
0x19ea   :  { %v2554_v12 = vsel %vm453_vm4, %v2551_v16, %v2553_v10 }
0x19eb   :  { %v2556_v18 = vsel %vm456_vm5, %v2554_v12, 0.0 }
0x19ec   :  { %2557 = vadd.xlane.f32.xlu0 %v2556_v18 }
0x1a79   :  { %v2558_v19 = vpop.xlane.xlu0 %2557 }
0x1a7a   :  { %4731 = vrcp.f32 %v2558_v19 }
0x1a84   :  { %v4732_v21 = vpop.eup %4731 }
0x1a85   :  { %v2560_v24 = vmul.f32 %v4732_v21, %v2558_v19 }
0x1a87   :  { %v2561_v17 = vsub.f32 2.0, %v2560_v24 }
0x1a89   :  { %v2562_v15 = vmul.f32 %v4732_v21, %v2561_v17 }
0x1a8b   :  { %v2571_v29 = vrot.slane %v2562_v15, %v5083_v38  ;;  %v2567_v31 = vrot.slane %v2562_v15, %v5035_v30  ;;  %v2575_v36 = vrot.slane %v2562_v15, %v5086_v42  ;;  %v2579_v46 = vrot.slane %v2562_v15, %v5092_v49 }
0x1a8d   :  { %v2585_v32 = vmul.f32 %v4724_v13, %v2571_v29  ;;  %v2584_v34 = vmul.f32 %v4726_v62, %v2567_v31  ;;  %v2586_v55 = vmul.f32 %v4730_v5, %v2575_v36  ;;  %v2587_v47 = vmul.f32 %v4728_v0, %v2579_v46 }
0x1a8f   :  { %2595 = vperm.xlu0 %4610, %v2585_v32   ;;  %2590 = vperm.xlu1 %4609, %v2584_v34  }
0x1a93   :  { %2600 = vperm.xlu1 %4609, %v2586_v55  }
0x1a97   :  { %2605 = vperm.xlu1 %4609, %v2587_v47  }
0x1b0e   :  { %v2596_v48 = vpop.permute.xlu0 %2595  ;;  %v2591_v22 = vpop.permute.xlu1 %2590 }
0x1b0f   :  { %v2609_v52 = vmul.f32 %v5381_v27, %v2596_v48  ;;  %v2608_v59 = vmul.f32 %v5387_v28, %v2591_v22 }
0x1b11   :  { %v2619_v53 = vsel %vm90_vm1, %v2609_v52, 0.0  ;;  %v2612_v20 = vsel %vm90_vm1, %v2608_v59, 0.0  ;;  %v4140_v52 = vld [vmem:[%s5752_s23 + $0x10] sm:$0xf] }
0x1b12   :  { %v2620_v50 = vrot.slane %v2619_v53, 4  ;;  %v2613_v1 = vrot.slane %v2612_v20, 4  ;;  %v2601_v2 = vpop.permute.xlu1 %2600  ;;  %v2721_v59 = vmul.f32 %v5423_v23, %v4140_v52 }
0x1b13   :  { %v2610_v51 = vmul.f32 %v5395_v41, %v2601_v2 }
0x1b14   :  { %v2621_v60 = vadd.f32 %v2620_v50, %v2619_v53  ;;  %v2614_v54 = vadd.f32 %v2613_v1, %v2612_v20 }
0x1b15   :  { %v2626_v13 = vsel %vm90_vm1, %v2610_v51, 0.0 }
0x1b16   :  { %v2622_v62 = vrot.slane %v2621_v60, 2  ;;  %v2615_v63 = vrot.slane %v2614_v54, 2  ;;  %v2627_v0 = vrot.slane %v2626_v13, 4  ;;  %v2606_v5 = vpop.permute.xlu1 %2605 }
0x1b17   :  { %v2611_v6 = vmul.f32 %v5401_v44, %v2606_v5 }
0x1b18   :  { %v2623_v7 = vadd.f32 %v2622_v62, %v2621_v60  ;;  %v2616_v16 = vadd.f32 %v2615_v63, %v2614_v54  ;;  %v2628_v9 = vadd.f32 %v2627_v0, %v2626_v13 }
0x1b19   :  { %v2633_v10 = vsel %vm90_vm1, %v2611_v6, 0.0 }
0x1b1a   :  { %v2629_v12 = vrot.slane %v2628_v9, 2  ;;  %v2634_v18 = vrot.slane %v2633_v10, 4  ;;  %v2624_v19 = vrot.slane %v2623_v7, 1  ;;  %v2617_v21 = vrot.slane %v2616_v16, 1 }
0x1b1c   :  { %v2630_v24 = vadd.f32 %v2629_v12, %v2628_v9  ;;  %v2635_v17 = vadd.f32 %v2634_v18, %v2633_v10  ;;  %v2625_v31 = vadd.f32 %v2624_v19, %v2623_v7  ;;  %v2618_v32 = vadd.f32 %v2617_v21, %v2616_v16 }
0x1b1e   :  { %v2631_v15 = vrot.slane %v2630_v24, 1  ;;  %v2636_v29 = vrot.slane %v2635_v17, 2  ;;  %v2646_v47 = vsel %vm449_vm2, %v2625_v31, %v2618_v32 }
0x1b20   :  { %v2637_v34 = vadd.f32 %v2636_v29, %v2635_v17  ;;  %v2632_v36 = vadd.f32 %v2631_v15, %v2630_v24 }
0x1b22   :  { %v2638_v55 = vrot.slane %v2637_v34, 1  ;;  %v2647_v48 = vsel %vm451_vm3, %v2632_v36, %v2646_v47 }
0x1b24   :  { %v2639_v46 = vadd.f32 %v2638_v55, %v2637_v34 }
0x1b26   :  { %v2648_v22 = vsel %vm453_vm4, %v2639_v46, %v2647_v48 }
0x1b27   :  { %4401 = vmatmul.mubr.msk.f32.vlgmr.msra.gmra.mrb[16].mxu1 %vm90_vm1, %v2648_v22 }
0x1b28   :  { %4550 = vmatpush3.bf16.msra.mxu1 %v5111_v58  ;;  %4407 = vmatprep.mubr.msk.f32.mxu1 %vm4837_vm0, %v4838_v4 }
0x1b29   :  { %4557 = vmatprep.subr.bf16.mxu1 %v4836_v3 }
0x1b2b   :  { %4408 = vmatmul.mubr.msk.f32.vlgmr.msra.gmra.mrb[18].mxu1 %vm90_vm1, %v5453_v61 }
0x1b2c   :  { %4559 = vmatpush3.bf16.msra.mxu1 %v5101_v56  ;;  %4428 = vmatprep.mubr.msk.f32.mxu1 %vm4837_vm0, %v4838_v4 }
0x1b2d   :  { %4560 = vmatprep.subr.bf16.mxu1 %v4836_v3 }
0x1bfa   :  { %v2717_v53 = vpop.f32.mrb[16].mxu1 }
0x1bfb   :  { %v2718_v20 = vadd.f32 %v5426_v33, %v2717_v53  ;;  %v4402_v50 = vpop.f32.mrb[17].mxu1 }
0x1bfd   :  { %v2722_v1 = vadd.f32 %v2721_v59, %v2718_v20 }
0x1bfe   :  { %v2789_v2 = vpop.f32.mrb[18].mxu1 }
0x1bff   :  { %2795 = vperm.xlu0 %4610, %v2722_v1   ;;  %v4409_v61 = vpop.f32.mrb[19].mxu1  ;;  %v2790_v60 = vadd.f32 %v5429_v37, %v2789_v2 }
0x1c7e   :  { %v2796_v51 = vpop.permute.xlu0 %2795 }
0x1c7f   :  { %v2798_v54 = vmul.f32 %v5435_v43, %v2796_v51 }
0x1c81   :  { %v2799_v13 = vadd.f32 %v2798_v54, %v2790_v60 }
0x1c83   :  { %4733 = vtanh.f32 %v2799_v13  ;;  %v4143_v63 = vmul.f32 -1.442695, %v2799_v13 }
0x1c85   :  { %4735 = vpow2.f32 %v4143_v63 }
0x1c8d   :  { %v4734_v62 = vpop.eup %4733 }
0x1c8e   :  { %2809 = vrot.lane.b32.xlu1 %v4734_v62, %s4841_s17 }
0x1c8f   :  { %v4736_v0 = vpop.eup %4735 }
0x1c90   :  { %v2803_v5 = vadd.f32 1.0, %v4736_v0 }
0x1c92   :  { %4737 = vrcp.f32 %v2803_v5 }
0x1c9c   :  { %v4738_v6 = vpop.eup %4737 }
0x1c9d   :  { %v2807_v9 = vmul.f32 %v4738_v6, %v5441_v57 }
0x1d00   :  { %v2810_v7 = vpop.permute.xlu1 %2809 }
0x1d01   :  { %v2812_v16 = vmul.f32 %v4738_v6, %v2810_v7 }
0x1d03   :  { %2814 = vrot.lane.b32.xlu0 %v2812_v16, %s4842_s25 }
0x1d75   :  { %v2815_v10 = vpop.permute.xlu0 %2814 }
0x1d76   :  { %v5524_v12 = vadd.f32 %v2815_v10, %v2807_v9 }
0x1d78   :  { %4739 = vtanh.f32 %v5524_v12  ;;  %2825 = vrot.lane.b32.xlu0 %v5524_v12, %s4844_s26 }
0x1d82   :  { %v4740_v18 = vpop.eup %4739 }
0x1d83   :  { %2820 = vrot.lane.b32.xlu1 %v4740_v18, %s4843_s4 }
0x1dea   :  { %v2826_v19 = vpop.permute.xlu0 %2825 }
0x1deb   :  { %4415 = vmatmul.mubr.msk.f32.vlgmr.msra.gmra.mrb[14].mxu0 %vm90_vm1, %v2826_v19 }
0x1dec   :  { %4556 = vmatpush3.bf16.msra.mxu0 %v4991_v14  ;;  %4421 = vmatprep.mubr.msk.f32.mxu0 %vm4837_vm0, %v4838_v4 }
0x1ded   :  { %4563 = vmatprep.subr.bf16.mxu0 %v4836_v3 }
0x1df5   :  { %v2821_v57 = vpop.permute.xlu1 %2820 }
0x1df6   :  { %v2823_v21 = vmul.f32 %v4738_v6, %v2821_v57 }
0x1df8   :  { %2900 = vrot.lane.b32.xlu1 %v2823_v21, %s4845_s27 }
0x1e6a   :  { %v5536_v24 = vpop.permute.xlu1 %2900 }
0x1e6b   :  { %4422 = vmatmul.mubr.msk.f32.vlgmr.msra.gmra.mrb[14].mxu0 %vm90_vm1, %v5536_v24 }
0x1e6c   :  { %4565 = vmatpush3.bf16.msra.mxu0 %v4974_v8  ;;  %4442 = vmatprep.mubr.msk.f32.mxu0 %vm4837_vm0, %v4838_v4 }
0x1e6d   :  { %4566 = vmatprep.subr.bf16.mxu0 %v4836_v3 }
0x1f3e   :  { %v2970_v17 = vpop.f32.mrb[14].mxu0 }
0x1f3f   :  { %v2981_v15 = vrot.slane %v2970_v17, %v5031_v25  ;;  %v4423_v29 = vpop.f32.mrb[15].mxu0 }
0x1f41   :  { %v2982_v31 = vcombine.high %v2981_v15, %v2981_v15  ;;  %v2989_v32 = vrot.slane %v2981_v15, %v5031_v25 }
0x1f43   :  { %v2996_v34 = vrot.slane %v2982_v31, %v5031_v25  ;;  %v2997_v36 = vcombine.high %v2989_v32, %v2989_v32  ;;  %v3002_v55 = vrot.slane %v2989_v32, %v5035_v30 }
0x1f45   :  { %v2998_v46 = vcombine.high %v2996_v34, %v2996_v34  ;;  %v3006_v8 = vrot.slane %v2996_v34, %v5035_v30  ;;  %v3010_v47 = vrot.slane %v2997_v36, %v5035_v30  ;;  %v3019_v48 = vadd.f32 %v3002_v55, %v5041_v35 }
0x1f47   :  { %v3014_v22 = vrot.slane %v2998_v46, %v5035_v30  ;;  %v3020_v52 = vadd.f32 %v3006_v8, %v5047_v40  ;;  %v3021_v59 = vadd.f32 %v3010_v47, %v5045_v39  ;;  %4741 = vtanh.f32 %v3019_v48 }
0x1f49   :  { %v3022_v53 = vadd.f32 %v3014_v22, %v5052_v45  ;;  %4743 = vtanh.f32 %v3020_v52 }
0x1f4a   :  { %4745 = vtanh.f32 %v3021_v59 }
0x1f4b   :  { %4747 = vtanh.f32 %v3022_v53 }
0x1f51   :  { %v4742_v20 = vpop.eup %4741 }
0x1f52   :  { %v3027_v50 = vmul.f32 %v5356_v26, %v4742_v20 }
0x1f53   :  { %v4744_v1 = vpop.eup %4743 }
0x1f54   :  { %v4746_v2 = vpop.eup %4745  ;;  %v3031_v61 = vsel %vm90_vm1, %v3027_v50, 0.0  ;;  %v3028_v51 = vmul.f32 %v5356_v26, %v4744_v1 }
0x1f55   :  { %v4748_v60 = vpop.eup %4747  ;;  %3032 = vadd.xlane.f32.xlu0 %v3031_v61  ;;  %v3029_v54 = vmul.f32 %v5356_v26, %v4746_v2 }
0x1f56   :  { %v3034_v13 = vsel %vm90_vm1, %v3028_v51, 0.0  ;;  %v3030_v63 = vmul.f32 %v5356_v26, %v4748_v60 }
0x1f57   :  { %3035 = vadd.xlane.f32.xlu1 %v3034_v13  ;;  %v3037_v62 = vsel %vm90_vm1, %v3029_v54, 0.0 }
0x1f58   :  { %v3040_v0 = vsel %vm90_vm1, %v3030_v63, 0.0 }
0x1f59   :  { %3038 = vadd.xlane.f32.xlu0 %v3037_v62 }
0x1f5d   :  { %3041 = vadd.xlane.f32.xlu0 %v3040_v0 }
0x1fe2   :  { %v3033_v5 = vpop.xlane.xlu0 %3032 }
0x1fe3   :  { %v3043_v6 = vmul.f32 1.442695, %v3033_v5 }
0x1fe4   :  { %v3036_v7 = vpop.xlane.xlu1 %3035 }
0x1fe5   :  { %v3045_v16 = vmul.f32 1.442695, %v3036_v7  ;;  %4749 = vpow2.f32 %v3043_v6 }
0x1fe6   :  { %v3039_v9 = vpop.xlane.xlu0 %3038 }
0x1fe7   :  { %4751 = vpow2.f32 %v3045_v16  ;;  %v3047_v10 = vmul.f32 1.442695, %v3039_v9 }
0x1fe9   :  { %4753 = vpow2.f32 %v3047_v10 }
0x1fea   :  { %v3042_v18 = vpop.xlane.xlu0 %3041 }
0x1feb   :  { %v3049_v19 = vmul.f32 1.442695, %v3042_v18 }
0x1fed   :  { %4755 = vpow2.f32 %v3049_v19 }
0x1fef   :  { %v4750_v57 = vpop.eup %4749 }
0x1ff0   :  { %v3058_v29 = vrot.slane %v4750_v57, %v5072_v11 }
0x1ff1   :  { %v4752_v21 = vpop.eup %4751 }
0x1ff2   :  { %v3062_v17 = vrot.slane %v4752_v21, %v5072_v11 }
0x1ff3   :  { %v4754_v15 = vpop.eup %4753 }
0x1ff4   :  { %v3066_v31 = vrot.slane %v4754_v15, %v5072_v11  ;;  %v3071_v32 = vsel %vm449_vm2, %v3062_v17, %v3058_v29 }
0x1ff6   :  { %v3072_v55 = vsel %vm451_vm3, %v3066_v31, %v3071_v32 }
0x1ff7   :  { %v4756_v34 = vpop.eup %4755 }
0x1ff8   :  { %v3070_v36 = vrot.slane %v4756_v34, %v5072_v11 }
0x1ffa   :  { %v3073_v46 = vsel %vm453_vm4, %v3070_v36, %v3072_v55 }
0x1ffb   :  { %v3075_v8 = vsel %vm456_vm5, %v3073_v46, 0.0 }
0x1ffc   :  { %3076 = vadd.xlane.f32.xlu1 %v3075_v8 }
0x2089   :  { %v3077_v47 = vpop.xlane.xlu1 %3076 }
0x208a   :  { %4757 = vrcp.f32 %v3077_v47 }
0x2094   :  { %v4758_v48 = vpop.eup %4757 }
0x2095   :  { %v3079_v22 = vmul.f32 %v4758_v48, %v3077_v47 }
0x2097   :  { %v3080_v52 = vsub.f32 2.0, %v3079_v22 }
0x2099   :  { %v3081_v59 = vmul.f32 %v4758_v48, %v3080_v52 }
0x209b   :  { %v3090_v53 = vrot.slane %v3081_v59, %v5083_v38  ;;  %v3086_v20 = vrot.slane %v3081_v59, %v5035_v30  ;;  %v3094_v2 = vrot.slane %v3081_v59, %v5086_v42  ;;  %v3098_v61 = vrot.slane %v3081_v59, %v5092_v49 }
0x209d   :  { %v3104_v50 = vmul.f32 %v4752_v21, %v3090_v53  ;;  %v3103_v1 = vmul.f32 %v4750_v57, %v3086_v20  ;;  %v3105_v51 = vmul.f32 %v4754_v15, %v3094_v2  ;;  %v3106_v60 = vmul.f32 %v4756_v34, %v3098_v61  ;;  %v4146_v61 = vld [vmem:[%s5752_s23 + $0x14] sm:$0xf] }
0x209f   :  { %3114 = vperm.xlu1 %4609, %v3104_v50   ;;  %3109 = vperm.xlu0 %4610, %v3103_v1  }
0x20a3   :  { %3119 = vperm.xlu1 %4609, %v3105_v51   ;;  %3124 = vperm.xlu0 %4610, %v3106_v60   ;;  %v3240_v51 = vmul.f32 %v5423_v23, %v4146_v61 }
0x211e   :  { %v3115_v54 = vpop.permute.xlu1 %3114  ;;  %v3110_v13 = vpop.permute.xlu0 %3109 }
0x211f   :  { %v3128_v62 = vmul.f32 %v5381_v27, %v3115_v54  ;;  %v3127_v63 = vmul.f32 %v5387_v28, %v3110_v13 }
0x2121   :  { %v3138_v0 = vsel %vm90_vm1, %v3128_v62, 0.0  ;;  %v3131_v5 = vsel %vm90_vm1, %v3127_v63, 0.0 }
0x2122   :  { %v3139_v6 = vrot.slane %v3138_v0, 4  ;;  %v3132_v7 = vrot.slane %v3131_v5, 4  ;;  %v3120_v16 = vpop.permute.xlu1 %3119  ;;  %v3125_v9 = vpop.permute.xlu0 %3124 }
0x2123   :  { %v3129_v10 = vmul.f32 %v5395_v41, %v3120_v16  ;;  %v3130_v18 = vmul.f32 %v5401_v44, %v3125_v9 }
0x2124   :  { %v3140_v19 = vadd.f32 %v3139_v6, %v3138_v0  ;;  %v3133_v57 = vadd.f32 %v3132_v7, %v3131_v5 }
0x2125   :  { %v3145_v21 = vsel %vm90_vm1, %v3129_v10, 0.0  ;;  %v3152_v27 = vsel %vm90_vm1, %v3130_v18, 0.0 }
0x2126   :  { %v3141_v17 = vrot.slane %v3140_v19, 2  ;;  %v3134_v28 = vrot.slane %v3133_v57, 2  ;;  %v3146_v15 = vrot.slane %v3145_v21, 4  ;;  %v3153_v29 = vrot.slane %v3152_v27, 4 }
0x2128   :  { %v3142_v31 = vadd.f32 %v3141_v17, %v3140_v19  ;;  %v3135_v32 = vadd.f32 %v3134_v28, %v3133_v57  ;;  %v3147_v34 = vadd.f32 %v3146_v15, %v3145_v21  ;;  %v3154_v36 = vadd.f32 %v3153_v29, %v3152_v27 }
0x212a   :  { %v3143_v55 = vrot.slane %v3142_v31, 1  ;;  %v3136_v46 = vrot.slane %v3135_v32, 1  ;;  %v3148_v8 = vrot.slane %v3147_v34, 2  ;;  %v3155_v41 = vrot.slane %v3154_v36, 2 }
0x212c   :  { %v3149_v47 = vadd.f32 %v3148_v8, %v3147_v34  ;;  %v3156_v44 = vadd.f32 %v3155_v41, %v3154_v36  ;;  %v3144_v48 = vadd.f32 %v3143_v55, %v3142_v31  ;;  %v3137_v22 = vadd.f32 %v3136_v46, %v3135_v32 }
0x212e   :  { %v3150_v52 = vrot.slane %v3149_v47, 1  ;;  %v3157_v59 = vrot.slane %v3156_v44, 1  ;;  %v3165_v50 = vsel %vm449_vm2, %v3144_v48, %v3137_v22 }
0x2130   :  { %v3151_v53 = vadd.f32 %v3150_v52, %v3149_v47  ;;  %v3158_v20 = vadd.f32 %v3157_v59, %v3156_v44 }
0x2132   :  { %v3166_v1 = vsel %vm451_vm3, %v3151_v53, %v3165_v50 }
0x2133   :  { %v3167_v2 = vsel %vm453_vm4, %v3158_v20, %v3166_v1 }
0x2134   :  { %4429 = vmatmul.mubr.msk.f32.vlgmr.msra.gmra.mrb[20].mxu1 %vm90_vm1, %v3167_v2 }
0x2135   :  { %4562 = vmatpush3.bf16.msra.mxu1 %v5111_v58  ;;  %4435 = vmatprep.mubr.msk.f32.mxu1 %vm4837_vm0, %v4838_v4 }
0x2136   :  { %4569 = vmatprep.subr.bf16.mxu1 %v4836_v3 }
0x2138   :  { %4436 = vmatmul.mubr.msk.f32.vlgmr.msra.gmra.mrb[22].mxu1 %vm90_vm1, %v5536_v24 }
0x2139   :  { %4571 = vmatpush3.bf16.msra.mxu1 %v5101_v56  ;;  %4456 = vmatprep.mubr.msk.f32.mxu1 %vm4837_vm0, %v4838_v4 }
0x213a   :  { %4572 = vmatprep.subr.bf16.mxu1 %v4836_v3 }
0x2207   :  { %v3236_v60 = vpop.f32.mrb[20].mxu1 }
0x2208   :  { %v3237_v54 = vadd.f32 %v5426_v33, %v3236_v60  ;;  %v4430_v13 = vpop.f32.mrb[21].mxu1 }
0x220a   :  { %v3241_v62 = vadd.f32 %v3240_v51, %v3237_v54 }
0x220b   :  { %v3308_v63 = vpop.f32.mrb[22].mxu1 }
0x220c   :  { %3314 = vperm.xlu1 %4609, %v3241_v62   ;;  %v4437_v24 = vpop.f32.mrb[23].mxu1  ;;  %v3309_v0 = vadd.f32 %v5429_v37, %v3308_v63 }
0x228b   :  { %v3315_v56 = vpop.permute.xlu1 %3314 }
0x228c   :  { %v3317_v5 = vmul.f32 %v5435_v43, %v3315_v56 }
0x228e   :  { %v3318_v6 = vadd.f32 %v3317_v5, %v3309_v0 }
0x2290   :  { %4759 = vtanh.f32 %v3318_v6  ;;  %v4149_v16 = vmul.f32 -1.442695, %v3318_v6 }
0x2292   :  { %4761 = vpow2.f32 %v4149_v16 }
0x229a   :  { %v4760_v7 = vpop.eup %4759 }
0x229b   :  { %3328 = vrot.lane.b32.xlu0 %v4760_v7, %s4841_s17 }
0x229c   :  { %v4762_v23 = vpop.eup %4761 }
0x229d   :  { %v3322_v9 = vadd.f32 1.0, %v4762_v23 }
0x229f   :  { %4763 = vrcp.f32 %v3322_v9 }
0x22a9   :  { %v4764_v33 = vpop.eup %4763 }
0x22aa   :  { %v3326_v19 = vmul.f32 %v4764_v33, %v5524_v12 }
0x230d   :  { %v3329_v10 = vpop.permute.xlu0 %3328 }
0x230e   :  { %v3331_v18 = vmul.f32 %v4764_v33, %v3329_v10 }
0x2310   :  { %3333 = vrot.lane.b32.xlu1 %v3331_v18, %s4842_s25 }
0x2382   :  { %v3334_v37 = vpop.permute.xlu1 %3333 }
0x2383   :  { %v5607_v57 = vadd.f32 %v3334_v37, %v3326_v19 }
0x2385   :  { %4765 = vtanh.f32 %v5607_v57  ;;  %3344 = vrot.lane.b32.xlu1 %v5607_v57, %s4844_s26 }
0x238f   :  { %v4766_v43 = vpop.eup %4765 }
0x2390   :  { %3339 = vrot.lane.b32.xlu0 %v4766_v43, %s4843_s4 }
0x23f7   :  { %v3345_v21 = vpop.permute.xlu1 %3344 }
0x23f8   :  { %4443 = vmatmul.mubr.msk.f32.vlgmr.msra.gmra.mrb[16].mxu0 %vm90_vm1, %v3345_v21 }
0x23f9   :  { %4568 = vmatpush3.bf16.msra.mxu0 %v4991_v14  ;;  %4449 = vmatprep.mubr.msk.f32.mxu0 %vm4837_vm0, %v4838_v4 }
0x23fa   :  { %4575 = vmatprep.subr.bf16.mxu0 %v4836_v3 }
0x2402   :  { %v3340_v12 = vpop.permute.xlu0 %3339 }
0x2403   :  { %v3342_v27 = vmul.f32 %v4764_v33, %v3340_v12 }
0x2405   :  { %3419 = vrot.lane.b32.xlu0 %v3342_v27, %s4845_s27 }
0x2477   :  { %v5619_v17 = vpop.permute.xlu0 %3419 }
0x2478   :  { %4450 = vmatmul.mubr.msk.f32.vlgmr.msra.gmra.mrb[16].mxu0 %vm90_vm1, %v5619_v17 }
0x2479   :  { %4470 = vmatprep.mubr.msk.f32.mxu0 %vm4837_vm0, %v4838_v4 }
0x254b   :  { %v3489_v28 = vpop.f32.mrb[16].mxu0 }
0x254c   :  { %v3500_v14 = vrot.slane %v3489_v28, %v5031_v25  ;;  %v4451_v15 = vpop.f32.mrb[17].mxu0 }
0x254e   :  { %v3501_v29 = vcombine.high %v3500_v14, %v3500_v14  ;;  %v3508_v31 = vrot.slane %v3500_v14, %v5031_v25 }
0x2550   :  { %v3515_v32 = vrot.slane %v3501_v29, %v5031_v25  ;;  %v3516_v34 = vcombine.high %v3508_v31, %v3508_v31  ;;  %v3521_v36 = vrot.slane %v3508_v31, %v5035_v30 }
0x2552   :  { %v3517_v55 = vcombine.high %v3515_v32, %v3515_v32  ;;  %v3525_v46 = vrot.slane %v3515_v32, %v5035_v30  ;;  %v3529_v8 = vrot.slane %v3516_v34, %v5035_v30  ;;  %v3538_v41 = vadd.f32 %v3521_v36, %v5041_v35  ;;  %v4802_v35 = vld [vmem:[%s5731_s6] ss:$0 sm:$0xff] }
0x2553   :  { %v3864_v36 = vld [vmem:[%s5738_s14] sm:$0xff] }
0x2554   :  { %v3533_v47 = vrot.slane %v3517_v55, %v5035_v30  ;;  %v3539_v44 = vadd.f32 %v3525_v46, %v5047_v40  ;;  %v3540_v48 = vadd.f32 %v3529_v8, %v5045_v39  ;;  %4767 = vtanh.f32 %v3538_v41  ;;  %v4804_v8 = vld [vmem:[%s5751_s24] sm:$0xff] }
0x2556   :  { %v3541_v22 = vadd.f32 %v3533_v47, %v5052_v45  ;;  %4769 = vtanh.f32 %v3539_v44 }
0x2557   :  { %4771 = vtanh.f32 %v3540_v48 }
0x2558   :  { %4773 = vtanh.f32 %v3541_v22 }
0x255e   :  { %v4768_v25 = vpop.eup %4767 }
0x255f   :  { %v3546_v52 = vmul.f32 %v5356_v26, %v4768_v25 }
0x2560   :  { %v4770_v59 = vpop.eup %4769 }
0x2561   :  { %v4772_v53 = vpop.eup %4771  ;;  %v3550_v20 = vsel %vm90_vm1, %v3546_v52, 0.0  ;;  %v3547_v40 = vmul.f32 %v4802_v35, %v4770_v59  ;;  %v4805_v52 = vld [vmem:[%s5751_s24 + $0x10] sm:$0xff] }
0x2562   :  { %v4774_v50 = vpop.eup %4773  ;;  %3551 = vadd.xlane.f32.xlu1 %v3550_v20  ;;  %v3548_v1 = vmul.f32 %v4802_v35, %v4772_v53 }
0x2563   :  { %v3553_v39 = vsel %vm90_vm1, %v3547_v40, 0.0  ;;  %v3549_v45 = vmul.f32 %v4802_v35, %v4774_v50 }
0x2564   :  { %3554 = vadd.xlane.f32.xlu0 %v3553_v39  ;;  %v3556_v26 = vsel %vm90_vm1, %v3548_v1, 0.0  ;;  %v4806_v1 = vld [vmem:[%s5751_s24 + $0x18] sm:$0xff] }
0x2565   :  { %v3559_v2 = vsel %vm90_vm1, %v3549_v45, 0.0 }
0x2566   :  { %3560 = vadd.xlane.f32.xlu1 %v3559_v2 }
0x2568   :  { %3557 = vadd.xlane.f32.xlu0 %v3556_v26 }
0x25ef   :  { %v3552_v61 = vpop.xlane.xlu1 %3551 }
0x25f0   :  { %v3562_v51 = vmul.f32 1.442695, %v3552_v61 }
0x25f1   :  { %v3555_v60 = vpop.xlane.xlu0 %3554 }
0x25f2   :  { %v3564_v54 = vmul.f32 1.442695, %v3555_v60 }
0x25f3   :  { %v3561_v13 = vpop.xlane.xlu1 %3560 }
0x25f4   :  { %4775 = vpow2.f32 %v3564_v54  ;;  %v3568_v62 = vmul.f32 1.442695, %v3561_v13 }
0x25f5   :  { %4777 = vpow2.f32 %v3562_v51  ;;  %v3558_v63 = vpop.xlane.xlu0 %3557 }
0x25f6   :  { %v3566_v24 = vmul.f32 1.442695, %v3558_v63  ;;  %4779 = vpow2.f32 %v3568_v62 }
0x25f8   :  { %4781 = vpow2.f32 %v3566_v24 }
0x25fe   :  { %v4776_v56 = vpop.eup %4775 }
0x25ff   :  { %v4778_v0 = vpop.eup %4777  ;;  %v3581_v5 = vrot.slane %v4776_v56, %v5072_v11 }
0x2600   :  { %v4780_v6 = vpop.eup %4779  ;;  %v3577_v16 = vrot.slane %v4778_v0, %v5072_v11 }
0x2601   :  { %v3589_v9 = vrot.slane %v4780_v6, %v5072_v11 }
0x2602   :  { %v4782_v7 = vpop.eup %4781  ;;  %v3590_v33 = vsel %vm449_vm2, %v3581_v5, %v3577_v16 }
0x2603   :  { %v3585_v23 = vrot.slane %v4782_v7, %v5072_v11 }
0x2605   :  { %v3591_v10 = vsel %vm451_vm3, %v3585_v23, %v3590_v33 }
0x2606   :  { %v3592_v18 = vsel %vm453_vm4, %v3589_v9, %v3591_v10 }
0x2607   :  { %v3594_v19 = vsel %vm456_vm5, %v3592_v18, 0.0 }
0x2608   :  { %3595 = vadd.xlane.f32.xlu0 %v3594_v19 }
0x2695   :  { %v3596_v37 = vpop.xlane.xlu0 %3595 }
0x2696   :  { %4783 = vrcp.f32 %v3596_v37 }
0x26a0   :  { %v4784_v43 = vpop.eup %4783 }
0x26a1   :  { %v3598_v21 = vmul.f32 %v4784_v43, %v3596_v37  ;;  %v4152_v37 = vld [vmem:[%s5752_s23 + $0x18] sm:$0xf] }
0x26a3   :  { %v3599_v12 = vsub.f32 2.0, %v3598_v21 }
0x26a5   :  { %v3600_v27 = vmul.f32 %v4784_v43, %v3599_v12  ;;  %v4807_v43 = vld [vmem:[#allocation2] ss:$0 sm:$0xff] }
0x26a7   :  { %v3609_v28 = vrot.slane %v3600_v27, %v5083_v38  ;;  %v3605_v14 = vrot.slane %v3600_v27, %v5035_v30  ;;  %v3613_v29 = vrot.slane %v3600_v27, %v5086_v42  ;;  %v3617_v32 = vrot.slane %v3600_v27, %v5092_v49  ;;  %v3865_v30 = vld [vmem:[%s5738_s14 + $0x8] sm:$0xff]  ;;  %v4808_v27 = vld [vmem:[#allocation3] ss:$0 sm:$0xff] }
0x26a8   :  { %v4576_v38 = vpack.c.bf16 %v3865_v30, %v3864_v36  ;;  %v4803_v49 = vld [vmem:[%s5751_s24 + $0x8] sm:$0xff] }
0x26a9   :  { %v3623_v11 = vmul.f32 %v4776_v56, %v3609_v28  ;;  %v3622_v15 = vmul.f32 %v4778_v0, %v3605_v14  ;;  %v3624_v31 = vmul.f32 %v4782_v7, %v3613_v29  ;;  %v3625_v34 = vmul.f32 %v4780_v6, %v3617_v32 }
0x26aa   :  { %4577 = vmatpush3.bf16.msra.mxu0 %v4576_v38 }
0x26ab   :  { %3633 = vperm.xlu0 %4610, %v3623_v11   ;;  %3628 = vperm.xlu1 %4609, %v3622_v15  }
0x26ac   :  { %4581 = vmatprep.subr.bf16.mxu0 %v4836_v3 }
0x26af   :  { %3638 = vperm.xlu1 %4609, %v3624_v31   ;;  %v4809_v31 = vld [vmem:[#allocation5] ss:$0 sm:$0xff] }
0x26b3   :  { %3643 = vperm.xlu1 %4609, %v3625_v34  }
0x272a   :  { %v3634_v42 = vpop.permute.xlu0 %3633  ;;  %v3629_v55 = vpop.permute.xlu1 %3628 }
0x272b   :  { %v3647_v46 = vmul.f32 %v4803_v49, %v3634_v42  ;;  %v3646_v41 = vmul.f32 %v4804_v8, %v3629_v55 }
0x272d   :  { %v3657_v47 = vsel %vm90_vm1, %v3647_v46, 0.0  ;;  %v3650_v44 = vsel %vm90_vm1, %v3646_v41, 0.0 }
0x272e   :  { %v3658_v48 = vrot.slane %v3657_v47, 4  ;;  %v3651_v22 = vrot.slane %v3650_v44, 4  ;;  %v3639_v25 = vpop.permute.xlu1 %3638 }
0x272f   :  { %v3648_v59 = vmul.f32 %v4805_v52, %v3639_v25 }
0x2730   :  { %v3659_v53 = vadd.f32 %v3658_v48, %v3657_v47  ;;  %v3652_v20 = vadd.f32 %v3651_v22, %v3650_v44  ;;  %v3862_v48 = vld [vmem:[%s5737_s13] sm:$0xff]  ;;  %v3863_v22 = vld [vmem:[%s5737_s13 + $0x8] sm:$0xff] }
0x2731   :  { %v3664_v35 = vsel %vm90_vm1, %v3648_v59, 0.0  ;;  %v4579_v25 = vpack.c.bf16 %v3863_v22, %v3862_v48 }
0x2732   :  { %v3660_v40 = vrot.slane %v3659_v53, 2  ;;  %v3653_v50 = vrot.slane %v3652_v20, 2  ;;  %v3665_v39 = vrot.slane %v3664_v35, 4  ;;  %v3644_v45 = vpop.permute.xlu1 %3643 }
0x2733   :  { %v3649_v2 = vmul.f32 %v4806_v1, %v3644_v45 }
0x2734   :  { %v3661_v26 = vadd.f32 %v3660_v40, %v3659_v53  ;;  %v3654_v61 = vadd.f32 %v3653_v50, %v3652_v20  ;;  %v3666_v51 = vadd.f32 %v3665_v39, %v3664_v35  ;;  %v4019_v20 = vld [vmem:[%s5740_s16] sm:$0xff]  ;;  %v4020_v35 = vld [vmem:[%s5740_s16 + $0x8] sm:$0xff] }
0x2735   :  { %v3671_v60 = vsel %vm90_vm1, %v3649_v2, 0.0  ;;  %v4582_v40 = vpack.c.bf16 %v4020_v35, %v4019_v20  ;;  %v4158_v39 = vld [vmem:[%s5739_s15] ss:$0 sm:$0xff] }
0x2736   :  { %v3667_v54 = vrot.slane %v3666_v51, 2  ;;  %v3672_v13 = vrot.slane %v3671_v60, 4  ;;  %v3662_v62 = vrot.slane %v3661_v26, 1  ;;  %v3655_v63 = vrot.slane %v3654_v61, 1 }
0x2738   :  { %v3668_v24 = vadd.f32 %v3667_v54, %v3666_v51  ;;  %v3673_v56 = vadd.f32 %v3672_v13, %v3671_v60  ;;  %v3663_v6 = vadd.f32 %v3662_v62, %v3661_v26  ;;  %v3656_v7 = vadd.f32 %v3655_v63, %v3654_v61  ;;  %v4159_v26 = vld [vmem:[#allocation4] ss:$0 sm:$0xff] }
0x273a   :  { %v3669_v0 = vrot.slane %v3668_v24, 1  ;;  %v3674_v5 = vrot.slane %v3673_v56, 2  ;;  %v3684_v10 = vsel %vm449_vm2, %v3663_v6, %v3656_v7 }
0x273c   :  { %v3675_v16 = vadd.f32 %v3674_v5, %v3673_v56  ;;  %v3670_v23 = vadd.f32 %v3669_v0, %v3668_v24 }
0x273e   :  { %v3676_v9 = vrot.slane %v3675_v16, 1  ;;  %v3685_v18 = vsel %vm451_vm3, %v3670_v23, %v3684_v10 }
0x2740   :  { %v3677_v33 = vadd.f32 %v3676_v9, %v3675_v16 }
0x2742   :  { %v3686_v19 = vsel %vm453_vm4, %v3677_v33, %v3685_v18 }
0x2743   :  { %4457 = vmatmul.mubr.msk.f32.vlgmr.msra.gmra.mrb[24].mxu1 %vm90_vm1, %v3686_v19  ;;  %4471 = vmatmul.mubr.msk.f32.vlgmr.msra.gmra.mrb[18].mxu0 %vm90_vm1, %v3686_v19 }
0x2744   :  { %4574 = vmatpush3.bf16.msra.mxu1 %v5111_v58  ;;  %4463 = vmatprep.mubr.msk.f32.mxu1 %vm4837_vm0, %v4838_v4  ;;  %v3759_v58 = vmul.f32 %v4807_v43, %v4152_v37 }
0x2745   :  { %4578 = vmatprep.subr.bf16.mxu1 %v4836_v3  ;;  %4484 = vmatprep.mubr.msk.f32.mxu0 %vm4837_vm0, %v4838_v4 }
0x2746   :  { %4583 = vmatpush3.bf16.msra.mxu0 %v4582_v40 }
0x2747   :  { %4464 = vmatmul.mubr.msk.f32.vlgmr.msra.gmra.mrb[26].mxu1 %vm90_vm1, %v5619_v17 }
0x2748   :  { %4477 = vmatprep.mubr.msk.f32.mxu1 %vm4837_vm0, %v4838_v4  ;;  %v4810_v4 = vld [vmem:[%s5734_s10] ss:$0 sm:$0xff]  ;;  %4580 = vmatpush3.bf16.msra.mxu1 %v4579_v25 }
0x2816   :  { %v3755_v21 = vpop.f32.mrb[24].mxu1  ;;  %v3932_v12 = vpop.f32.mrb[18].mxu0 }
0x2817   :  { %v3756_v28 = vadd.f32 %v4808_v27, %v3755_v21  ;;  %v4458_v3 = vpop.f32.mrb[25].mxu1  ;;  %v4472_v14 = vpop.f32.mrb[19].mxu0 }
0x2819   :  { %v3760_v11 = vadd.f32 %v3759_v58, %v3756_v28 }
0x281a   :  { %v3827_v15 = vpop.f32.mrb[26].mxu1 }
0x281b   :  { %3833 = vperm.xlu0 %4610, %v3760_v11   ;;  %v4465_v29 = vpop.f32.mrb[27].mxu1  ;;  %v3828_v32 = vadd.f32 %v4809_v31, %v3827_v15 }
0x289a   :  { %v3834_v17 = vpop.permute.xlu0 %3833 }
0x289b   :  { %v3836_v34 = vmul.f32 %v4810_v4, %v3834_v17 }
0x289d   :  { %v3837_v36 = vadd.f32 %v3836_v34, %v3828_v32 }
0x289f   :  { %4785 = vtanh.f32 %v3837_v36  ;;  %v4155_v38 = vmul.f32 -1.442695, %v3837_v36 }
0x28a1   :  { %4787 = vpow2.f32 %v4155_v38 }
0x28a9   :  { %v4786_v30 = vpop.eup %4785 }
0x28aa   :  { %3847 = vrot.lane.b32.xlu1 %v4786_v30, %s4841_s17 }
0x28ab   :  { %v4788_v42 = vpop.eup %4787 }
0x28ac   :  { %v3841_v55 = vadd.f32 1.0, %v4788_v42 }
0x28ae   :  { %4789 = vrcp.f32 %v3841_v55 }
0x28b8   :  { %v4790_v49 = vpop.eup %4789 }
0x28b9   :  { %v3845_v41 = vmul.f32 %v4790_v49, %v5607_v57 }
0x291c   :  { %v3848_v46 = vpop.permute.xlu1 %3847 }
0x291d   :  { %v3850_v8 = vmul.f32 %v4790_v49, %v3848_v46 }
0x291f   :  { %3852 = vrot.lane.b32.xlu0 %v3850_v8, %s4842_s25 }
0x2991   :  { %v3853_v47 = vpop.permute.xlu0 %3852 }
0x2992   :  { %v3855_v44 = vadd.f32 %v3853_v47, %v3845_v41 }
0x2994   :  { %4791 = vtanh.f32 %v3855_v44 }
0x299e   :  { %v4792_v52 = vpop.eup %4791 }
0x299f   :  { %3858 = vrot.lane.b32.xlu1 %v4792_v52, %s4843_s4 }
0x2a11   :  { %v3859_v59 = vpop.permute.xlu1 %3858 }
0x2a12   :  { %v3861_v53 = vmul.f32 %v4790_v49, %v3859_v59 }
0x2a14   :  { %3937 = vrot.lane.b32.xlu0 %v3861_v53, %s4845_s27 }
0x2a86   :  { %v3938_v57 = vpop.permute.xlu0 %3937 }
0x2a87   :  { %4478 = vmatmul.mubr.msk.f32.vlgmr.msra.gmra.mrb[28].mxu1 %vm90_vm1, %v3938_v57 }
0x2b5a   :  { %v4007_v50 = vpop.f32.mrb[28].mxu1 }
0x2b5b   :  { %v4008_v45 = vadd.f32 %v4007_v50, %v3932_v12  ;;  %v4479_v1 = vpop.f32.mrb[29].mxu1 }
0x2b5d   :  { %v4018_v2 = vadd.f32 %v4158_v39, %v4008_v45 }
0x2b5f   :  { %4485 = vmatmul.mubr.msk.f32.vlgmr.msra.gmra.mrb[20].mxu0 %vm90_vm1, %v4018_v2 }
0x2c32   :  { %v4097_v61 = vpop.f32.mrb[20].mxu0 }
0x2c33   :  { %v4098_v51 = vadd.f32 %v4159_v26, %v4097_v61  ;;  %v4486_v60 = vpop.f32.mrb[21].mxu0 }
0x2c35   :  { %4102 = vst.msk [vmem:[%s5741_s18] sm:$0xf] %vm4101_vm6, %v4098_v51 }
0x2c36   :  { %4107 = vsyncpa [#allocation6], 1 }

</bundles_post_ra>
